<compile_context>
chip_gen: v5e
topology: v5e:2x2
jax: 0.10.0
libtpu: 0.0.40
codegen_flags: <defaults>
</compile_context>

<pallas_src>
import functools

import jax
import jax.numpy as jnp
from jax import lax
from jax.experimental import pallas as pl
from jax.experimental.pallas import tpu as pltpu

# ----------------------------- model sizes ---------------------------------
VOCAB = 50
EMBED = 30                      # embedding_dim
NUM_HEADS = 2
HEAD_DIM = EMBED // NUM_HEADS   # 15
RNN_H = 64                      # rnn_hidden_size
FFN_H = 128                     # ffn_hidden_size
B = 2                           # batch
S = 8                           # sequence length

_VMEM = functools.partial(pl.BlockSpec, memory_space=pltpu.MemorySpace.VMEM)


# --------------------- in-kernel attention helper ---------------------------
def _attention_block(xf, wqkv, bqkv, wo, bo, gamma, beta):
    """One SelfAttentionLayer on a flat (B*S, E) slab: MHA (eval, unmasked,
    matching nn.MultiheadAttention defaults) + residual + LayerNorm.

    wqkv: (E, 3E) = [Wq | Wk | Wv] with 1/sqrt(Dh) already folded into Wq.
    wo:   (E, E)  out projection on head-concatenated outputs.
    """
    qkv = jnp.dot(xf, wqkv, preferred_element_type=jnp.float32) + bqkv  # (BS,3E)

    head_outs = []
    for h in range(NUM_HEADS):
        q = qkv[:, h * HEAD_DIM:(h + 1) * HEAD_DIM].reshape(B, S, HEAD_DIM)
        k = qkv[:, EMBED + h * HEAD_DIM:EMBED + (h + 1) * HEAD_DIM
                ].reshape(B, S, HEAD_DIM)
        v = qkv[:, 2 * EMBED + h * HEAD_DIM:2 * EMBED + (h + 1) * HEAD_DIM
                ].reshape(B, S, HEAD_DIM)
        sc = jnp.einsum('bqd,bkd->bqk', q, k,
                        preferred_element_type=jnp.float32)       # (B,S,S)
        m = jnp.max(sc, axis=-1, keepdims=True)
        ex = jnp.exp(sc - m)
        inv = pl.reciprocal(jnp.sum(ex, axis=-1, keepdims=True), approx=True)
        p = ex * inv
        o = jnp.einsum('bqk,bkd->bqd', p, v,
                       preferred_element_type=jnp.float32)        # (B,S,Dh)
        head_outs.append(o.reshape(B * S, HEAD_DIM))

    o_cat = jnp.concatenate(head_outs, axis=-1)                   # (BS, E)
    attn = jnp.dot(o_cat, wo, preferred_element_type=jnp.float32) + bo

    # residual + LayerNorm (biased variance, eps=1e-5, like PyTorch)
    z = xf + attn
    mean = jnp.mean(z, axis=-1, keepdims=True)
    var = jnp.mean((z - mean) ** 2, axis=-1, keepdims=True)
    return (z - mean) * lax.rsqrt(var + 1e-5) * gamma + beta


# --------------------------- fused forward kernel ---------------------------
def lm_fused_kernel(tok_ref, emb_ref,
                    a1_wqkv, a1_bqkv, a1_wo, a1_bo, a1_g, a1_b,
                    a2_wqkv, a2_bqkv, a2_wo, a2_bo, a2_g, a2_b,
                    wih_ref, whh_ref, bih_ref, bhn_ref,
                    f1_w, f1_b, f2_w, f2_b, f3_w, f3_b, fo_w, fo_b,
                    logits_ref, hidden_ref):
    # 1) Embedding lookup as one-hot matmul on the MXU (no XLA gather).
    tok = tok_ref[...]                                            # (BS, 1) i32
    cols = lax.broadcasted_iota(jnp.int32, (B * S, VOCAB), 1)
    onehot = (tok == cols).astype(jnp.float32)                    # (BS, VOCAB)
    x = jnp.dot(onehot, emb_ref[...],
                preferred_element_type=jnp.float32)               # (BS, E)

    # 2) Two self-attention layers (activations stay in vregs/VMEM).
    x = _attention_block(x, a1_wqkv[...], a1_bqkv[...], a1_wo[...],
                         a1_bo[...], a1_g[...], a1_b[...])
    x = _attention_block(x, a2_wqkv[...], a2_bqkv[...], a2_wo[...],
                         a2_bo[...], a2_g[...], a2_b[...])

    # 3) GRU. Gate order (r, z, n), lane-concatenated as 3*H = 192 lanes.
    #    Input projection (with r/z hidden biases folded in) hoisted out of
    #    the recurrence; recurrence fully unrolled (S static), one fused MXU
    #    push per step.
    gi = (jnp.dot(x, wih_ref[...], preferred_element_type=jnp.float32)
          + bih_ref[...]).reshape(B, S, 3 * RNN_H)                # (B,S,3H)

    whh = whh_ref[...]                                            # (H, 3H)
    bhn = jnp.broadcast_to(bhn_ref[...], (B, RNN_H))              # hoisted

    h = jnp.zeros((B, RNN_H), jnp.float32)
    for t in range(S):                                            # unrolled
        gh = jnp.dot(h, whh, preferred_element_type=jnp.float32)  # (B, 3H)
        gi_t = gi[:, t, :]                                        # (B, 3H)
        # r|z occupy lanes [0,128): single 128-lane sigmoid (EUP).
        rz = jax.nn.sigmoid(gi_t[:, :2 * RNN_H] + gh[:, :2 * RNN_H])
        r = rz[:, :RNN_H]
        z = rz[:, RNN_H:]
        n = jnp.tanh(gi_t[:, 2 * RNN_H:] + r * (gh[:, 2 * RNN_H:] + bhn))
        h = n + z * (h - n)                                       # (1-z)n + zh

    hidden_ref[...] = h                                           # final hidden

    # 4) FFN (3x Linear+ReLU) + output projection.
    y = jnp.maximum(
        jnp.dot(h, f1_w[...], preferred_element_type=jnp.float32) + f1_b[...],
        0.0)
    y = jnp.maximum(
        jnp.dot(y, f2_w[...], preferred_element_type=jnp.float32) + f2_b[...],
        0.0)
    y = jnp.maximum(
        jnp.dot(y, f3_w[...], preferred_element_type=jnp.float32) + f3_b[...],
        0.0)
    logits_ref[...] = (
        jnp.dot(y, fo_w[...], preferred_element_type=jnp.float32) + fo_b[...])


# ------------------------------ pallas_call wrapper --------------------------
_NUM_INPUTS = 26


def make_fused_call():
    return pl.pallas_call(
        lm_fused_kernel,
        out_shape=(jax.ShapeDtypeStruct((B, VOCAB), jnp.float32),
                   jax.ShapeDtypeStruct((B, RNN_H), jnp.float32)),
        in_specs=[_VMEM() for _ in range(_NUM_INPUTS)],
        out_specs=(_VMEM(), _VMEM()),
    )


# ------------------------------ parameter init -------------------------------
def init_params(key):
    def nrm(k, shape, scale=0.05):
        return (scale * jax.random.normal(k, shape)).astype(jnp.float32)

    keys = jax.random.split(key, 40)
    ki = iter(keys)

    params = {}
    params["embedding"] = nrm(next(ki), (VOCAB, EMBED), 0.5)

    attn_scale = 1.0 / (HEAD_DIM ** 0.5)

    def attn_params():
        # 1/sqrt(Dh) folded into Wq/bq at init time (zero runtime cost).
        wq = nrm(next(ki), (EMBED, EMBED)) * attn_scale
        wk = nrm(next(ki), (EMBED, EMBED))
        wv = nrm(next(ki), (EMBED, EMBED))
        bq = nrm(next(ki), (1, EMBED)) * attn_scale
        bk = nrm(next(ki), (1, EMBED))
        bv = nrm(next(ki), (1, EMBED))
        wqkv = jnp.concatenate([wq, wk, wv], axis=1)        # (E, 3E)
        bqkv = jnp.concatenate([bq, bk, bv], axis=1)        # (1, 3E)
        wo = nrm(next(ki), (EMBED, EMBED))                  # out_proj^T
        bo = nrm(next(ki), (1, EMBED))
        gamma = jnp.ones((1, EMBED), jnp.float32)
        beta = jnp.zeros((1, EMBED), jnp.float32)
        return (wqkv, bqkv, wo, bo, gamma, beta)

    params["attn1"] = attn_params()
    params["attn2"] = attn_params()

    # GRU weights, gate order (r, z, n), lane-concatenated and pre-transposed.
    wih_cat = nrm(next(ki), (EMBED, 3 * RNN_H))             # [Wir|Wiz|Win]^T
    whh_cat = nrm(next(ki), (RNN_H, 3 * RNN_H))             # [Whr|Whz|Whn]^T
    b_ih = nrm(next(ki), (1, 3 * RNN_H))
    b_hh = nrm(next(ki), (1, 3 * RNN_H))
    # b_hr, b_hz fold into the (hoisted) input projection; b_hn stays inside
    # the r * (Whn h + b_hn) term of the recurrence.
    bi_cat = b_ih + jnp.concatenate(
        [b_hh[:, :2 * RNN_H], jnp.zeros((1, RNN_H), jnp.float32)], axis=1)
    bhn = b_hh[:, 2 * RNN_H:]
    params["gru"] = (wih_cat, whh_cat, bi_cat, bhn)

    params["ffn"] = (
        nrm(next(ki), (RNN_H, FFN_H)), nrm(next(ki), (1, FFN_H)),
        nrm(next(ki), (FFN_H, FFN_H)), nrm(next(ki), (1, FFN_H)),
        nrm(next(ki), (FFN_H, FFN_H)), nrm(next(ki), (1, FFN_H)),
        nrm(next(ki), (FFN_H, VOCAB)), nrm(next(ki), (1, VOCAB)),
    )
    return params


# ------------------------------- forward pass --------------------------------
@jax.jit
def language_model_forward(params, tokens):
    fused = make_fused_call()
    tok_flat = tokens.reshape(B * S, 1).astype(jnp.int32)
    logits, h_last = fused(
        tok_flat, params["embedding"],
        *params["attn1"], *params["attn2"],
        *params["gru"], *params["ffn"])
    hidden = h_last[None, :, :]                         # (1, B, H) GRU hidden
    return logits, hidden


if __name__ == "__main__":
    key = jax.random.PRNGKey(0)
    pkey, tkey = jax.random.split(key)
    params = init_params(pkey)
    tokens = jax.random.randint(tkey, (B, S), 0, VOCAB, dtype=jnp.int32)

    logits, hidden = language_model_forward(params, tokens)
    jax.block_until_ready((logits, hidden))

    assert logits.shape == (B, VOCAB)
    assert hidden.shape == (1, B, RNN_H)
    assert bool(jnp.all(jnp.isfinite(logits)))
    assert bool(jnp.all(jnp.isfinite(hidden)))
    print("KERNEL_OK")
</pallas_src>

<mosaic_0001>
module attributes {stable_mosaic.version = 11 : i64} {
  func.func @lm_fused_kernel(%arg0: memref<16x1xi32, #tpu.memory_space<vmem>>, %arg1: memref<50x30xf32, #tpu.memory_space<vmem>>, %arg2: memref<30x90xf32, #tpu.memory_space<vmem>>, %arg3: memref<1x90xf32, #tpu.memory_space<vmem>>, %arg4: memref<30x30xf32, #tpu.memory_space<vmem>>, %arg5: memref<1x30xf32, #tpu.memory_space<vmem>>, %arg6: memref<1x30xf32, #tpu.memory_space<vmem>>, %arg7: memref<1x30xf32, #tpu.memory_space<vmem>>, %arg8: memref<30x90xf32, #tpu.memory_space<vmem>>, %arg9: memref<1x90xf32, #tpu.memory_space<vmem>>, %arg10: memref<30x30xf32, #tpu.memory_space<vmem>>, %arg11: memref<1x30xf32, #tpu.memory_space<vmem>>, %arg12: memref<1x30xf32, #tpu.memory_space<vmem>>, %arg13: memref<1x30xf32, #tpu.memory_space<vmem>>, %arg14: memref<30x192xf32, #tpu.memory_space<vmem>>, %arg15: memref<64x192xf32, #tpu.memory_space<vmem>>, %arg16: memref<1x192xf32, #tpu.memory_space<vmem>>, %arg17: memref<1x64xf32, #tpu.memory_space<vmem>>, %arg18: memref<64x128xf32, #tpu.memory_space<vmem>>, %arg19: memref<1x128xf32, #tpu.memory_space<vmem>>, %arg20: memref<128x128xf32, #tpu.memory_space<vmem>>, %arg21: memref<1x128xf32, #tpu.memory_space<vmem>>, %arg22: memref<128x128xf32, #tpu.memory_space<vmem>>, %arg23: memref<1x128xf32, #tpu.memory_space<vmem>>, %arg24: memref<128x50xf32, #tpu.memory_space<vmem>>, %arg25: memref<1x50xf32, #tpu.memory_space<vmem>>, %arg26: memref<2x50xf32, #tpu.memory_space<vmem>>, %arg27: memref<2x64xf32, #tpu.memory_space<vmem>>) attributes {dimension_semantics = [], scalar_prefetch = 0 : i64, scratch_operands = 0 : i64, tpu.core_type = #tpu.core_type<tc>} {
    %c0 = arith.constant 0 : index
    %c0_0 = arith.constant 0 : index
    %0 = vector.load %arg0[%c0, %c0_0] : memref<16x1xi32, #tpu.memory_space<vmem>>, vector<16x1xi32>
    %1 = tpu.iota {dimensions = array<i32: 1>} : vector<16x50xi32>
    %2 = vector.broadcast %0 : vector<16x1xi32> to vector<16x50xi32>
    %3 = arith.cmpi eq, %2, %1 : vector<16x50xi32>
    %4 = arith.extui %3 : vector<16x50xi1> to vector<16x50xi32>
    %5 = arith.sitofp %4 : vector<16x50xi32> to vector<16x50xf32>
    %c0_1 = arith.constant 0 : index
    %c0_2 = arith.constant 0 : index
    %6 = vector.load %arg1[%c0_1, %c0_2] : memref<50x30xf32, #tpu.memory_space<vmem>>, vector<50x30xf32>
    %cst = arith.constant dense<0.000000e+00> : vector<16x30xf32>
    %7 = tpu.matmul %5, %6, %cst {dimension_numbers = #tpu.dot_dimension_numbers<[1], [0], [0], [1], [0, 0, 1, 1], [], []>} : vector<16x50xf32>, vector<50x30xf32>, vector<16x30xf32> -> vector<16x30xf32>
    %c0_3 = arith.constant 0 : index
    %c0_4 = arith.constant 0 : index
    %8 = vector.load %arg2[%c0_3, %c0_4] : memref<30x90xf32, #tpu.memory_space<vmem>>, vector<30x90xf32>
    %c0_5 = arith.constant 0 : index
    %c0_6 = arith.constant 0 : index
    %9 = vector.load %arg3[%c0_5, %c0_6] : memref<1x90xf32, #tpu.memory_space<vmem>>, vector<1x90xf32>
    %c0_7 = arith.constant 0 : index
    %c0_8 = arith.constant 0 : index
    %10 = vector.load %arg4[%c0_7, %c0_8] : memref<30x30xf32, #tpu.memory_space<vmem>>, vector<30x30xf32>
    %c0_9 = arith.constant 0 : index
    %c0_10 = arith.constant 0 : index
    %11 = vector.load %arg5[%c0_9, %c0_10] : memref<1x30xf32, #tpu.memory_space<vmem>>, vector<1x30xf32>
    %c0_11 = arith.constant 0 : index
    %c0_12 = arith.constant 0 : index
    %12 = vector.load %arg6[%c0_11, %c0_12] : memref<1x30xf32, #tpu.memory_space<vmem>>, vector<1x30xf32>
    %c0_13 = arith.constant 0 : index
    %c0_14 = arith.constant 0 : index
    %13 = vector.load %arg7[%c0_13, %c0_14] : memref<1x30xf32, #tpu.memory_space<vmem>>, vector<1x30xf32>
    %cst_15 = arith.constant dense<0.000000e+00> : vector<16x90xf32>
    %14 = tpu.matmul %7, %8, %cst_15 {dimension_numbers = #tpu.dot_dimension_numbers<[1], [0], [0], [1], [0, 0, 1, 1], [], []>} : vector<16x30xf32>, vector<30x90xf32>, vector<16x90xf32> -> vector<16x90xf32>
    %15 = vector.broadcast %9 : vector<1x90xf32> to vector<16x90xf32>
    %16 = arith.addf %14, %15 : vector<16x90xf32>
    %17 = vector.extract_strided_slice %16 {offsets = [0, 0], sizes = [16, 15], strides = [1, 1]} : vector<16x90xf32> to vector<16x15xf32>
    %18 = vector.shape_cast %17 : vector<16x15xf32> to vector<2x8x15xf32>
    %19 = vector.extract_strided_slice %16 {offsets = [0, 30], sizes = [16, 15], strides = [1, 1]} : vector<16x90xf32> to vector<16x15xf32>
    %20 = vector.shape_cast %19 : vector<16x15xf32> to vector<2x8x15xf32>
    %21 = vector.extract_strided_slice %16 {offsets = [0, 60], sizes = [16, 15], strides = [1, 1]} : vector<16x90xf32> to vector<16x15xf32>
    %22 = vector.shape_cast %21 : vector<16x15xf32> to vector<2x8x15xf32>
    "tpu.trace_start"() <{level = 10 : i32, message = "bqd,bkd->bqk"}> : () -> ()
    %cst_16 = arith.constant dense<0.000000e+00> : vector<2x8x8xf32>
    %23 = tpu.matmul %18, %20, %cst_16 {dimension_numbers = #tpu.dot_dimension_numbers<[2], [2], [1], [1], [0, 0, 0, 1, 1, 1], [0], [0]>} : vector<2x8x15xf32>, vector<2x8x15xf32>, vector<2x8x8xf32> -> vector<2x8x8xf32>
    "tpu.trace_stop"() : () -> ()
    %cst_17 = arith.constant dense<0xFF800000> : vector<2x8xf32>
    %24 = vector.multi_reduction <maximumf>, %23, %cst_17 [2] : vector<2x8x8xf32> to vector<2x8xf32>
    %25 = vector.shape_cast %24 : vector<2x8xf32> to vector<2x8x1xf32>
    %26 = vector.broadcast %25 : vector<2x8x1xf32> to vector<2x8x8xf32>
    %27 = arith.subf %23, %26 : vector<2x8x8xf32>
    %28 = math.exp %27 : vector<2x8x8xf32>
    %cst_18 = arith.constant dense<0.000000e+00> : vector<2x8xf32>
    %29 = vector.multi_reduction <add>, %28, %cst_18 [2] : vector<2x8x8xf32> to vector<2x8xf32>
    %30 = vector.shape_cast %29 : vector<2x8xf32> to vector<2x8x1xf32>
    %31 = tpu.reciprocal %30 {approx = true} : vector<2x8x1xf32> -> vector<2x8x1xf32>
    %32 = vector.broadcast %31 : vector<2x8x1xf32> to vector<2x8x8xf32>
    %33 = arith.mulf %28, %32 : vector<2x8x8xf32>
    "tpu.trace_start"() <{level = 10 : i32, message = "bqk,bkd->bqd"}> : () -> ()
    %cst_19 = arith.constant dense<0.000000e+00> : vector<2x8x15xf32>
    %34 = tpu.matmul %33, %22, %cst_19 {dimension_numbers = #tpu.dot_dimension_numbers<[2], [1], [1], [2], [0, 0, 0, 1, 1, 2], [0], [0]>} : vector<2x8x8xf32>, vector<2x8x15xf32>, vector<2x8x15xf32> -> vector<2x8x15xf32>
    "tpu.trace_stop"() : () -> ()
    %35 = vector.shape_cast %34 : vector<2x8x15xf32> to vector<16x15xf32>
    %36 = vector.extract_strided_slice %16 {offsets = [0, 15], sizes = [16, 15], strides = [1, 1]} : vector<16x90xf32> to vector<16x15xf32>
    %37 = vector.shape_cast %36 : vector<16x15xf32> to vector<2x8x15xf32>
    %38 = vector.extract_strided_slice %16 {offsets = [0, 45], sizes = [16, 15], strides = [1, 1]} : vector<16x90xf32> to vector<16x15xf32>
    %39 = vector.shape_cast %38 : vector<16x15xf32> to vector<2x8x15xf32>
    %40 = vector.extract_strided_slice %16 {offsets = [0, 75], sizes = [16, 15], strides = [1, 1]} : vector<16x90xf32> to vector<16x15xf32>
    %41 = vector.shape_cast %40 : vector<16x15xf32> to vector<2x8x15xf32>
    "tpu.trace_start"() <{level = 10 : i32, message = "bqd,bkd->bqk"}> : () -> ()
    %cst_20 = arith.constant dense<0.000000e+00> : vector<2x8x8xf32>
    %42 = tpu.matmul %37, %39, %cst_20 {dimension_numbers = #tpu.dot_dimension_numbers<[2], [2], [1], [1], [0, 0, 0, 1, 1, 1], [0], [0]>} : vector<2x8x15xf32>, vector<2x8x15xf32>, vector<2x8x8xf32> -> vector<2x8x8xf32>
    "tpu.trace_stop"() : () -> ()
    %cst_21 = arith.constant dense<0xFF800000> : vector<2x8xf32>
    %43 = vector.multi_reduction <maximumf>, %42, %cst_21 [2] : vector<2x8x8xf32> to vector<2x8xf32>
    %44 = vector.shape_cast %43 : vector<2x8xf32> to vector<2x8x1xf32>
    %45 = vector.broadcast %44 : vector<2x8x1xf32> to vector<2x8x8xf32>
    %46 = arith.subf %42, %45 : vector<2x8x8xf32>
    %47 = math.exp %46 : vector<2x8x8xf32>
    %cst_22 = arith.constant dense<0.000000e+00> : vector<2x8xf32>
    %48 = vector.multi_reduction <add>, %47, %cst_22 [2] : vector<2x8x8xf32> to vector<2x8xf32>
    %49 = vector.shape_cast %48 : vector<2x8xf32> to vector<2x8x1xf32>
    %50 = tpu.reciprocal %49 {approx = true} : vector<2x8x1xf32> -> vector<2x8x1xf32>
    %51 = vector.broadcast %50 : vector<2x8x1xf32> to vector<2x8x8xf32>
    %52 = arith.mulf %47, %51 : vector<2x8x8xf32>
    "tpu.trace_start"() <{level = 10 : i32, message = "bqk,bkd->bqd"}> : () -> ()
    %cst_23 = arith.constant dense<0.000000e+00> : vector<2x8x15xf32>
    %53 = tpu.matmul %52, %41, %cst_23 {dimension_numbers = #tpu.dot_dimension_numbers<[2], [1], [1], [2], [0, 0, 0, 1, 1, 2], [0], [0]>} : vector<2x8x8xf32>, vector<2x8x15xf32>, vector<2x8x15xf32> -> vector<2x8x15xf32>
    "tpu.trace_stop"() : () -> ()
    %54 = vector.shape_cast %53 : vector<2x8x15xf32> to vector<16x15xf32>
    %55 = tpu.concatenate %35, %54 in 1 : vector<16x15xf32>, vector<16x15xf32> -> vector<16x30xf32>
    %cst_24 = arith.constant dense<0.000000e+00> : vector<16x30xf32>
    %56 = tpu.matmul %55, %10, %cst_24 {dimension_numbers = #tpu.dot_dimension_numbers<[1], [0], [0], [1], [0, 0, 1, 1], [], []>} : vector<16x30xf32>, vector<30x30xf32>, vector<16x30xf32> -> vector<16x30xf32>
    %57 = vector.broadcast %11 : vector<1x30xf32> to vector<16x30xf32>
    %58 = arith.addf %56, %57 : vector<16x30xf32>
    %59 = arith.addf %7, %58 : vector<16x30xf32>
    %cst_25 = arith.constant dense<0.000000e+00> : vector<16xf32>
    %60 = vector.multi_reduction <add>, %59, %cst_25 [1] : vector<16x30xf32> to vector<16xf32>
    %61 = vector.shape_cast %60 : vector<16xf32> to vector<16x1xf32>
    %cst_26 = arith.constant 3.000000e+01 : f32
    %62 = vector.broadcast %cst_26 : f32 to vector<16x1xf32>
    %63 = arith.divf %61, %62 : vector<16x1xf32>
    %64 = vector.broadcast %63 : vector<16x1xf32> to vector<16x30xf32>
    %65 = arith.subf %59, %64 : vector<16x30xf32>
    %66 = arith.mulf %65, %65 : vector<16x30xf32>
    %cst_27 = arith.constant dense<0.000000e+00> : vector<16xf32>
    %67 = vector.multi_reduction <add>, %66, %cst_27 [1] : vector<16x30xf32> to vector<16xf32>
    %68 = vector.shape_cast %67 : vector<16xf32> to vector<16x1xf32>
    %cst_28 = arith.constant 3.000000e+01 : f32
    %69 = vector.broadcast %cst_28 : f32 to vector<16x1xf32>
    %70 = arith.divf %68, %69 : vector<16x1xf32>
    %71 = vector.broadcast %63 : vector<16x1xf32> to vector<16x30xf32>
    %72 = arith.subf %59, %71 : vector<16x30xf32>
    %cst_29 = arith.constant 9.99999974E-6 : f32
    %73 = vector.broadcast %cst_29 : f32 to vector<16x1xf32>
    %74 = arith.addf %70, %73 : vector<16x1xf32>
    %75 = math.rsqrt %74 : vector<16x1xf32>
    %76 = vector.broadcast %75 : vector<16x1xf32> to vector<16x30xf32>
    %77 = arith.mulf %72, %76 : vector<16x30xf32>
    %78 = vector.broadcast %12 : vector<1x30xf32> to vector<16x30xf32>
    %79 = arith.mulf %77, %78 : vector<16x30xf32>
    %80 = vector.broadcast %13 : vector<1x30xf32> to vector<16x30xf32>
    %81 = arith.addf %79, %80 : vector<16x30xf32>
    %c0_30 = arith.constant 0 : index
    %c0_31 = arith.constant 0 : index
    %82 = vector.load %arg8[%c0_30, %c0_31] : memref<30x90xf32, #tpu.memory_space<vmem>>, vector<30x90xf32>
    %c0_32 = arith.constant 0 : index
    %c0_33 = arith.constant 0 : index
    %83 = vector.load %arg9[%c0_32, %c0_33] : memref<1x90xf32, #tpu.memory_space<vmem>>, vector<1x90xf32>
    %c0_34 = arith.constant 0 : index
    %c0_35 = arith.constant 0 : index
    %84 = vector.load %arg10[%c0_34, %c0_35] : memref<30x30xf32, #tpu.memory_space<vmem>>, vector<30x30xf32>
    %c0_36 = arith.constant 0 : index
    %c0_37 = arith.constant 0 : index
    %85 = vector.load %arg11[%c0_36, %c0_37] : memref<1x30xf32, #tpu.memory_space<vmem>>, vector<1x30xf32>
    %c0_38 = arith.constant 0 : index
    %c0_39 = arith.constant 0 : index
    %86 = vector.load %arg12[%c0_38, %c0_39] : memref<1x30xf32, #tpu.memory_space<vmem>>, vector<1x30xf32>
    %c0_40 = arith.constant 0 : index
    %c0_41 = arith.constant 0 : index
    %87 = vector.load %arg13[%c0_40, %c0_41] : memref<1x30xf32, #tpu.memory_space<vmem>>, vector<1x30xf32>
    %cst_42 = arith.constant dense<0.000000e+00> : vector<16x90xf32>
    %88 = tpu.matmul %81, %82, %cst_42 {dimension_numbers = #tpu.dot_dimension_numbers<[1], [0], [0], [1], [0, 0, 1, 1], [], []>} : vector<16x30xf32>, vector<30x90xf32>, vector<16x90xf32> -> vector<16x90xf32>
    %89 = vector.broadcast %83 : vector<1x90xf32> to vector<16x90xf32>
    %90 = arith.addf %88, %89 : vector<16x90xf32>
    %91 = vector.extract_strided_slice %90 {offsets = [0, 0], sizes = [16, 15], strides = [1, 1]} : vector<16x90xf32> to vector<16x15xf32>
    %92 = vector.shape_cast %91 : vector<16x15xf32> to vector<2x8x15xf32>
    %93 = vector.extract_strided_slice %90 {offsets = [0, 30], sizes = [16, 15], strides = [1, 1]} : vector<16x90xf32> to vector<16x15xf32>
    %94 = vector.shape_cast %93 : vector<16x15xf32> to vector<2x8x15xf32>
    %95 = vector.extract_strided_slice %90 {offsets = [0, 60], sizes = [16, 15], strides = [1, 1]} : vector<16x90xf32> to vector<16x15xf32>
    %96 = vector.shape_cast %95 : vector<16x15xf32> to vector<2x8x15xf32>
    "tpu.trace_start"() <{level = 10 : i32, message = "bqd,bkd->bqk"}> : () -> ()
    %cst_43 = arith.constant dense<0.000000e+00> : vector<2x8x8xf32>
    %97 = tpu.matmul %92, %94, %cst_43 {dimension_numbers = #tpu.dot_dimension_numbers<[2], [2], [1], [1], [0, 0, 0, 1, 1, 1], [0], [0]>} : vector<2x8x15xf32>, vector<2x8x15xf32>, vector<2x8x8xf32> -> vector<2x8x8xf32>
    "tpu.trace_stop"() : () -> ()
    %cst_44 = arith.constant dense<0xFF800000> : vector<2x8xf32>
    %98 = vector.multi_reduction <maximumf>, %97, %cst_44 [2] : vector<2x8x8xf32> to vector<2x8xf32>
    %99 = vector.shape_cast %98 : vector<2x8xf32> to vector<2x8x1xf32>
    %100 = vector.broadcast %99 : vector<2x8x1xf32> to vector<2x8x8xf32>
    %101 = arith.subf %97, %100 : vector<2x8x8xf32>
    %102 = math.exp %101 : vector<2x8x8xf32>
    %cst_45 = arith.constant dense<0.000000e+00> : vector<2x8xf32>
    %103 = vector.multi_reduction <add>, %102, %cst_45 [2] : vector<2x8x8xf32> to vector<2x8xf32>
    %104 = vector.shape_cast %103 : vector<2x8xf32> to vector<2x8x1xf32>
    %105 = tpu.reciprocal %104 {approx = true} : vector<2x8x1xf32> -> vector<2x8x1xf32>
    %106 = vector.broadcast %105 : vector<2x8x1xf32> to vector<2x8x8xf32>
    %107 = arith.mulf %102, %106 : vector<2x8x8xf32>
    "tpu.trace_start"() <{level = 10 : i32, message = "bqk,bkd->bqd"}> : () -> ()
    %cst_46 = arith.constant dense<0.000000e+00> : vector<2x8x15xf32>
    %108 = tpu.matmul %107, %96, %cst_46 {dimension_numbers = #tpu.dot_dimension_numbers<[2], [1], [1], [2], [0, 0, 0, 1, 1, 2], [0], [0]>} : vector<2x8x8xf32>, vector<2x8x15xf32>, vector<2x8x15xf32> -> vector<2x8x15xf32>
    "tpu.trace_stop"() : () -> ()
    %109 = vector.shape_cast %108 : vector<2x8x15xf32> to vector<16x15xf32>
    %110 = vector.extract_strided_slice %90 {offsets = [0, 15], sizes = [16, 15], strides = [1, 1]} : vector<16x90xf32> to vector<16x15xf32>
    %111 = vector.shape_cast %110 : vector<16x15xf32> to vector<2x8x15xf32>
    %112 = vector.extract_strided_slice %90 {offsets = [0, 45], sizes = [16, 15], strides = [1, 1]} : vector<16x90xf32> to vector<16x15xf32>
    %113 = vector.shape_cast %112 : vector<16x15xf32> to vector<2x8x15xf32>
    %114 = vector.extract_strided_slice %90 {offsets = [0, 75], sizes = [16, 15], strides = [1, 1]} : vector<16x90xf32> to vector<16x15xf32>
    %115 = vector.shape_cast %114 : vector<16x15xf32> to vector<2x8x15xf32>
    "tpu.trace_start"() <{level = 10 : i32, message = "bqd,bkd->bqk"}> : () -> ()
    %cst_47 = arith.constant dense<0.000000e+00> : vector<2x8x8xf32>
    %116 = tpu.matmul %111, %113, %cst_47 {dimension_numbers = #tpu.dot_dimension_numbers<[2], [2], [1], [1], [0, 0, 0, 1, 1, 1], [0], [0]>} : vector<2x8x15xf32>, vector<2x8x15xf32>, vector<2x8x8xf32> -> vector<2x8x8xf32>
    "tpu.trace_stop"() : () -> ()
    %cst_48 = arith.constant dense<0xFF800000> : vector<2x8xf32>
    %117 = vector.multi_reduction <maximumf>, %116, %cst_48 [2] : vector<2x8x8xf32> to vector<2x8xf32>
    %118 = vector.shape_cast %117 : vector<2x8xf32> to vector<2x8x1xf32>
    %119 = vector.broadcast %118 : vector<2x8x1xf32> to vector<2x8x8xf32>
    %120 = arith.subf %116, %119 : vector<2x8x8xf32>
    %121 = math.exp %120 : vector<2x8x8xf32>
    %cst_49 = arith.constant dense<0.000000e+00> : vector<2x8xf32>
    %122 = vector.multi_reduction <add>, %121, %cst_49 [2] : vector<2x8x8xf32> to vector<2x8xf32>
    %123 = vector.shape_cast %122 : vector<2x8xf32> to vector<2x8x1xf32>
    %124 = tpu.reciprocal %123 {approx = true} : vector<2x8x1xf32> -> vector<2x8x1xf32>
    %125 = vector.broadcast %124 : vector<2x8x1xf32> to vector<2x8x8xf32>
    %126 = arith.mulf %121, %125 : vector<2x8x8xf32>
    "tpu.trace_start"() <{level = 10 : i32, message = "bqk,bkd->bqd"}> : () -> ()
    %cst_50 = arith.constant dense<0.000000e+00> : vector<2x8x15xf32>
    %127 = tpu.matmul %126, %115, %cst_50 {dimension_numbers = #tpu.dot_dimension_numbers<[2], [1], [1], [2], [0, 0, 0, 1, 1, 2], [0], [0]>} : vector<2x8x8xf32>, vector<2x8x15xf32>, vector<2x8x15xf32> -> vector<2x8x15xf32>
    "tpu.trace_stop"() : () -> ()
    %128 = vector.shape_cast %127 : vector<2x8x15xf32> to vector<16x15xf32>
    %129 = tpu.concatenate %109, %128 in 1 : vector<16x15xf32>, vector<16x15xf32> -> vector<16x30xf32>
    %cst_51 = arith.constant dense<0.000000e+00> : vector<16x30xf32>
    %130 = tpu.matmul %129, %84, %cst_51 {dimension_numbers = #tpu.dot_dimension_numbers<[1], [0], [0], [1], [0, 0, 1, 1], [], []>} : vector<16x30xf32>, vector<30x30xf32>, vector<16x30xf32> -> vector<16x30xf32>
    %131 = vector.broadcast %85 : vector<1x30xf32> to vector<16x30xf32>
    %132 = arith.addf %130, %131 : vector<16x30xf32>
    %133 = arith.addf %81, %132 : vector<16x30xf32>
    %cst_52 = arith.constant dense<0.000000e+00> : vector<16xf32>
    %134 = vector.multi_reduction <add>, %133, %cst_52 [1] : vector<16x30xf32> to vector<16xf32>
    %135 = vector.shape_cast %134 : vector<16xf32> to vector<16x1xf32>
    %cst_53 = arith.constant 3.000000e+01 : f32
    %136 = vector.broadcast %cst_53 : f32 to vector<16x1xf32>
    %137 = arith.divf %135, %136 : vector<16x1xf32>
    %138 = vector.broadcast %137 : vector<16x1xf32> to vector<16x30xf32>
    %139 = arith.subf %133, %138 : vector<16x30xf32>
    %140 = arith.mulf %139, %139 : vector<16x30xf32>
    %cst_54 = arith.constant dense<0.000000e+00> : vector<16xf32>
    %141 = vector.multi_reduction <add>, %140, %cst_54 [1] : vector<16x30xf32> to vector<16xf32>
    %142 = vector.shape_cast %141 : vector<16xf32> to vector<16x1xf32>
    %cst_55 = arith.constant 3.000000e+01 : f32
    %143 = vector.broadcast %cst_55 : f32 to vector<16x1xf32>
    %144 = arith.divf %142, %143 : vector<16x1xf32>
    %145 = vector.broadcast %137 : vector<16x1xf32> to vector<16x30xf32>
    %146 = arith.subf %133, %145 : vector<16x30xf32>
    %cst_56 = arith.constant 9.99999974E-6 : f32
    %147 = vector.broadcast %cst_56 : f32 to vector<16x1xf32>
    %148 = arith.addf %144, %147 : vector<16x1xf32>
    %149 = math.rsqrt %148 : vector<16x1xf32>
    %150 = vector.broadcast %149 : vector<16x1xf32> to vector<16x30xf32>
    %151 = arith.mulf %146, %150 : vector<16x30xf32>
    %152 = vector.broadcast %86 : vector<1x30xf32> to vector<16x30xf32>
    %153 = arith.mulf %151, %152 : vector<16x30xf32>
    %154 = vector.broadcast %87 : vector<1x30xf32> to vector<16x30xf32>
    %155 = arith.addf %153, %154 : vector<16x30xf32>
    %c0_57 = arith.constant 0 : index
    %c0_58 = arith.constant 0 : index
    %156 = vector.load %arg14[%c0_57, %c0_58] : memref<30x192xf32, #tpu.memory_space<vmem>>, vector<30x192xf32>
    %cst_59 = arith.constant dense<0.000000e+00> : vector<16x192xf32>
    %157 = tpu.matmul %155, %156, %cst_59 {dimension_numbers = #tpu.dot_dimension_numbers<[1], [0], [0], [1], [0, 0, 1, 1], [], []>} : vector<16x30xf32>, vector<30x192xf32>, vector<16x192xf32> -> vector<16x192xf32>
    %c0_60 = arith.constant 0 : index
    %c0_61 = arith.constant 0 : index
    %158 = vector.load %arg16[%c0_60, %c0_61] : memref<1x192xf32, #tpu.memory_space<vmem>>, vector<1x192xf32>
    %159 = vector.broadcast %158 : vector<1x192xf32> to vector<16x192xf32>
    %160 = arith.addf %157, %159 : vector<16x192xf32>
    %161 = vector.shape_cast %160 : vector<16x192xf32> to vector<2x8x192xf32>
    %c0_62 = arith.constant 0 : index
    %c0_63 = arith.constant 0 : index
    %162 = vector.load %arg15[%c0_62, %c0_63] : memref<64x192xf32, #tpu.memory_space<vmem>>, vector<64x192xf32>
    %c0_64 = arith.constant 0 : index
    %c0_65 = arith.constant 0 : index
    %163 = vector.load %arg17[%c0_64, %c0_65] : memref<1x64xf32, #tpu.memory_space<vmem>>, vector<1x64xf32>
    %164 = vector.shape_cast %163 : vector<1x64xf32> to vector<1x64xf32>
    %165 = vector.broadcast %164 : vector<1x64xf32> to vector<2x64xf32>
    %cst_66 = arith.constant 0.000000e+00 : f32
    %166 = vector.broadcast %cst_66 : f32 to vector<2x64xf32>
    %cst_67 = arith.constant dense<0.000000e+00> : vector<2x192xf32>
    %167 = tpu.matmul %166, %162, %cst_67 {dimension_numbers = #tpu.dot_dimension_numbers<[1], [0], [0], [1], [0, 0, 1, 1], [], []>} : vector<2x64xf32>, vector<64x192xf32>, vector<2x192xf32> -> vector<2x192xf32>
    %168 = vector.extract_strided_slice %161 {offsets = [0, 0, 0], sizes = [2, 1, 192], strides = [1, 1, 1]} : vector<2x8x192xf32> to vector<2x1x192xf32>
    %169 = vector.shape_cast %168 : vector<2x1x192xf32> to vector<2x192xf32>
    %170 = vector.extract_strided_slice %169 {offsets = [0, 0], sizes = [2, 128], strides = [1, 1]} : vector<2x192xf32> to vector<2x128xf32>
    %171 = vector.extract_strided_slice %167 {offsets = [0, 0], sizes = [2, 128], strides = [1, 1]} : vector<2x192xf32> to vector<2x128xf32>
    %172 = arith.addf %170, %171 : vector<2x128xf32>
    %173 = arith.negf %172 : vector<2x128xf32>
    %174 = math.exp %173 : vector<2x128xf32>
    %cst_68 = arith.constant 1.000000e+00 : f32
    %175 = vector.broadcast %cst_68 : f32 to vector<2x128xf32>
    %176 = arith.addf %175, %174 : vector<2x128xf32>
    %177 = arith.divf %175, %176 : vector<2x128xf32>
    %178 = vector.extract_strided_slice %177 {offsets = [0, 0], sizes = [2, 64], strides = [1, 1]} : vector<2x128xf32> to vector<2x64xf32>
    %179 = vector.extract_strided_slice %177 {offsets = [0, 64], sizes = [2, 64], strides = [1, 1]} : vector<2x128xf32> to vector<2x64xf32>
    %180 = vector.extract_strided_slice %169 {offsets = [0, 128], sizes = [2, 64], strides = [1, 1]} : vector<2x192xf32> to vector<2x64xf32>
    %181 = vector.extract_strided_slice %167 {offsets = [0, 128], sizes = [2, 64], strides = [1, 1]} : vector<2x192xf32> to vector<2x64xf32>
    %182 = arith.addf %181, %165 : vector<2x64xf32>
    %183 = arith.mulf %178, %182 : vector<2x64xf32>
    %184 = arith.addf %180, %183 : vector<2x64xf32>
    %185 = math.tanh %184 : vector<2x64xf32>
    %186 = arith.subf %166, %185 : vector<2x64xf32>
    %187 = arith.mulf %179, %186 : vector<2x64xf32>
    %188 = arith.addf %185, %187 : vector<2x64xf32>
    %cst_69 = arith.constant dense<0.000000e+00> : vector<2x192xf32>
    %189 = tpu.matmul %188, %162, %cst_69 {dimension_numbers = #tpu.dot_dimension_numbers<[1], [0], [0], [1], [0, 0, 1, 1], [], []>} : vector<2x64xf32>, vector<64x192xf32>, vector<2x192xf32> -> vector<2x192xf32>
    %190 = vector.extract_strided_slice %161 {offsets = [0, 1, 0], sizes = [2, 1, 192], strides = [1, 1, 1]} : vector<2x8x192xf32> to vector<2x1x192xf32>
    %191 = vector.shape_cast %190 : vector<2x1x192xf32> to vector<2x192xf32>
    %192 = vector.extract_strided_slice %191 {offsets = [0, 0], sizes = [2, 128], strides = [1, 1]} : vector<2x192xf32> to vector<2x128xf32>
    %193 = vector.extract_strided_slice %189 {offsets = [0, 0], sizes = [2, 128], strides = [1, 1]} : vector<2x192xf32> to vector<2x128xf32>
    %194 = arith.addf %192, %193 : vector<2x128xf32>
    %195 = arith.negf %194 : vector<2x128xf32>
    %196 = math.exp %195 : vector<2x128xf32>
    %cst_70 = arith.constant 1.000000e+00 : f32
    %197 = vector.broadcast %cst_70 : f32 to vector<2x128xf32>
    %198 = arith.addf %197, %196 : vector<2x128xf32>
    %199 = arith.divf %197, %198 : vector<2x128xf32>
    %200 = vector.extract_strided_slice %199 {offsets = [0, 0], sizes = [2, 64], strides = [1, 1]} : vector<2x128xf32> to vector<2x64xf32>
    %201 = vector.extract_strided_slice %199 {offsets = [0, 64], sizes = [2, 64], strides = [1, 1]} : vector<2x128xf32> to vector<2x64xf32>
    %202 = vector.extract_strided_slice %191 {offsets = [0, 128], sizes = [2, 64], strides = [1, 1]} : vector<2x192xf32> to vector<2x64xf32>
    %203 = vector.extract_strided_slice %189 {offsets = [0, 128], sizes = [2, 64], strides = [1, 1]} : vector<2x192xf32> to vector<2x64xf32>
    %204 = arith.addf %203, %165 : vector<2x64xf32>
    %205 = arith.mulf %200, %204 : vector<2x64xf32>
    %206 = arith.addf %202, %205 : vector<2x64xf32>
    %207 = math.tanh %206 : vector<2x64xf32>
    %208 = arith.subf %188, %207 : vector<2x64xf32>
    %209 = arith.mulf %201, %208 : vector<2x64xf32>
    %210 = arith.addf %207, %209 : vector<2x64xf32>
    %cst_71 = arith.constant dense<0.000000e+00> : vector<2x192xf32>
    %211 = tpu.matmul %210, %162, %cst_71 {dimension_numbers = #tpu.dot_dimension_numbers<[1], [0], [0], [1], [0, 0, 1, 1], [], []>} : vector<2x64xf32>, vector<64x192xf32>, vector<2x192xf32> -> vector<2x192xf32>
    %212 = vector.extract_strided_slice %161 {offsets = [0, 2, 0], sizes = [2, 1, 192], strides = [1, 1, 1]} : vector<2x8x192xf32> to vector<2x1x192xf32>
    %213 = vector.shape_cast %212 : vector<2x1x192xf32> to vector<2x192xf32>
    %214 = vector.extract_strided_slice %213 {offsets = [0, 0], sizes = [2, 128], strides = [1, 1]} : vector<2x192xf32> to vector<2x128xf32>
    %215 = vector.extract_strided_slice %211 {offsets = [0, 0], sizes = [2, 128], strides = [1, 1]} : vector<2x192xf32> to vector<2x128xf32>
    %216 = arith.addf %214, %215 : vector<2x128xf32>
    %217 = arith.negf %216 : vector<2x128xf32>
    %218 = math.exp %217 : vector<2x128xf32>
    %cst_72 = arith.constant 1.000000e+00 : f32
    %219 = vector.broadcast %cst_72 : f32 to vector<2x128xf32>
    %220 = arith.addf %219, %218 : vector<2x128xf32>
    %221 = arith.divf %219, %220 : vector<2x128xf32>
    %222 = vector.extract_strided_slice %221 {offsets = [0, 0], sizes = [2, 64], strides = [1, 1]} : vector<2x128xf32> to vector<2x64xf32>
    %223 = vector.extract_strided_slice %221 {offsets = [0, 64], sizes = [2, 64], strides = [1, 1]} : vector<2x128xf32> to vector<2x64xf32>
    %224 = vector.extract_strided_slice %213 {offsets = [0, 128], sizes = [2, 64], strides = [1, 1]} : vector<2x192xf32> to vector<2x64xf32>
    %225 = vector.extract_strided_slice %211 {offsets = [0, 128], sizes = [2, 64], strides = [1, 1]} : vector<2x192xf32> to vector<2x64xf32>
    %226 = arith.addf %225, %165 : vector<2x64xf32>
    %227 = arith.mulf %222, %226 : vector<2x64xf32>
    %228 = arith.addf %224, %227 : vector<2x64xf32>
    %229 = math.tanh %228 : vector<2x64xf32>
    %230 = arith.subf %210, %229 : vector<2x64xf32>
    %231 = arith.mulf %223, %230 : vector<2x64xf32>
    %232 = arith.addf %229, %231 : vector<2x64xf32>
    %cst_73 = arith.constant dense<0.000000e+00> : vector<2x192xf32>
    %233 = tpu.matmul %232, %162, %cst_73 {dimension_numbers = #tpu.dot_dimension_numbers<[1], [0], [0], [1], [0, 0, 1, 1], [], []>} : vector<2x64xf32>, vector<64x192xf32>, vector<2x192xf32> -> vector<2x192xf32>
    %234 = vector.extract_strided_slice %161 {offsets = [0, 3, 0], sizes = [2, 1, 192], strides = [1, 1, 1]} : vector<2x8x192xf32> to vector<2x1x192xf32>
    %235 = vector.shape_cast %234 : vector<2x1x192xf32> to vector<2x192xf32>
    %236 = vector.extract_strided_slice %235 {offsets = [0, 0], sizes = [2, 128], strides = [1, 1]} : vector<2x192xf32> to vector<2x128xf32>
    %237 = vector.extract_strided_slice %233 {offsets = [0, 0], sizes = [2, 128], strides = [1, 1]} : vector<2x192xf32> to vector<2x128xf32>
    %238 = arith.addf %236, %237 : vector<2x128xf32>
    %239 = arith.negf %238 : vector<2x128xf32>
    %240 = math.exp %239 : vector<2x128xf32>
    %cst_74 = arith.constant 1.000000e+00 : f32
    %241 = vector.broadcast %cst_74 : f32 to vector<2x128xf32>
    %242 = arith.addf %241, %240 : vector<2x128xf32>
    %243 = arith.divf %241, %242 : vector<2x128xf32>
    %244 = vector.extract_strided_slice %243 {offsets = [0, 0], sizes = [2, 64], strides = [1, 1]} : vector<2x128xf32> to vector<2x64xf32>
    %245 = vector.extract_strided_slice %243 {offsets = [0, 64], sizes = [2, 64], strides = [1, 1]} : vector<2x128xf32> to vector<2x64xf32>
    %246 = vector.extract_strided_slice %235 {offsets = [0, 128], sizes = [2, 64], strides = [1, 1]} : vector<2x192xf32> to vector<2x64xf32>
    %247 = vector.extract_strided_slice %233 {offsets = [0, 128], sizes = [2, 64], strides = [1, 1]} : vector<2x192xf32> to vector<2x64xf32>
    %248 = arith.addf %247, %165 : vector<2x64xf32>
    %249 = arith.mulf %244, %248 : vector<2x64xf32>
    %250 = arith.addf %246, %249 : vector<2x64xf32>
    %251 = math.tanh %250 : vector<2x64xf32>
    %252 = arith.subf %232, %251 : vector<2x64xf32>
    %253 = arith.mulf %245, %252 : vector<2x64xf32>
    %254 = arith.addf %251, %253 : vector<2x64xf32>
    %cst_75 = arith.constant dense<0.000000e+00> : vector<2x192xf32>
    %255 = tpu.matmul %254, %162, %cst_75 {dimension_numbers = #tpu.dot_dimension_numbers<[1], [0], [0], [1], [0, 0, 1, 1], [], []>} : vector<2x64xf32>, vector<64x192xf32>, vector<2x192xf32> -> vector<2x192xf32>
    %256 = vector.extract_strided_slice %161 {offsets = [0, 4, 0], sizes = [2, 1, 192], strides = [1, 1, 1]} : vector<2x8x192xf32> to vector<2x1x192xf32>
    %257 = vector.shape_cast %256 : vector<2x1x192xf32> to vector<2x192xf32>
    %258 = vector.extract_strided_slice %257 {offsets = [0, 0], sizes = [2, 128], strides = [1, 1]} : vector<2x192xf32> to vector<2x128xf32>
    %259 = vector.extract_strided_slice %255 {offsets = [0, 0], sizes = [2, 128], strides = [1, 1]} : vector<2x192xf32> to vector<2x128xf32>
    %260 = arith.addf %258, %259 : vector<2x128xf32>
    %261 = arith.negf %260 : vector<2x128xf32>
    %262 = math.exp %261 : vector<2x128xf32>
    %cst_76 = arith.constant 1.000000e+00 : f32
    %263 = vector.broadcast %cst_76 : f32 to vector<2x128xf32>
    %264 = arith.addf %263, %262 : vector<2x128xf32>
    %265 = arith.divf %263, %264 : vector<2x128xf32>
    %266 = vector.extract_strided_slice %265 {offsets = [0, 0], sizes = [2, 64], strides = [1, 1]} : vector<2x128xf32> to vector<2x64xf32>
    %267 = vector.extract_strided_slice %265 {offsets = [0, 64], sizes = [2, 64], strides = [1, 1]} : vector<2x128xf32> to vector<2x64xf32>
    %268 = vector.extract_strided_slice %257 {offsets = [0, 128], sizes = [2, 64], strides = [1, 1]} : vector<2x192xf32> to vector<2x64xf32>
    %269 = vector.extract_strided_slice %255 {offsets = [0, 128], sizes = [2, 64], strides = [1, 1]} : vector<2x192xf32> to vector<2x64xf32>
    %270 = arith.addf %269, %165 : vector<2x64xf32>
    %271 = arith.mulf %266, %270 : vector<2x64xf32>
    %272 = arith.addf %268, %271 : vector<2x64xf32>
    %273 = math.tanh %272 : vector<2x64xf32>
    %274 = arith.subf %254, %273 : vector<2x64xf32>
    %275 = arith.mulf %267, %274 : vector<2x64xf32>
    %276 = arith.addf %273, %275 : vector<2x64xf32>
    %cst_77 = arith.constant dense<0.000000e+00> : vector<2x192xf32>
    %277 = tpu.matmul %276, %162, %cst_77 {dimension_numbers = #tpu.dot_dimension_numbers<[1], [0], [0], [1], [0, 0, 1, 1], [], []>} : vector<2x64xf32>, vector<64x192xf32>, vector<2x192xf32> -> vector<2x192xf32>
    %278 = vector.extract_strided_slice %161 {offsets = [0, 5, 0], sizes = [2, 1, 192], strides = [1, 1, 1]} : vector<2x8x192xf32> to vector<2x1x192xf32>
    %279 = vector.shape_cast %278 : vector<2x1x192xf32> to vector<2x192xf32>
    %280 = vector.extract_strided_slice %279 {offsets = [0, 0], sizes = [2, 128], strides = [1, 1]} : vector<2x192xf32> to vector<2x128xf32>
    %281 = vector.extract_strided_slice %277 {offsets = [0, 0], sizes = [2, 128], strides = [1, 1]} : vector<2x192xf32> to vector<2x128xf32>
    %282 = arith.addf %280, %281 : vector<2x128xf32>
    %283 = arith.negf %282 : vector<2x128xf32>
    %284 = math.exp %283 : vector<2x128xf32>
    %cst_78 = arith.constant 1.000000e+00 : f32
    %285 = vector.broadcast %cst_78 : f32 to vector<2x128xf32>
    %286 = arith.addf %285, %284 : vector<2x128xf32>
    %287 = arith.divf %285, %286 : vector<2x128xf32>
    %288 = vector.extract_strided_slice %287 {offsets = [0, 0], sizes = [2, 64], strides = [1, 1]} : vector<2x128xf32> to vector<2x64xf32>
    %289 = vector.extract_strided_slice %287 {offsets = [0, 64], sizes = [2, 64], strides = [1, 1]} : vector<2x128xf32> to vector<2x64xf32>
    %290 = vector.extract_strided_slice %279 {offsets = [0, 128], sizes = [2, 64], strides = [1, 1]} : vector<2x192xf32> to vector<2x64xf32>
    %291 = vector.extract_strided_slice %277 {offsets = [0, 128], sizes = [2, 64], strides = [1, 1]} : vector<2x192xf32> to vector<2x64xf32>
    %292 = arith.addf %291, %165 : vector<2x64xf32>
    %293 = arith.mulf %288, %292 : vector<2x64xf32>
    %294 = arith.addf %290, %293 : vector<2x64xf32>
    %295 = math.tanh %294 : vector<2x64xf32>
    %296 = arith.subf %276, %295 : vector<2x64xf32>
    %297 = arith.mulf %289, %296 : vector<2x64xf32>
    %298 = arith.addf %295, %297 : vector<2x64xf32>
    %cst_79 = arith.constant dense<0.000000e+00> : vector<2x192xf32>
    %299 = tpu.matmul %298, %162, %cst_79 {dimension_numbers = #tpu.dot_dimension_numbers<[1], [0], [0], [1], [0, 0, 1, 1], [], []>} : vector<2x64xf32>, vector<64x192xf32>, vector<2x192xf32> -> vector<2x192xf32>
    %300 = vector.extract_strided_slice %161 {offsets = [0, 6, 0], sizes = [2, 1, 192], strides = [1, 1, 1]} : vector<2x8x192xf32> to vector<2x1x192xf32>
    %301 = vector.shape_cast %300 : vector<2x1x192xf32> to vector<2x192xf32>
    %302 = vector.extract_strided_slice %301 {offsets = [0, 0], sizes = [2, 128], strides = [1, 1]} : vector<2x192xf32> to vector<2x128xf32>
    %303 = vector.extract_strided_slice %299 {offsets = [0, 0], sizes = [2, 128], strides = [1, 1]} : vector<2x192xf32> to vector<2x128xf32>
    %304 = arith.addf %302, %303 : vector<2x128xf32>
    %305 = arith.negf %304 : vector<2x128xf32>
    %306 = math.exp %305 : vector<2x128xf32>
    %cst_80 = arith.constant 1.000000e+00 : f32
    %307 = vector.broadcast %cst_80 : f32 to vector<2x128xf32>
    %308 = arith.addf %307, %306 : vector<2x128xf32>
    %309 = arith.divf %307, %308 : vector<2x128xf32>
    %310 = vector.extract_strided_slice %309 {offsets = [0, 0], sizes = [2, 64], strides = [1, 1]} : vector<2x128xf32> to vector<2x64xf32>
    %311 = vector.extract_strided_slice %309 {offsets = [0, 64], sizes = [2, 64], strides = [1, 1]} : vector<2x128xf32> to vector<2x64xf32>
    %312 = vector.extract_strided_slice %301 {offsets = [0, 128], sizes = [2, 64], strides = [1, 1]} : vector<2x192xf32> to vector<2x64xf32>
    %313 = vector.extract_strided_slice %299 {offsets = [0, 128], sizes = [2, 64], strides = [1, 1]} : vector<2x192xf32> to vector<2x64xf32>
    %314 = arith.addf %313, %165 : vector<2x64xf32>
    %315 = arith.mulf %310, %314 : vector<2x64xf32>
    %316 = arith.addf %312, %315 : vector<2x64xf32>
    %317 = math.tanh %316 : vector<2x64xf32>
    %318 = arith.subf %298, %317 : vector<2x64xf32>
    %319 = arith.mulf %311, %318 : vector<2x64xf32>
    %320 = arith.addf %317, %319 : vector<2x64xf32>
    %cst_81 = arith.constant dense<0.000000e+00> : vector<2x192xf32>
    %321 = tpu.matmul %320, %162, %cst_81 {dimension_numbers = #tpu.dot_dimension_numbers<[1], [0], [0], [1], [0, 0, 1, 1], [], []>} : vector<2x64xf32>, vector<64x192xf32>, vector<2x192xf32> -> vector<2x192xf32>
    %322 = vector.extract_strided_slice %161 {offsets = [0, 7, 0], sizes = [2, 1, 192], strides = [1, 1, 1]} : vector<2x8x192xf32> to vector<2x1x192xf32>
    %323 = vector.shape_cast %322 : vector<2x1x192xf32> to vector<2x192xf32>
    %324 = vector.extract_strided_slice %323 {offsets = [0, 0], sizes = [2, 128], strides = [1, 1]} : vector<2x192xf32> to vector<2x128xf32>
    %325 = vector.extract_strided_slice %321 {offsets = [0, 0], sizes = [2, 128], strides = [1, 1]} : vector<2x192xf32> to vector<2x128xf32>
    %326 = arith.addf %324, %325 : vector<2x128xf32>
    %327 = arith.negf %326 : vector<2x128xf32>
    %328 = math.exp %327 : vector<2x128xf32>
    %cst_82 = arith.constant 1.000000e+00 : f32
    %329 = vector.broadcast %cst_82 : f32 to vector<2x128xf32>
    %330 = arith.addf %329, %328 : vector<2x128xf32>
    %331 = arith.divf %329, %330 : vector<2x128xf32>
    %332 = vector.extract_strided_slice %331 {offsets = [0, 0], sizes = [2, 64], strides = [1, 1]} : vector<2x128xf32> to vector<2x64xf32>
    %333 = vector.extract_strided_slice %331 {offsets = [0, 64], sizes = [2, 64], strides = [1, 1]} : vector<2x128xf32> to vector<2x64xf32>
    %334 = vector.extract_strided_slice %323 {offsets = [0, 128], sizes = [2, 64], strides = [1, 1]} : vector<2x192xf32> to vector<2x64xf32>
    %335 = vector.extract_strided_slice %321 {offsets = [0, 128], sizes = [2, 64], strides = [1, 1]} : vector<2x192xf32> to vector<2x64xf32>
    %336 = arith.addf %335, %165 : vector<2x64xf32>
    %337 = arith.mulf %332, %336 : vector<2x64xf32>
    %338 = arith.addf %334, %337 : vector<2x64xf32>
    %339 = math.tanh %338 : vector<2x64xf32>
    %340 = arith.subf %320, %339 : vector<2x64xf32>
    %341 = arith.mulf %333, %340 : vector<2x64xf32>
    %342 = arith.addf %339, %341 : vector<2x64xf32>
    %c0_83 = arith.constant 0 : index
    %c0_84 = arith.constant 0 : index
    %343 = vector.load %arg27[%c0_83, %c0_84] : memref<2x64xf32, #tpu.memory_space<vmem>>, vector<2x64xf32>
    tpu.vector_store %arg27[%c0_83, %c0_84], %342 {strides = array<i32>} : memref<2x64xf32, #tpu.memory_space<vmem>>, vector<2x64xf32>,
    %c0_85 = arith.constant 0 : index
    %c0_86 = arith.constant 0 : index
    %344 = vector.load %arg18[%c0_85, %c0_86] : memref<64x128xf32, #tpu.memory_space<vmem>>, vector<64x128xf32>
    %cst_87 = arith.constant dense<0.000000e+00> : vector<2x128xf32>
    %345 = tpu.matmul %342, %344, %cst_87 {dimension_numbers = #tpu.dot_dimension_numbers<[1], [0], [0], [1], [0, 0, 1, 1], [], []>} : vector<2x64xf32>, vector<64x128xf32>, vector<2x128xf32> -> vector<2x128xf32>
    %c0_88 = arith.constant 0 : index
    %c0_89 = arith.constant 0 : index
    %346 = vector.load %arg19[%c0_88, %c0_89] : memref<1x128xf32, #tpu.memory_space<vmem>>, vector<1x128xf32>
    %347 = vector.broadcast %346 : vector<1x128xf32> to vector<2x128xf32>
    %348 = arith.addf %345, %347 : vector<2x128xf32>
    %cst_90 = arith.constant 0.000000e+00 : f32
    %349 = vector.broadcast %cst_90 : f32 to vector<2x128xf32>
    %350 = arith.maximumf %348, %349 : vector<2x128xf32>
    %c0_91 = arith.constant 0 : index
    %c0_92 = arith.constant 0 : index
    %351 = vector.load %arg20[%c0_91, %c0_92] : memref<128x128xf32, #tpu.memory_space<vmem>>, vector<128x128xf32>
    %cst_93 = arith.constant dense<0.000000e+00> : vector<2x128xf32>
    %352 = tpu.matmul %350, %351, %cst_93 {dimension_numbers = #tpu.dot_dimension_numbers<[1], [0], [0], [1], [0, 0, 1, 1], [], []>} : vector<2x128xf32>, vector<128x128xf32>, vector<2x128xf32> -> vector<2x128xf32>
    %c0_94 = arith.constant 0 : index
    %c0_95 = arith.constant 0 : index
    %353 = vector.load %arg21[%c0_94, %c0_95] : memref<1x128xf32, #tpu.memory_space<vmem>>, vector<1x128xf32>
    %354 = vector.broadcast %353 : vector<1x128xf32> to vector<2x128xf32>
    %355 = arith.addf %352, %354 : vector<2x128xf32>
    %cst_96 = arith.constant 0.000000e+00 : f32
    %356 = vector.broadcast %cst_96 : f32 to vector<2x128xf32>
    %357 = arith.maximumf %355, %356 : vector<2x128xf32>
    %c0_97 = arith.constant 0 : index
    %c0_98 = arith.constant 0 : index
    %358 = vector.load %arg22[%c0_97, %c0_98] : memref<128x128xf32, #tpu.memory_space<vmem>>, vector<128x128xf32>
    %cst_99 = arith.constant dense<0.000000e+00> : vector<2x128xf32>
    %359 = tpu.matmul %357, %358, %cst_99 {dimension_numbers = #tpu.dot_dimension_numbers<[1], [0], [0], [1], [0, 0, 1, 1], [], []>} : vector<2x128xf32>, vector<128x128xf32>, vector<2x128xf32> -> vector<2x128xf32>
    %c0_100 = arith.constant 0 : index
    %c0_101 = arith.constant 0 : index
    %360 = vector.load %arg23[%c0_100, %c0_101] : memref<1x128xf32, #tpu.memory_space<vmem>>, vector<1x128xf32>
    %361 = vector.broadcast %360 : vector<1x128xf32> to vector<2x128xf32>
    %362 = arith.addf %359, %361 : vector<2x128xf32>
    %cst_102 = arith.constant 0.000000e+00 : f32
    %363 = vector.broadcast %cst_102 : f32 to vector<2x128xf32>
    %364 = arith.maximumf %362, %363 : vector<2x128xf32>
    %c0_103 = arith.constant 0 : index
    %c0_104 = arith.constant 0 : index
    %365 = vector.load %arg24[%c0_103, %c0_104] : memref<128x50xf32, #tpu.memory_space<vmem>>, vector<128x50xf32>
    %cst_105 = arith.constant dense<0.000000e+00> : vector<2x50xf32>
    %366 = tpu.matmul %364, %365, %cst_105 {dimension_numbers = #tpu.dot_dimension_numbers<[1], [0], [0], [1], [0, 0, 1, 1], [], []>} : vector<2x128xf32>, vector<128x50xf32>, vector<2x50xf32> -> vector<2x50xf32>
    %c0_106 = arith.constant 0 : index
    %c0_107 = arith.constant 0 : index
    %367 = vector.load %arg25[%c0_106, %c0_107] : memref<1x50xf32, #tpu.memory_space<vmem>>, vector<1x50xf32>
    %368 = vector.broadcast %367 : vector<1x50xf32> to vector<2x50xf32>
    %369 = arith.addf %366, %368 : vector<2x50xf32>
    %c0_108 = arith.constant 0 : index
    %c0_109 = arith.constant 0 : index
    %370 = vector.load %arg26[%c0_108, %c0_109] : memref<2x50xf32, #tpu.memory_space<vmem>>, vector<2x50xf32>
    tpu.vector_store %arg26[%c0_108, %c0_109], %369 {strides = array<i32>} : memref<2x50xf32, #tpu.memory_space<vmem>>, vector<2x50xf32>,
    return
  }
}

</mosaic_0001>

<bundles_post_ra>
// kernel: language_model_forward.1
= control target key start
LH: loop header
LB: loop body
LE: loop exit
PB: predicated region body
PF: predicated region fallthrough
CT: control target
= control target key end

     0   :  { %s3759_s0 = inlined_call_operand.vmem [shape: s32[16,1], index: 0, kind: input, shape index: {}]   ;;  %s3760_s1 = inlined_call_operand.vmem [shape: f32[50,30], index: 1, kind: input, shape index: {}]   ;;  %s3761_s2 = inlined_call_operand.vmem [shape: f32[30,90], index: 2, kind: input, shape index: {}]   ;;  %s3762_s3 = inlined_call_operand.vmem [shape: f32[1,90], index: 3, kind: input, shape index: {}]   ;;  %s3763_s4 = inlined_call_operand.hbm [shape: f32[30,30], index: 4, kind: input, shape index: {}]   ;;  %s3764_s5 = inlined_call_operand.vmem [shape: f32[1,30], index: 5, kind: input, shape index: {}]   ;;  %s3765_s6 = inlined_call_operand.vmem [shape: f32[1,30], index: 6, kind: input, shape index: {}]   ;;  %s3766_s7 = inlined_call_operand.vmem [shape: f32[1,30], index: 7, kind: input, shape index: {}]   ;;  %s3767_s8 = inlined_call_operand.hbm [shape: f32[30,90], index: 8, kind: input, shape index: {}]   ;;  %s3768_s9 = inlined_call_operand.vmem [shape: f32[1,90], index: 9, kind: input, shape index: {}]   ;;  %s3769_s10 = inlined_call_operand.hbm [shape: f32[30,30], index: 10, kind: input, shape index: {}]   ;;  %s3770_s11 = inlined_call_operand.vmem [shape: f32[1,30], index: 11, kind: input, shape index: {}]   ;;  %s3771_s12 = inlined_call_operand.vmem [shape: f32[1,30], index: 12, kind: input, shape index: {}]   ;;  %s3772_s13 = inlined_call_operand.vmem [shape: f32[1,30], index: 13, kind: input, shape index: {}]   ;;  %s3773_s14 = inlined_call_operand.vmem [shape: f32[30,192], index: 14, kind: input, shape index: {}]   ;;  %s3774_s15 = inlined_call_operand.vmem [shape: f32[64,192], index: 15, kind: input, shape index: {}]   ;;  %s3775_s16 = inlined_call_operand.vmem [shape: f32[1,192], index: 16, kind: input, shape index: {}]   ;;  %s3776_s17 = inlined_call_operand.vmem [shape: f32[1,64], index: 17, kind: input, shape index: {}]   ;;  %s3777_s18 = inlined_call_operand.hbm [shape: f32[64,128], index: 18, kind: input, shape index: {}]   ;;  %s3778_s19 = inlined_call_operand.vmem [shape: f32[1,128], index: 19, kind: input, shape index: {}]   ;;  %s3779_s20 = inlined_call_operand.hbm [shape: f32[128,128], index: 20, kind: input, shape index: {}]   ;;  %s3780_s21 = inlined_call_operand.vmem [shape: f32[1,128], index: 21, kind: input, shape index: {}]   ;;  %s3781_s22 = inlined_call_operand.hbm [shape: f32[128,128], index: 22, kind: input, shape index: {}]   ;;  %s3782_s23 = inlined_call_operand.vmem [shape: f32[1,128], index: 23, kind: input, shape index: {}]   ;;  %s3783_s24 = inlined_call_operand.vmem [shape: f32[128,50], index: 24, kind: input, shape index: {}]   ;;  %s3784_s25 = inlined_call_operand.vmem [shape: f32[1,50], index: 25, kind: input, shape index: {}]   ;;  %s3785_s26 = inlined_call_operand.hbm [shape: f32[2,50], index: 26, kind: output, shape index: {0}]   ;;  %s3786_s27 = inlined_call_operand.hbm [shape: f32[2,64], index: 27, kind: output, shape index: {1}]  }
   0x1   :  { %3790 = sst [smem:[#allocation22_spill]] %s3759_s0 }
   0x2   :  { %3791 = sst [smem:[#allocation23_spill]] %s3760_s1 }
   0x3   :  { %3792 = sst [smem:[#allocation24_spill]] %s3761_s2 }
   0x4   :  { %3793 = sst [smem:[#allocation25_spill]] %s3762_s3 }
   0x5   :  { %3794 = sst [smem:[#allocation26_spill]] %s3763_s4 }
   0x6   :  { %3795 = sst [smem:[#allocation27_spill]] %s3764_s5 }
   0x7   :  { %3796 = sst [smem:[#allocation28_spill]] %s3765_s6 }
   0x8   :  { %3797 = sst [smem:[#allocation29_spill]] %s3766_s7 }
   0x9   :  { %3798 = sst [smem:[#allocation30_spill]] %s3767_s8 }
   0xa   :  { %3799 = sst [smem:[#allocation31_spill]] %s3768_s9 }
   0xb   :  { %3800 = sst [smem:[#allocation32_spill]] %s3769_s10 }
   0xc   :  { %3801 = sst [smem:[#allocation33_spill]] %s3770_s11 }
   0xd   :  { %3802 = sst [smem:[#allocation34_spill]] %s3785_s26 }
   0xe   :  { %33 = vsyncpa [#allocation3], 0 }
   0xf   :  { %34 = vsyncpa [#allocation6], 0 }
  0x10   :  { %35 = vsyncpa [#allocation9], 0 }
  0x11   :  { %36 = vsyncpa [#allocation12], 0 }
  0x12   :  { %37 = vsyncpa [#allocation4], 0 }
  0x13   :  { %38 = vsyncpa [#allocation15], 0  ;;  %s3803_s8 = sld [smem:[#allocation30_spill]]  ;;  %s2895_s9 = smov [#allocation5]  }
  0x14   :  { %s72_s5 = sshll.u32 %s2895_s9, 4  ;;  %s112_s10 = sshll.u32 %s3777_s18, 4  ;;  %s73_s5 = int_to_ptr.vmem [resolvable:$true] %s72_s5  ;;  %s113_s10 = int_to_ptr.hbm [resolvable:$true] %s112_s10 }
  0x15   :  { %s2896_s29 = smov 128   ;;  %s2897_s1 = smov 8  }
  0x16   :  { %s2898_s6 = smov [#allocation8]   ;;  %s3804_s7 = sld [smem:[#allocation26_spill]] }
  0x17   :  { %s114_s11 = sshll.u32 %s2898_s6, 4  ;;  %s3805_s9 = sld [smem:[#allocation32_spill]]  ;;  %s115_s11 = int_to_ptr.vmem [resolvable:$true] %s114_s11 }
  0x18   :  { %120 = dma.hbm_to_vmem [thread:$0]  %s113_s10, 1024, %s115_s11, [#allocation9], %s2896_s29, %s2896_s29, %s2897_s1  }
  0x19   :  { %s70_s30 = sshll.u32 %s3803_s8, 4  ;;  %s2899_s0 = smov [#allocation2]   ;;  %s71_s30 = int_to_ptr.hbm [resolvable:$true] %s70_s30 }
  0x1a   :  { %78 = dma.hbm_to_vmem [thread:$0]  %s71_s30, 512, %s73_s5, [#allocation6], %s2896_s29, %s2896_s29, %s2897_s1  }
  0x1b   :  { %s53_s26 = sshll.u32 %s2899_s0, 4  ;;  %s2900_s30 = smov [#allocation7]   ;;  %s54_s26 = int_to_ptr.vmem [resolvable:$true] %s53_s26 }
  0x1c   :  { %s51_s4 = sshll.u32 %s3804_s7, 4  ;;  %s87_s5 = sshll.u32 %s2900_s30, 4  ;;  %s52_s4 = int_to_ptr.hbm [resolvable:$true] %s51_s4  ;;  %s88_s5 = int_to_ptr.vmem [resolvable:$true] %s87_s5 }
  0x1d   :  { %s85_s28 = sshll.u32 %s3805_s9, 4  ;;  %s127_s3 = sshll.u32 %s3779_s20, 4  ;;  %s86_s28 = int_to_ptr.hbm [resolvable:$true] %s85_s28  ;;  %s128_s3 = int_to_ptr.hbm [resolvable:$true] %s127_s3 }
  0x1e   :  { %59 = dma.hbm_to_vmem [thread:$0]  %s52_s4, 512, %s54_s26, [#allocation3], %s2896_s29, %s2896_s29, %s2897_s1  }
  0x1f   :  { %93 = dma.hbm_to_vmem [thread:$0]  %s86_s28, 512, %s88_s5, [#allocation6], %s2896_s29, %s2896_s29, %s2897_s1  }
  0x20   :  { %s142_s7 = sshll.u32 %s3781_s22, 4  ;;  %s2901_s18 = smov [#allocation10]   ;;  %s143_s7 = int_to_ptr.hbm [resolvable:$true] %s142_s7 }
  0x21   :  { %s129_s8 = sshll.u32 %s2901_s18, 4  ;;  %s2902_s26 = smov [#allocation11]   ;;  %s130_s8 = int_to_ptr.vmem [resolvable:$true] %s129_s8 }
  0x22   :  { %135 = dma.hbm_to_vmem [thread:$0]  %s128_s3, 2048, %s130_s8, [#allocation9], %s2896_s29, %s2896_s29, %s2897_s1  }
  0x23   :  { %s144_s20 = sshll.u32 %s2902_s26, 4  ;;  %s145_s20 = int_to_ptr.vmem [resolvable:$true] %s144_s20 }
  0x24   :  { %150 = dma.hbm_to_vmem [thread:$0]  %s143_s7, 2048, %s145_s20, [#allocation12], %s2896_s29, %s2896_s29, %s2897_s1  }
  0x25   :  { %2883 = dma.done.wait [#allocation3], 512  }
  0x26   :  { %2884 = vsyncadd [#allocation3], 4294966784 }
  0x27   :  { %2885 = dma.done.wait [#allocation6], 1024  }
  0x28   :  { %2886 = vsyncadd [#allocation6], 4294966272 }
  0x29   :  { %2887 = dma.done.wait [#allocation9], 3072  }
  0x2a   :  { %2888 = vsyncadd [#allocation9], 4294964224 }
  0x2b   :  { %2889 = dma.done.wait [#allocation12], 2048  }
  0x2c   :  { %2890 = vsyncadd [#allocation12], 4294965248  ;;  %v2903_v0 = vmov 0   ;;  %vm211_vm0 = vcmask 1041408   ;;  %s3806_s9 = sld [smem:[#allocation22_spill]]  ;;  %vm260_vm1 = vcmask 1045504   ;;  %v183_v13 = vlaneseq }
  0x2d   :  { %2518 = vset.pattern.permute.xlu0 %v2903_v0  ;;  %s3807_s30 = sld [smem:[#allocation23_spill]]  ;;  %vm204_vm2 = vcmask 408576   ;;  %v2904_v16 = vmov 0.0   ;;  %vm253_vm5 = vcmask 244736   ;;  %s2905_s11 = smov 98   ;;  %vm290_vm6 = vcmask 121856  }
  0x2e   :  { %s3808_s28 = sld [smem:[#allocation24_spill]]  ;;  %v184_v14 = vand.u32 127, %v183_v13  ;;  %vm342_vm7 = vcmask 64512   ;;  %s2906_s7 = smov 68  }
  0x2f   :  { %s3809_s10 = sld [smem:[#allocation25_spill]]  ;;  %s2907_s18 = smov 83  }
  0x30   :  { %s2908_s8 = smov 113   ;;  %s2909_s26 = smov 53  }
  0x31   :  { %s2910_s20 = smov 15   ;;  %s3811_s29 = sld [smem:[#allocation28_spill]] }
  0x32   :  { %v181_v1 = vld [vmem:[%s3806_s9] sm:$0xff]  ;;  %v182_v6 = vld [vmem:[%s3806_s9 + $0x8] sm:$0xff]  ;;  %s3810_s9 = sld [smem:[#allocation27_spill]]  ;;  %s2913_s4 = smov [#allocation14]  }
  0x33   :  { %v203_v2 = vld [vmem:[%s3807_s30 + $0x30] sm:$0x3]  ;;  %186 = vperm.xlu0 %2518, %v181_v1   ;;  %v202_v3 = vld [vmem:[%s3807_s30 + $0x28] sm:$0xff]  ;;  %v201_v4 = vld [vmem:[%s3807_s30 + $0x20] sm:$0xff]  ;;  %s3813_s3 = sld [smem:[#allocation31_spill]] }
  0x34   :  { %2418 = vmatpush.msk.msra.mxu0 %vm211_vm0, %v203_v2  ;;  %v200_v5 = vld [vmem:[%s3807_s30 + $0x18] sm:$0xff]  ;;  %v199_v7 = vld [vmem:[%s3807_s30 + $0x10] sm:$0xff]  ;;  %v198_v8 = vld [vmem:[%s3807_s30 + $0x8] sm:$0xff] }
  0x35   :  { %v197_v9 = vld [vmem:[%s3807_s30] sm:$0xff]  ;;  %v241_v10 = vld [vmem:[%s3808_s28 + $0x18] sm:$0x3f]  ;;  %v240_v11 = vld [vmem:[%s3808_s28 + $0x10] sm:$0xff]  ;;  %s3812_s30 = sld [smem:[#allocation29_spill]] }
  0x36   :  { %225 = vmatpush.msra.mxu0 %v202_v3  ;;  %2421 = vmatpush.msk.msra.mxu1 %vm260_vm1, %v241_v10  ;;  %v239_v12 = vld [vmem:[%s3808_s28 + $0x8] sm:$0xff]  ;;  %v238_v20 = vld [vmem:[%s3808_s28] sm:$0xff] }
  0x37   :  { %2494 = vmatpush.msk.msra.mxu2 %vm260_vm1, %v241_v10  ;;  %v2539_v23 = vld [vmem:[%s3809_s10] ss:$0 sm:$0xff] }
  0x38   :  { %226 = vmatpush.msra.mxu0 %v201_v4  ;;  %277 = vmatpush.msra.mxu1 %v240_v11 }
  0x39   :  { %2495 = vmatpush.msra.mxu2 %v240_v11 }
  0x3a   :  { %227 = vmatpush.msra.mxu0 %v200_v5  ;;  %278 = vmatpush.msra.mxu1 %v239_v12 }
  0x3b   :  { %189 = vperm.xlu0 %2518, %v182_v6   ;;  %2496 = vmatpush.msra.mxu2 %v239_v12 }
  0x3c   :  { %228 = vmatpush.msra.mxu0 %v199_v7  ;;  %279 = vmatpush.msra.mxu1 %v238_v20 }
  0x3d   :  { %2497 = vmatpush.msra.mxu2 %v238_v20  ;;  %v246_v20 = vld [vmem:[#allocation2 + $0x18] sm:$0x3f] }
  0x3e   :  { %229 = vmatpush.msra.mxu0 %v198_v8 }
  0x40   :  { %230 = vmatpush.msra.mxu0 %v197_v9 }
  0xa5   :  { %v187_v15 = vpop.permute.xlu0 %186 }
  0xa6   :  { %vm191_vm3 = vcmp.eq.s32.totalorder %v187_v15, %v184_v14 }
  0xa7   :  { %v2416_v17 = vsel %vm191_vm3, 1.0, %v2904_v16 }
  0xa8   :  { %2419 = vmatmul.msk.f32.vlgmr.msra.gmra.mxu0 %vm204_vm2, %v2416_v17 }
  0xad   :  { %v190_v18 = vpop.permute.xlu0 %189 }
  0xae   :  { %vm192_vm4 = vcmp.eq.s32.totalorder %v190_v18, %v184_v14 }
  0xaf   :  { %v2417_v19 = vsel %vm192_vm4, 1.0, %v2904_v16 }
  0xb0   :  { %2420 = vmatmul.msk.f32.gmra.mxu0 %vm204_vm2, %v2417_v19 }
 0x125   :  { %v3134_v21 = vpop.f32.mrf.mxu0 }
 0x126   :  { %2422 = vmatmul.msk.f32.vlgmr.msra.gmra.mxu1 %vm253_vm5, %v3134_v21 }
 0x12d   :  { %v3138_v22 = vpop.f32.mrf.mxu0 }
 0x12e   :  { %2423 = vmatmul.msk.f32.vlgmr.msra.gmra.mxu2 %vm253_vm5, %v3138_v22 }
 0x1a3   :  { %v281_v24 = vpop.f32.mrf.mxu1 }
 0x1a4   :  { %v282_v25 = vadd.f32 %v2539_v23, %v281_v24  ;;  %v244_v24 = vld [vmem:[#allocation2 + $0x8] sm:$0xff] }
 0x1a6   :  { %288 = vrot.lane.b32.xlu1 %v282_v25, %s2905_s11 }
 0x1b1   :  { %v284_v26 = vpop.f32.mrf.mxu2 }
 0x1b2   :  { %v285_v27 = vadd.f32 %v2539_v23, %v284_v26  ;;  %v245_v23 = vld [vmem:[#allocation2 + $0x10] sm:$0xff] }
 0x1b4   :  { %316 = vrot.lane.b32.xlu1 %v285_v27, %s2905_s11  ;;  %v2519_v34 = vpack.i.bf16 %v285_v27, %v282_v25 }
 0x218   :  { %v289_v28 = vpop.permute.xlu1 %288 }
 0x219   :  { %2424 = vmatpush.xpose.msk.msrb.mxu2 %vm290_vm6, %v289_v28 }
 0x21c   :  { %2425 = vmatmul.msk.f32.vlgmr.msrb.gmra.mxu2 %vm290_vm6, %v282_v25 }
 0x226   :  { %v317_v29 = vpop.permute.xlu1 %316 }
 0x227   :  { %2426 = vmatpush.xpose.msk.msra.mxu3 %vm290_vm6, %v317_v29 }
 0x22a   :  { %2427 = vmatmul.msk.f32.vlgmr.msra.gmra.mxu3 %vm290_vm6, %v285_v27 }
 0x29f   :  { %v312_v30 = vpop.f32.mrf.mxu2 }
 0x2a0   :  { %v343_v31 = vsel %vm342_vm7, %v312_v30, -inf }
 0x2a1   :  { %344 = vmax.xlane.f32.xlu2 %v343_v31 }
 0x2ad   :  { %v339_v32 = vpop.f32.mrf.mxu3 }
 0x2ae   :  { %v346_v33 = vsel %vm342_vm7, %v339_v32, -inf }
 0x2af   :  { %347 = vmax.xlane.f32.xlu2 %v346_v33 }
 0x2c7   :  { %2520 = vrot.lane.b32.xlu2 %v2519_v34, %s2906_s7 }
 0x2cf   :  { %419 = vrot.lane.b32.xlu2 %v282_v25, %s2907_s18 }
 0x2d7   :  { %447 = vrot.lane.b32.xlu2 %v285_v27, %s2907_s18 }
 0x2df   :  { %417 = vrot.lane.b32.xlu2 %v282_v25, %s2908_s8 }
 0x314   :  { %v345_v35 = vpop.xlane.xlu2 %344 }
 0x315   :  { %v349_v36 = vsub.f32 %v312_v30, %v345_v35 }
 0x317   :  { %v351_v37 = vmul.f32 1.442695, %v349_v36 }
 0x319   :  { %2552 = vpow2.f32 %v351_v37 }
 0x31f   :  { %v2553_v38 = vpop.eup %2552 }
 0x320   :  { %v355_v39 = vsel %vm342_vm7, %v2553_v38, 0.0 }
 0x321   :  { %356 = vadd.xlane.f32.xlu0 %v355_v39 }
 0x322   :  { %v348_v40 = vpop.xlane.xlu2 %347 }
 0x323   :  { %v350_v41 = vsub.f32 %v339_v32, %v348_v40  ;;  %v2540_v32 = vld [vmem:[%s3810_s9] ss:$0 sm:$0xff]  ;;  %s2396_s9 = sshll.u32 %s2913_s4, 4  ;;  %s2397_s9 = int_to_ptr.vmem [resolvable:$true] %s2396_s9 }
 0x325   :  { %v353_v42 = vmul.f32 1.442695, %v350_v41  ;;  %v2911_v41 = vmov 30.0  }
 0x327   :  { %2554 = vpow2.f32 %v353_v42 }
 0x32a   :  { %v2521_v43 = vpop.permute.xlu2 %2520 }
 0x32b   :  { %v2522_v44 = vunpack.i.l.bf16 %v2521_v43  ;;  %v2523_v45 = vunpack.i.h.bf16 %v2521_v43 }
 0x32d   :  { %v2555_v46 = vpop.eup %2554  ;;  %386 = vmatpush.msra.mxu2 %v2522_v44  ;;  %412 = vmatpush.msrb.mxu3 %v2523_v45 }
 0x32e   :  { %v358_v47 = vsel %vm342_vm7, %v2555_v46, 0.0 }
 0x32f   :  { %359 = vadd.xlane.f32.xlu1 %v358_v47 }
 0x332   :  { %v420_v48 = vpop.permute.xlu2 %419 }
 0x333   :  { %2430 = vmatpush.xpose.msk.msrb.mxu2 %vm290_vm6, %v420_v48 }
 0x335   :  { %445 = vrot.lane.b32.xlu0 %v285_v27, %s2908_s8  ;;  %v243_v27 = vld [vmem:[#allocation2] sm:$0xff] }
 0x33a   :  { %v448_v49 = vpop.permute.xlu2 %447 }
 0x33b   :  { %2432 = vmatpush.xpose.msk.msra.mxu3 %vm290_vm6, %v448_v49 }
 0x33d   :  { %2525 = vrot.lane.b32.xlu0 %v2519_v34, %s2909_s26 }
 0x342   :  { %v418_v54 = vpop.permute.xlu2 %417 }
 0x394   :  { %v357_v50 = vpop.xlane.xlu0 %356 }
 0x395   :  { %2556 = vrcp.f32 %v357_v50 }
 0x39b   :  { %v2557_v51 = vpop.eup %2556 }
 0x39c   :  { %v363_v52 = vmul.f32 %v2557_v51, %v2553_v38 }
 0x39e   :  { %2428 = vmatmul.msk.f32.vlgmr.msra.gmra.mxu2 %vm342_vm7, %v363_v52 }
 0x3a2   :  { %v360_v53 = vpop.xlane.xlu1 %359 }
 0x3a3   :  { %2558 = vrcp.f32 %v360_v53 }
 0x3a6   :  { %2431 = vmatmul.msk.f32.vlgmr.msrb.gmra.mxu2 %vm290_vm6, %v418_v54 }
 0x3a7   :  { %v446_v55 = vpop.permute.xlu0 %445 }
 0x3a9   :  { %v2559_v56 = vpop.eup %2558 }
 0x3aa   :  { %v364_v57 = vmul.f32 %v2559_v56, %v2555_v46  ;;  %v658_v56 = vld [vmem:[#allocation5 + $0x18] sm:$0x3f] }
 0x3ab   :  { %2439 = vmatpush.msk.msrb.mxu0 %vm260_vm1, %v658_v56 }
 0x3ac   :  { %2429 = vmatmul.msk.f32.vlgmr.msrb.gmra.mxu3 %vm342_vm7, %v364_v57  ;;  %v657_v57 = vld [vmem:[#allocation5 + $0x10] sm:$0xff] }
 0x3ad   :  { %2436 = vmatpush.msk.msrb.mxu3 %vm260_vm1, %v246_v20  ;;  %692 = vmatpush.msrb.mxu0 %v657_v57 }
 0x3af   :  { %v2526_v58 = vpop.permute.xlu0 %2525  ;;  %582 = vmatpush.msrb.mxu3 %v245_v23 }
 0x3b0   :  { %v2528_v59 = vunpack.i.h.bf16 %v2526_v58  ;;  %v2527_v60 = vunpack.i.l.bf16 %v2526_v58  ;;  %v656_v58 = vld [vmem:[#allocation5 + $0x8] sm:$0xff] }
 0x3b1   :  { %583 = vmatpush.msrb.mxu3 %v244_v24  ;;  %693 = vmatpush.msrb.mxu0 %v656_v58 }
 0x3b2   :  { %516 = vmatpush.msrb.mxu1 %v2527_v60  ;;  %542 = vmatpush.msra.mxu2 %v2528_v59  ;;  %v655_v59 = vld [vmem:[#allocation5] sm:$0xff] }
 0x3b3   :  { %584 = vmatpush.msrb.mxu3 %v243_v27  ;;  %694 = vmatpush.msrb.mxu0 %v655_v59  ;;  %v2543_v27 = vld [vmem:[%s3813_s3] ss:$0 sm:$0xff] }
 0x3b4   :  { %2433 = vmatmul.msk.f32.vlgmr.msra.gmra.mxu3 %vm290_vm6, %v446_v55 }
 0x421   :  { %v388_v61 = vpop.f32.mrf.mxu2 }
 0x429   :  { %v442_v62 = vpop.f32.mrf.mxu2 }
 0x42a   :  { %v473_v63 = vsel %vm342_vm7, %v442_v62, -inf }
 0x42b   :  { %474 = vmax.xlane.f32.xlu1 %v473_v63 }
 0x42f   :  { %v414_v0 = vpop.f32.mrf.mxu3 }
 0x437   :  { %v470_v1 = vpop.f32.mrf.mxu3 }
 0x438   :  { %v476_v2 = vsel %vm342_vm7, %v470_v1, -inf }
 0x439   :  { %477 = vmax.xlane.f32.xlu2 %v476_v2 }
 0x49e   :  { %v475_v3 = vpop.xlane.xlu1 %474 }
 0x49f   :  { %v479_v4 = vsub.f32 %v442_v62, %v475_v3 }
 0x4a1   :  { %v481_v5 = vmul.f32 1.442695, %v479_v4 }
 0x4a3   :  { %2560 = vpow2.f32 %v481_v5 }
 0x4a9   :  { %v2561_v6 = vpop.eup %2560 }
 0x4aa   :  { %v485_v7 = vsel %vm342_vm7, %v2561_v6, 0.0 }
 0x4ab   :  { %486 = vadd.xlane.f32.xlu1 %v485_v7  ;;  %v2541_v7 = vld [vmem:[%s3811_s29] ss:$0 sm:$0xff]  ;;  %s2398_s29 = sshll.u32 %s3786_s27, 4  ;;  %s2399_s29 = int_to_ptr.hbm [resolvable:$true] %s2398_s29 }
 0x4ac   :  { %v478_v8 = vpop.xlane.xlu2 %477 }
 0x4ad   :  { %v480_v9 = vsub.f32 %v470_v1, %v478_v8 }
 0x4af   :  { %v483_v10 = vmul.f32 1.442695, %v480_v9 }
 0x4b1   :  { %2562 = vpow2.f32 %v483_v10 }
 0x4b7   :  { %v2563_v11 = vpop.eup %2562 }
 0x4b8   :  { %v488_v12 = vsel %vm342_vm7, %v2563_v11, 0.0 }
 0x4b9   :  { %489 = vadd.xlane.f32.xlu1 %v488_v12 }
 0x51e   :  { %v487_v13 = vpop.xlane.xlu1 %486 }
 0x51f   :  { %2564 = vrcp.f32 %v487_v13 }
 0x525   :  { %v2565_v14 = vpop.eup %2564 }
 0x526   :  { %v493_v15 = vmul.f32 %v2565_v14, %v2561_v6 }
 0x528   :  { %2434 = vmatmul.msk.f32.vlgmr.msrb.gmra.mxu1 %vm342_vm7, %v493_v15 }
 0x52c   :  { %v490_v17 = vpop.xlane.xlu1 %489 }
 0x52d   :  { %2566 = vrcp.f32 %v490_v17 }
 0x52e   :  { %2568 = vrcp.f32 %v2911_v41 }
 0x533   :  { %v2567_v18 = vpop.eup %2566 }
 0x534   :  { %v494_v19 = vmul.f32 %v2567_v18, %v2563_v11  ;;  %v2569_v42 = vpop.eup %2568  ;;  %v2542_v11 = vld [vmem:[%s3812_s30] ss:$0 sm:$0xff] }
 0x535   :  { %v601_v43 = vmul.f32 30.0, %v2569_v42  ;;  %vm605_vm8 = vweird.f32 %v2569_v42 }
 0x536   :  { %2435 = vmatmul.msk.f32.vlgmr.msra.gmra.mxu2 %vm342_vm7, %v494_v19 }
 0x537   :  { %v602_v44 = vsub.f32 1.0, %v601_v43 }
 0x539   :  { %v603_v45 = vmul.f32 %v2569_v42, %v602_v44 }
 0x53b   :  { %v604_v46 = vadd.f32 %v2569_v42, %v603_v45 }
 0x53d   :  { %v3187_v47 = vsel %vm605_vm8, %v2569_v42, %v604_v46 }
 0x5a5   :  { %v518_v25 = vpop.f32.mrf.mxu1 }
 0x5a6   :  { %549 = vrot.lane.b32.xlu1 %v518_v25, %s2910_s20 }
 0x5b9   :  { %v544_v26 = vpop.f32.mrf.mxu2 }
 0x5ba   :  { %551 = vrot.lane.b32.xlu0 %v544_v26, %s2910_s20 }
 0x618   :  { %v550_v28 = vpop.permute.xlu1 %549 }
 0x619   :  { %v555_v29 = vsel %vm290_vm6, %v388_v61, %v550_v28 }
 0x61a   :  { %2437 = vmatmul.msk.f32.vlgmr.msrb.gmra.mxu3 %vm253_vm5, %v555_v29 }
 0x62c   :  { %v552_v30 = vpop.permute.xlu0 %551 }
 0x62d   :  { %v556_v31 = vsel %vm290_vm6, %v414_v0, %v552_v30 }
 0x62e   :  { %2438 = vmatmul.msk.f32.gmra.mxu3 %vm253_vm5, %v556_v31 }
 0x69d   :  { %v586_v33 = vpop.f32.mrf.mxu3 }
 0x69e   :  { %v587_v34 = vadd.f32 %v2540_v32, %v586_v33 }
 0x6a0   :  { %v592_v35 = vadd.f32 %v587_v34, %v3134_v21 }
 0x6a2   :  { %v594_v36 = vsel %vm253_vm5, %v592_v35, 0.0 }
 0x6a3   :  { %595 = vadd.xlane.f32.xlu0 %v594_v36 }
 0x6b1   :  { %v589_v37 = vpop.f32.mrf.mxu3 }
 0x6b2   :  { %v590_v38 = vadd.f32 %v2540_v32, %v589_v37 }
 0x6b4   :  { %v593_v39 = vadd.f32 %v590_v38, %v3138_v22 }
 0x6b6   :  { %v597_v40 = vsel %vm253_vm5, %v593_v39, 0.0 }
 0x6b7   :  { %598 = vadd.xlane.f32.xlu2 %v597_v40 }
 0x716   :  { %v596_v21 = vpop.xlane.xlu0 %595 }
 0x717   :  { %v607_v48 = vmul.f32 %v3187_v47, %v596_v21 }
 0x719   :  { %v609_v49 = vsub.f32 %v592_v35, %v607_v48 }
 0x71b   :  { %v611_v50 = vmul.f32 %v609_v49, %v609_v49 }
 0x71d   :  { %v613_v22 = vsel %vm253_vm5, %v611_v50, 0.0 }
 0x71e   :  { %614 = vadd.xlane.f32.xlu1 %v613_v22 }
 0x72a   :  { %v599_v51 = vpop.xlane.xlu2 %598 }
 0x72b   :  { %v608_v52 = vmul.f32 %v3187_v47, %v599_v51 }
 0x72d   :  { %v610_v53 = vsub.f32 %v593_v39, %v608_v52 }
 0x72f   :  { %v612_v54 = vmul.f32 %v610_v53, %v610_v53 }
 0x731   :  { %v616_v55 = vsel %vm253_vm5, %v612_v54, 0.0 }
 0x732   :  { %617 = vadd.xlane.f32.xlu2 %v616_v55 }
 0x791   :  { %v615_v60 = vpop.xlane.xlu1 %614 }
 0x792   :  { %v619_v61 = vmul.f32 %v615_v60, %v3187_v47 }
 0x794   :  { %v621_v62 = vadd.f32 1e-05, %v619_v61 }
 0x796   :  { %2570 = vrsqrt.f32 %v621_v62  ;;  %vm629_vm10 = vweird.f32 %v621_v62 }
 0x79c   :  { %v2571_v63 = vpop.eup %2570 }
 0x79d   :  { %v624_v0 = vmul.f32 %v2571_v63, %v621_v62  ;;  %vm630_vm9 = vweird.f32 %v2571_v63 }
 0x79e   :  { %vm631_vm11 = vmor %vm629_vm10, %vm630_vm9 }
 0x79f   :  { %v625_v1 = vmul.f32 %v2571_v63, %v624_v0 }
 0x7a1   :  { %v626_v2 = vmul.f32 0.5, %v625_v1 }
 0x7a3   :  { %v627_v3 = vsub.f32 1.5, %v626_v2 }
 0x7a5   :  { %v628_v4 = vmul.f32 %v2571_v63, %v627_v3  ;;  %v618_v5 = vpop.xlane.xlu2 %617 }
 0x7a6   :  { %v620_v6 = vmul.f32 %v618_v5, %v3187_v47 }
 0x7a7   :  { %v632_v8 = vsel %vm631_vm11, %v2571_v63, %v628_v4 }
 0x7a8   :  { %v643_v9 = vmul.f32 %v632_v8, %v609_v49  ;;  %v622_v10 = vadd.f32 1e-05, %v620_v6 }
 0x7aa   :  { %2572 = vrsqrt.f32 %v622_v10  ;;  %v648_v12 = vmul.f32 %v2541_v7, %v643_v9  ;;  %vm639_vm13 = vweird.f32 %v622_v10 }
 0x7ac   :  { %v3202_v13 = vadd.f32 %v2542_v11, %v648_v12 }
 0x7ae   :  { %2440 = vmatmul.msk.f32.vlgmr.msrb.gmra.mxu0 %vm253_vm5, %v3202_v13 }
 0x7b0   :  { %v2573_v14 = vpop.eup %2572 }
 0x7b1   :  { %v634_v15 = vmul.f32 %v2573_v14, %v622_v10  ;;  %vm640_vm12 = vweird.f32 %v2573_v14 }
 0x7b2   :  { %vm641_vm14 = vmor %vm639_vm13, %vm640_vm12  ;;  %vm1277_vm13 = vcmask 1041409  }
 0x7b3   :  { %v635_v17 = vmul.f32 %v2573_v14, %v634_v15 }
 0x7b5   :  { %v636_v18 = vmul.f32 0.5, %v635_v17 }
 0x7b7   :  { %v637_v19 = vsub.f32 1.5, %v636_v18 }
 0x7b9   :  { %v638_v20 = vmul.f32 %v2573_v14, %v637_v19 }
 0x7bb   :  { %v642_v23 = vsel %vm641_vm14, %v2573_v14, %v638_v20  ;;  %vm1153_vm14 = vcmask 523264  }
 0x7bc   :  { %v644_v24 = vmul.f32 %v642_v23, %v610_v53 }
 0x7be   :  { %v649_v25 = vmul.f32 %v2541_v7, %v644_v24  ;;  %v663_v24 = vld [vmem:[#allocation7 + $0x18] sm:$0x3f] }
 0x7c0   :  { %v3206_v26 = vadd.f32 %v2542_v11, %v649_v25  ;;  %v662_v25 = vld [vmem:[#allocation7 + $0x10] sm:$0xff] }
 0x7c2   :  { %2441 = vmatmul.msk.f32.gmra.mxu0 %vm253_vm5, %v3206_v26 }
 0x82b   :  { %v696_v28 = vpop.f32.mrf.mxu0 }
 0x82c   :  { %v697_v29 = vadd.f32 %v2543_v27, %v696_v28 }
 0x82e   :  { %830 = vrot.lane.b32.xlu1 %v697_v29, %s2908_s8  ;;  %703 = vrot.lane.b32.xlu0 %v697_v29, %s2905_s11 }
 0x83f   :  { %v699_v30 = vpop.f32.mrf.mxu0 }
 0x840   :  { %v700_v31 = vadd.f32 %v2543_v27, %v699_v30  ;;  %v661_v27 = vld [vmem:[#allocation7 + $0x8] sm:$0xff] }
 0x842   :  { %730 = vrot.lane.b32.xlu2 %v700_v31, %s2905_s11  ;;  %858 = vrot.lane.b32.xlu0 %v700_v31, %s2908_s8  ;;  %v2529_v46 = vpack.i.bf16 %v700_v31, %v697_v29 }
 0x84a   :  { %832 = vrot.lane.b32.xlu2 %v697_v29, %s2907_s18 }
 0x852   :  { %860 = vrot.lane.b32.xlu2 %v700_v31, %s2907_s18 }
 0x89c   :  { %v731_v32 = vpop.permute.xlu2 %730 }
 0x89d   :  { %2444 = vmatpush.xpose.msk.msrb.mxu2 %vm290_vm6, %v731_v32  ;;  %v660_v32 = vld [vmem:[#allocation7] sm:$0xff] }
 0x8a0   :  { %2445 = vmatmul.msk.f32.vlgmr.msrb.gmra.mxu2 %vm290_vm6, %v700_v31  ;;  %v704_v33 = vpop.permute.xlu0 %703  ;;  %v831_v35 = vpop.permute.xlu1 %830 }
 0x8a1   :  { %2442 = vmatpush.xpose.msk.msra.mxu1 %vm290_vm6, %v704_v33 }
 0x8a4   :  { %v833_v34 = vpop.permute.xlu2 %832  ;;  %2443 = vmatmul.msk.f32.vlgmr.msra.gmra.mxu1 %vm290_vm6, %v697_v29 }
 0x8a5   :  { %2448 = vmatpush.xpose.msk.msra.mxu3 %vm290_vm6, %v833_v34 }
 0x8a8   :  { %2449 = vmatmul.msk.f32.vlgmr.msra.gmra.mxu3 %vm290_vm6, %v831_v35 }
 0x8a9   :  { %2454 = vmatpush.msk.msrb.mxu3 %vm260_vm1, %v663_v24  ;;  %v3414_v24 = vld [vmem:[%s3774_s15 + $0x8] sm:$0xff] }
 0x8ab   :  { %995 = vmatpush.msrb.mxu3 %v662_v25 }
 0x8ac   :  { %v861_v36 = vpop.permute.xlu2 %860 }
 0x8ad   :  { %2450 = vmatpush.xpose.msk.msra.mxu0 %vm290_vm6, %v861_v36  ;;  %996 = vmatpush.msrb.mxu3 %v661_v27  ;;  %v2545_v27 = vld [vmem:[%s3771_s12] ss:$0 sm:$0xff] }
 0x8af   :  { %997 = vmatpush.msrb.mxu3 %v660_v32 }
 0x8b4   :  { %v859_v37 = vpop.permute.xlu0 %858 }
 0x8b5   :  { %2451 = vmatmul.msk.f32.vlgmr.msra.gmra.mxu0 %vm290_vm6, %v859_v37 }
 0x921   :  { %v726_v38 = vpop.f32.mrf.mxu1 }
 0x922   :  { %v756_v39 = vsel %vm342_vm7, %v726_v38, -inf }
 0x923   :  { %v753_v40 = vpop.f32.mrf.mxu2  ;;  %757 = vmax.xlane.f32.xlu2 %v756_v39 }
 0x924   :  { %v759_v41 = vsel %vm342_vm7, %v753_v40, -inf }
 0x925   :  { %760 = vmax.xlane.f32.xlu0 %v759_v41 }
 0x92b   :  { %v855_v42 = vpop.f32.mrf.mxu3 }
 0x92c   :  { %v886_v43 = vsel %vm342_vm7, %v855_v42, -inf }
 0x92d   :  { %887 = vmax.xlane.f32.xlu1 %v886_v43 }
 0x932   :  { %v883_v44 = vpop.f32.mrf.mxu0 }
 0x933   :  { %v889_v45 = vsel %vm342_vm7, %v883_v44, -inf }
 0x934   :  { %890 = vmax.xlane.f32.xlu2 %v889_v45 }
 0x946   :  { %2530 = vrot.lane.b32.xlu1 %v2529_v46, %s2906_s7  ;;  %s3814_s7 = sld [smem:[#allocation33_spill]] }
 0x94c   :  { %v2544_v37 = vld [vmem:[%s3814_s7] ss:$0 sm:$0xff] }
 0x996   :  { %v758_v21 = vpop.xlane.xlu2 %757 }
 0x997   :  { %v762_v48 = vsub.f32 %v726_v38, %v758_v21 }
 0x998   :  { %v761_v49 = vpop.xlane.xlu0 %760 }
 0x999   :  { %v764_v50 = vmul.f32 1.442695, %v762_v48  ;;  %v763_v22 = vsub.f32 %v753_v40, %v761_v49 }
 0x99b   :  { %2574 = vpow2.f32 %v764_v50  ;;  %v766_v51 = vmul.f32 1.442695, %v763_v22 }
 0x99d   :  { %2576 = vpow2.f32 %v766_v51 }
 0x9a0   :  { %v888_v52 = vpop.xlane.xlu1 %887 }
 0x9a1   :  { %v2575_v53 = vpop.eup %2574  ;;  %v892_v54 = vsub.f32 %v855_v42, %v888_v52 }
 0x9a2   :  { %v768_v55 = vsel %vm342_vm7, %v2575_v53, 0.0 }
 0x9a3   :  { %v2577_v56 = vpop.eup %2576  ;;  %v894_v57 = vmul.f32 1.442695, %v892_v54  ;;  %769 = vadd.xlane.f32.xlu0 %v768_v55  ;;  %v3276_v54 = vld [vmem:[%s3774_s15 + $0x60] sm:$0xff]  ;;  %v3282_v55 = vld [vmem:[%s3774_s15 + $0x50] sm:$0xff] }
 0x9a4   :  { %v771_v58 = vsel %vm342_vm7, %v2577_v56, 0.0 }
 0x9a5   :  { %2578 = vpow2.f32 %v894_v57  ;;  %772 = vadd.xlane.f32.xlu2 %v771_v58  ;;  %v3294_v57 = vld [vmem:[%s3774_s15 + $0x30] sm:$0xff]  ;;  %v3300_v58 = vld [vmem:[%s3774_s15 + $0x20] sm:$0xff] }
 0x9a7   :  { %v891_v59 = vpop.xlane.xlu2 %890 }
 0x9a8   :  { %v893_v60 = vsub.f32 %v883_v44, %v891_v59  ;;  %v1067_v59 = vld [vmem:[%s3773_s14 + $0x30] sm:$0x3f] }
 0x9a9   :  { %2457 = vmatpush.msk.msrb.mxu0 %vm260_vm1, %v1067_v59 }
 0x9aa   :  { %v896_v61 = vmul.f32 1.442695, %v893_v60  ;;  %v1068_v60 = vld [vmem:[%s3773_s14 + $0x38] sm:$0x3f] }
 0x9ab   :  { %v2579_v62 = vpop.eup %2578 }
 0x9ac   :  { %2580 = vpow2.f32 %v896_v61  ;;  %v898_v63 = vsel %vm342_vm7, %v2579_v62, 0.0  ;;  %v3312_v61 = vld [vmem:[%s3774_s15 + $0x10] sm:$0xff] }
 0x9ad   :  { %899 = vadd.xlane.f32.xlu0 %v898_v63  ;;  %v1066_v63 = vld [vmem:[%s3773_s14 + $0x28] sm:$0xff] }
 0x9b2   :  { %v2581_v0 = vpop.eup %2580 }
 0x9b3   :  { %v901_v1 = vsel %vm342_vm7, %v2581_v0, 0.0 }
 0x9b4   :  { %902 = vadd.xlane.f32.xlu2 %v901_v1  ;;  %v1063_v1 = vld [vmem:[%s3773_s14 + $0x10] sm:$0xff] }
 0x9b8   :  { %v2531_v2 = vpop.permute.xlu1 %2530 }
 0x9b9   :  { %v2533_v3 = vunpack.i.h.bf16 %v2531_v2  ;;  %v2532_v4 = vunpack.i.l.bf16 %v2531_v2  ;;  %v1064_v2 = vld [vmem:[%s3773_s14 + $0x18] sm:$0xff] }
 0x9bb   :  { %799 = vmatpush.msrb.mxu1 %v2532_v4  ;;  %825 = vmatpush.msra.mxu2 %v2533_v3  ;;  %v1061_v3 = vld [vmem:[%s3773_s14] sm:$0xff]  ;;  %v1062_v4 = vld [vmem:[%s3773_s14 + $0x8] sm:$0xff] }
 0x9c1   :  { %2535 = vrot.lane.b32.xlu0 %v2529_v46, %s2909_s26 }
 0xa16   :  { %v770_v5 = vpop.xlane.xlu0 %769 }
 0xa17   :  { %2582 = vrcp.f32 %v770_v5 }
 0xa18   :  { %v773_v6 = vpop.xlane.xlu2 %772 }
 0xa19   :  { %2584 = vrcp.f32 %v773_v6 }
 0xa1d   :  { %v2583_v7 = vpop.eup %2582 }
 0xa1e   :  { %v776_v8 = vmul.f32 %v2583_v7, %v2575_v53  ;;  %v3270_v53 = vld [vmem:[%s3774_s15 + $0x70] sm:$0xff] }
 0xa1f   :  { %v2585_v9 = vpop.eup %2584 }
 0xa20   :  { %v777_v10 = vmul.f32 %v2585_v9, %v2577_v56  ;;  %2446 = vmatmul.msk.f32.vlgmr.msrb.gmra.mxu1 %vm342_vm7, %v776_v8  ;;  %v900_v11 = vpop.xlane.xlu0 %899  ;;  %v3288_v56 = vld [vmem:[%s3774_s15 + $0x40] sm:$0xff]  ;;  %v3355_v8 = vld [vmem:[%s3774_s15 + $0x78] sm:$0xff]  ;;  %v3363_v9 = vld [vmem:[%s3774_s15 + $0x68] sm:$0xff] }
 0xa21   :  { %2586 = vrcp.f32 %v900_v11  ;;  %1185 = vmatpush.msra.mxu3 %v3355_v8 }
 0xa22   :  { %2447 = vmatmul.msk.f32.vlgmr.msra.gmra.mxu2 %vm342_vm7, %v777_v10  ;;  %v3372_v10 = vld [vmem:[%s3774_s15 + $0x58] sm:$0xff] }
 0xa23   :  { %1186 = vmatpush.msra.mxu3 %v3363_v9 }
 0xa25   :  { %1187 = vmatpush.msra.mxu3 %v3372_v10 }
 0xa27   :  { %v903_v12 = vpop.xlane.xlu2 %902  ;;  %v2587_v14 = vpop.eup %2586 }
 0xa28   :  { %2588 = vrcp.f32 %v903_v12  ;;  %v906_v20 = vmul.f32 %v2587_v14, %v2579_v62  ;;  %v1065_v62 = vld [vmem:[%s3773_s14 + $0x20] sm:$0xff]  ;;  %v3381_v12 = vld [vmem:[%s3774_s15 + $0x48] sm:$0xff] }
 0xa29   :  { %1100 = vmatpush.msrb.mxu0 %v1065_v62  ;;  %1188 = vmatpush.msra.mxu3 %v3381_v12 }
 0xa2b   :  { %1101 = vmatpush.msrb.mxu0 %v1063_v1 }
 0xa2d   :  { %1102 = vmatpush.msrb.mxu0 %v1061_v3 }
 0xa2e   :  { %v2589_v15 = vpop.eup %2588 }
 0xa2f   :  { %v907_v23 = vmul.f32 %v2589_v15, %v2581_v0  ;;  %v3326_v0 = vld [vmem:[%s3774_s15] sm:$0xff]  ;;  %1289 = vmatpush.msra.mxu0 %v3270_v53  ;;  %v3390_v15 = vld [vmem:[%s3774_s15 + $0x38] sm:$0xff] }
 0xa30   :  { %1189 = vmatpush.msra.mxu3 %v3390_v15 }
 0xa31   :  { %1290 = vmatpush.msra.mxu0 %v3276_v54 }
 0xa33   :  { %v2536_v17 = vpop.permute.xlu0 %2535  ;;  %1291 = vmatpush.msra.mxu0 %v3282_v55 }
 0xa34   :  { %v2538_v18 = vunpack.i.h.bf16 %v2536_v17  ;;  %v2537_v19 = vunpack.i.l.bf16 %v2536_v17 }
 0xa35   :  { %1292 = vmatpush.msra.mxu0 %v3288_v56 }
 0xa36   :  { %929 = vmatpush.msra.mxu1 %v2537_v19  ;;  %955 = vmatpush.msrb.mxu2 %v2538_v18  ;;  %v3398_v18 = vld [vmem:[%s3774_s15 + $0x28] sm:$0xff] }
 0xa37   :  { %2452 = vmatmul.msk.f32.vlgmr.msra.gmra.mxu1 %vm342_vm7, %v906_v20  ;;  %2453 = vmatmul.msk.f32.vlgmr.msrb.gmra.mxu2 %vm342_vm7, %v907_v23  ;;  %v3406_v20 = vld [vmem:[%s3774_s15 + $0x18] sm:$0xff]  ;;  %s2914_s15 = smov [#allocation13]  }
 0xa38   :  { %1165 = vmatpush.msra.mxu2 %v3270_v53  ;;  %2460 = vmatpush.msk.msrb.mxu1 %vm260_vm1, %v1068_v60  ;;  %s2385_s5 = sshll.u32 %s2914_s15, 4  ;;  %s2386_s5 = int_to_ptr.vmem [resolvable:$true] %s2385_s5 }
 0xa39   :  { %1293 = vmatpush.msra.mxu0 %v3294_v57  ;;  %1190 = vmatpush.msra.mxu3 %v3398_v18 }
 0xa3a   :  { %1166 = vmatpush.msra.mxu2 %v3276_v54  ;;  %1123 = vmatpush.msrb.mxu1 %v1066_v63 }
 0xa3b   :  { %1294 = vmatpush.msra.mxu0 %v3300_v58  ;;  %1191 = vmatpush.msra.mxu3 %v3406_v20 }
 0xa3c   :  { %1167 = vmatpush.msra.mxu2 %v3282_v55  ;;  %1124 = vmatpush.msrb.mxu1 %v1064_v2 }
 0xa3d   :  { %1295 = vmatpush.msra.mxu0 %v3312_v61  ;;  %1192 = vmatpush.msra.mxu3 %v3414_v24 }
 0xa3e   :  { %1168 = vmatpush.msra.mxu2 %v3288_v56  ;;  %1125 = vmatpush.msrb.mxu1 %v1062_v4 }
 0xa3f   :  { %1296 = vmatpush.msra.mxu0 %v3326_v0 }
 0xa40   :  { %1169 = vmatpush.msra.mxu2 %v3294_v57  ;;  %1309 = vmatpush.msra.mxu1 %v3355_v8 }
 0xa42   :  { %1170 = vmatpush.msra.mxu2 %v3300_v58  ;;  %1310 = vmatpush.msra.mxu1 %v3363_v9 }
 0xa44   :  { %1171 = vmatpush.msra.mxu2 %v3312_v61  ;;  %1311 = vmatpush.msra.mxu1 %v3372_v10 }
 0xa46   :  { %1172 = vmatpush.msra.mxu2 %v3326_v0  ;;  %1312 = vmatpush.msra.mxu1 %v3381_v12 }
 0xa47   :  { %1173 = vmatmul.f32.vlgmr.msra.gmra.mxu2 %v2904_v16 }
 0xa48   :  { %1420 = vmatpush.msrb.mxu2 %v3270_v53  ;;  %1313 = vmatpush.msra.mxu1 %v3390_v15 }
 0xa4a   :  { %1421 = vmatpush.msrb.mxu2 %v3276_v54  ;;  %1314 = vmatpush.msra.mxu1 %v3398_v18 }
 0xa4c   :  { %1422 = vmatpush.msrb.mxu2 %v3282_v55  ;;  %1315 = vmatpush.msra.mxu1 %v3406_v20 }
 0xa4e   :  { %1423 = vmatpush.msrb.mxu2 %v3288_v56  ;;  %1316 = vmatpush.msra.mxu1 %v3414_v24 }
 0xa50   :  { %1424 = vmatpush.msrb.mxu2 %v3294_v57 }
 0xa52   :  { %1425 = vmatpush.msrb.mxu2 %v3300_v58 }
 0xa54   :  { %1426 = vmatpush.msrb.mxu2 %v3312_v61 }
 0xa56   :  { %1427 = vmatpush.msrb.mxu2 %v3326_v0 }
 0xa58   :  { %1688 = vmatpush.msra.mxu2 %v3270_v53 }
 0xa5a   :  { %1689 = vmatpush.msra.mxu2 %v3276_v54 }
 0xa5c   :  { %1690 = vmatpush.msra.mxu2 %v3282_v55 }
 0xa5e   :  { %1691 = vmatpush.msra.mxu2 %v3288_v56 }
 0xa60   :  { %1692 = vmatpush.msra.mxu2 %v3294_v57 }
 0xa62   :  { %1693 = vmatpush.msra.mxu2 %v3300_v58 }
 0xa64   :  { %1694 = vmatpush.msra.mxu2 %v3312_v61 }
 0xa66   :  { %1695 = vmatpush.msra.mxu2 %v3326_v0 }
 0xa9d   :  { %v801_v28 = vpop.f32.mrf.mxu1 }
 0xaa5   :  { %v827_v29 = vpop.f32.mrf.mxu2 }
 0xab4   :  { %v931_v30 = vpop.f32.mrf.mxu1 }
 0xab5   :  { %962 = vrot.lane.b32.xlu2 %v931_v30, %s2910_s20  ;;  %v2546_v30 = vld [vmem:[%s3772_s13] ss:$0 sm:$0xff]  ;;  %s3815_s13 = sld [smem:[#allocation34_spill]] }
 0xaba   :  { %v957_v31 = vpop.f32.mrf.mxu2 }
 0xabb   :  { %964 = vrot.lane.b32.xlu1 %v957_v31, %s2910_s20  ;;  %s2387_s30 = sshll.u32 %s3815_s13, 4  ;;  %s2388_s30 = int_to_ptr.hbm [resolvable:$true] %s2387_s30 }
 0xb0f   :  { %v963_v33 = vpop.permute.xlu2 %962 }
 0xb10   :  { %v968_v34 = vsel %vm290_vm6, %v801_v28, %v963_v33 }
 0xb11   :  { %2455 = vmatmul.msk.f32.vlgmr.msrb.gmra.mxu3 %vm253_vm5, %v968_v34 }
 0xb12   :  { %1440 = vmatpush.msrb.mxu3 %v3355_v8 }
 0xb14   :  { %1441 = vmatpush.msrb.mxu3 %v3363_v9 }
 0xb16   :  { %1442 = vmatpush.msrb.mxu3 %v3372_v10 }
 0xb18   :  { %1443 = vmatpush.msrb.mxu3 %v3381_v12 }
 0xb1a   :  { %1444 = vmatpush.msrb.mxu3 %v3390_v15 }
 0xb1c   :  { %1445 = vmatpush.msrb.mxu3 %v3398_v18 }
 0xb1e   :  { %1446 = vmatpush.msrb.mxu3 %v3406_v20 }
 0xb20   :  { %1447 = vmatpush.msrb.mxu3 %v3414_v24 }
 0xb2d   :  { %v965_v35 = vpop.permute.xlu1 %964 }
 0xb2e   :  { %v969_v36 = vsel %vm290_vm6, %v827_v29, %v965_v35 }
 0xb2f   :  { %2456 = vmatmul.msk.f32.gmra.mxu3 %vm253_vm5, %v969_v36 }
 0xb37   :  { %1193 = vmatmul.f32.vlgmr.msra.gmra.mxu3 %v2904_v16 }
 0xb38   :  { %1708 = vmatpush.msra.mxu3 %v3355_v8 }
 0xb3a   :  { %1709 = vmatpush.msra.mxu3 %v3363_v9 }
 0xb3c   :  { %1710 = vmatpush.msra.mxu3 %v3372_v10 }
 0xb3e   :  { %1711 = vmatpush.msra.mxu3 %v3381_v12 }
 0xb40   :  { %1712 = vmatpush.msra.mxu3 %v3390_v15 }
 0xb42   :  { %1713 = vmatpush.msra.mxu3 %v3398_v18 }
 0xb44   :  { %1714 = vmatpush.msra.mxu3 %v3406_v20 }
 0xb46   :  { %1715 = vmatpush.msra.mxu3 %v3414_v24 }
 0xb94   :  { %v999_v38 = vpop.f32.mrf.mxu3 }
 0xb95   :  { %v1000_v39 = vadd.f32 %v2544_v37, %v999_v38 }
 0xb97   :  { %v1005_v40 = vadd.f32 %v1000_v39, %v3202_v13 }
 0xb99   :  { %v1007_v41 = vsel %vm253_vm5, %v1005_v40, 0.0 }
 0xb9a   :  { %1008 = vadd.xlane.f32.xlu0 %v1007_v41 }
 0xbb2   :  { %v1002_v42 = vpop.f32.mrf.mxu3 }
 0xbb3   :  { %v1003_v43 = vadd.f32 %v2544_v37, %v1002_v42 }
 0xbb5   :  { %v1006_v44 = vadd.f32 %v1003_v43, %v3206_v26 }
 0xbb7   :  { %v1010_v45 = vsel %vm253_vm5, %v1006_v44, 0.0 }
 0xbb8   :  { %1011 = vadd.xlane.f32.xlu1 %v1010_v45 }
 0xbba   :  { %v1194_v60 = vpop.f32.mrf.mxu3 }
 0xc0d   :  { %v1009_v46 = vpop.xlane.xlu0 %1008 }
 0xc0e   :  { %v1013_v21 = vmul.f32 %v1009_v46, %v3187_v47 }
 0xc10   :  { %v3256_v48 = vsub.f32 %v1005_v40, %v1013_v21  ;;  %v1174_v21 = vpop.f32.mrf.mxu2 }
 0xc11   :  { %v1198_v3 = vrot.slane %v1174_v21, 1 }
 0xc12   :  { %v1017_v49 = vmul.f32 %v3256_v48, %v3256_v48 }
 0xc14   :  { %v1019_v13 = vsel %vm253_vm5, %v1017_v49, 0.0 }
 0xc15   :  { %1020 = vadd.xlane.f32.xlu2 %v1019_v13 }
 0xc2b   :  { %v1012_v50 = vpop.xlane.xlu1 %1011 }
 0xc2c   :  { %v1014_v22 = vmul.f32 %v1012_v50, %v3187_v47 }
 0xc2e   :  { %v3262_v51 = vsub.f32 %v1006_v44, %v1014_v22  ;;  %v3472_v44 = vld [vmem:[%s3775_s16] sm:$0x3]  ;;  %s2912_s16 = smov 64  }
 0xc2f   :  { %v1071_v45 = vperm.slane %v3472_v44, 0  ;;  %v1072_v2 = vperm.slane %v3472_v44, 1 }
 0xc30   :  { %v1018_v26 = vmul.f32 %v3262_v51, %v3262_v51 }
 0xc32   :  { %v1022_v52 = vsel %vm253_vm5, %v1018_v26, 0.0 }
 0xc33   :  { %1023 = vadd.xlane.f32.xlu0 %v1022_v52  ;;  %v3481_v52 = vld [vmem:[%s3776_s17] ss:$0 sm:$0xff] }
 0xc88   :  { %v1021_v5 = vpop.xlane.xlu2 %1020 }
 0xc89   :  { %v1025_v6 = vmul.f32 %v1021_v5, %v3187_v47  ;;  %v1241_v5 = vadd.f32 %v3481_v52, %v1194_v60 }
 0xc8b   :  { %v1027_v7 = vadd.f32 1e-05, %v1025_v6 }
 0xc8d   :  { %2590 = vrsqrt.f32 %v1027_v7  ;;  %vm1035_vm0 = vweird.f32 %v1027_v7 }
 0xc93   :  { %v2591_v11 = vpop.eup %2590 }
 0xc94   :  { %v1030_v14 = vmul.f32 %v2591_v11, %v1027_v7  ;;  %vm1036_vm15 = vweird.f32 %v2591_v11 }
 0xc95   :  { %vm1037_vm1 = vmor %vm1035_vm0, %vm1036_vm15 }
 0xc96   :  { %v1031_v17 = vmul.f32 %v2591_v11, %v1030_v14 }
 0xc98   :  { %v1032_v19 = vmul.f32 0.5, %v1031_v17 }
 0xc9a   :  { %v1033_v23 = vsub.f32 1.5, %v1032_v19 }
 0xc9c   :  { %v1034_v25 = vmul.f32 %v2591_v11, %v1033_v23 }
 0xc9e   :  { %v1038_v28 = vsel %vm1037_vm1, %v2591_v11, %v1034_v25 }
 0xc9f   :  { %v1049_v29 = vmul.f32 %v1038_v28, %v3256_v48 }
 0xca1   :  { %v1054_v31 = vmul.f32 %v2545_v27, %v1049_v29 }
 0xca3   :  { %v1059_v16 = vadd.f32 %v2546_v30, %v1054_v31 }
 0xca5   :  { %2458 = vmatmul.msk.f32.vlgmr.msrb.gmra.mxu0 %vm253_vm5, %v1059_v16  ;;  %2461 = vmatmul.msk.f32.vlgmr.msrb.gmra.mxu1 %vm253_vm5, %v1059_v16 }
 0xca6   :  { %v1024_v32 = vpop.xlane.xlu0 %1023  ;;  %1554 = vmatpush.msrb.mxu0 %v3270_v53  ;;  %1574 = vmatpush.msrb.mxu1 %v3355_v8 }
 0xca7   :  { %v1026_v33 = vmul.f32 %v1024_v32, %v3187_v47 }
 0xca8   :  { %1555 = vmatpush.msrb.mxu0 %v3276_v54  ;;  %1575 = vmatpush.msrb.mxu1 %v3363_v9 }
 0xca9   :  { %v1028_v34 = vadd.f32 1e-05, %v1026_v33 }
 0xcaa   :  { %1556 = vmatpush.msrb.mxu0 %v3282_v55  ;;  %1576 = vmatpush.msrb.mxu1 %v3372_v10 }
 0xcab   :  { %2592 = vrsqrt.f32 %v1028_v34  ;;  %vm1045_vm3 = vweird.f32 %v1028_v34 }
 0xcac   :  { %1557 = vmatpush.msrb.mxu0 %v3288_v56  ;;  %1577 = vmatpush.msrb.mxu1 %v3381_v12 }
 0xcae   :  { %1558 = vmatpush.msrb.mxu0 %v3294_v57  ;;  %1578 = vmatpush.msrb.mxu1 %v3390_v15 }
 0xcb0   :  { %1559 = vmatpush.msrb.mxu0 %v3300_v58  ;;  %1579 = vmatpush.msrb.mxu1 %v3398_v18 }
 0xcb1   :  { %v2593_v47 = vpop.eup %2592 }
 0xcb2   :  { %v1040_v35 = vmul.f32 %v2593_v47, %v1028_v34  ;;  %1560 = vmatpush.msrb.mxu0 %v3312_v61  ;;  %1580 = vmatpush.msrb.mxu1 %v3406_v20  ;;  %vm1046_vm2 = vweird.f32 %v2593_v47 }
 0xcb3   :  { %vm1047_vm4 = vmor %vm1045_vm3, %vm1046_vm2 }
 0xcb4   :  { %v1041_v36 = vmul.f32 %v2593_v47, %v1040_v35  ;;  %1561 = vmatpush.msrb.mxu0 %v3326_v0  ;;  %1581 = vmatpush.msrb.mxu1 %v3414_v24 }
 0xcb6   :  { %v1042_v37 = vmul.f32 0.5, %v1041_v36 }
 0xcb8   :  { %v1043_v38 = vsub.f32 1.5, %v1042_v37 }
 0xcba   :  { %v1044_v39 = vmul.f32 %v2593_v47, %v1043_v38 }
 0xcbc   :  { %v1048_v40 = vsel %vm1047_vm4, %v2593_v47, %v1044_v39  ;;  %v1243_v39 = vrot.slane %v1241_v5, 1 }
 0xcbd   :  { %v1050_v41 = vmul.f32 %v1048_v40, %v3262_v51 }
 0xcbf   :  { %v1055_v42 = vmul.f32 %v2545_v27, %v1050_v41 }
 0xcc1   :  { %v1060_v43 = vadd.f32 %v2546_v30, %v1055_v42 }
 0xcc3   :  { %2459 = vmatmul.msk.f32.gmra.mxu0 %vm253_vm5, %v1060_v43  ;;  %2462 = vmatmul.msk.f32.gmra.mxu1 %vm253_vm5, %v1060_v43 }
 0xd22   :  { %v1104_v46 = vpop.f32.mrf.mxu0  ;;  %v1127_v6 = vpop.f32.mrf.mxu1 }
 0xd23   :  { %v3475_v48 = vadd.f32 %v1104_v46, %v1071_v45  ;;  %v3487_v23 = vadd.f32 %v1127_v6, %v1072_v2 }
 0xd25   :  { %v1201_v49 = vadd.f32 %v1174_v21, %v3475_v48 }
 0xd27   :  { %v2463_v13 = vmul.f32 -1.442695, %v1201_v49 }
 0xd29   :  { %2594 = vpow2.f32 %v2463_v13 }
 0xd2f   :  { %v2595_v50 = vpop.eup %2594 }
 0xd30   :  { %v1209_v22 = vadd.f32 1.0, %v2595_v50 }
 0xd32   :  { %2596 = vrcp.f32 %v1209_v22  ;;  %v1222_v62 = vand.u32 2147483648, %v1209_v22  ;;  %v1220_v1 = vand.u32 2147483647, %v1209_v22  ;;  %vm1216_vm6 = vweird.f32 %v1209_v22 }
 0xd34   :  { %v1223_v11 = vor.u32 1.1754944e-38, %v1222_v62  ;;  %vm1221_vm8 = vcmp.eq.f32.partialorder %v1220_v1, 8.507059e+37 }
 0xd38   :  { %v2597_v51 = vpop.eup %2596 }
 0xd39   :  { %v1212_v26 = vmul.f32 %v2597_v51, %v1209_v22  ;;  %vm1217_vm5 = vweird.f32 %v2597_v51 }
 0xd3a   :  { %vm1218_vm7 = vmor %vm1216_vm6, %vm1217_vm5 }
 0xd3b   :  { %v1213_v59 = vsub.f32 1.0, %v1212_v26 }
 0xd3d   :  { %v1214_v63 = vmul.f32 %v2597_v51, %v1213_v59 }
 0xd3f   :  { %v1215_v4 = vadd.f32 %v2597_v51, %v1214_v63 }
 0xd40   :  { %v1107_v7 = vpop.f32.mrf.mxu0  ;;  %v1130_v40 = vpop.f32.mrf.mxu1 }
 0xd41   :  { %v3485_v14 = vadd.f32 %v1107_v7, %v1071_v45  ;;  %v1219_v17 = vsel %vm1218_vm7, %v2597_v51, %v1215_v4  ;;  %v3492_v44 = vadd.f32 %v1130_v40, %v1072_v2 }
 0xd42   :  { %v1224_v19 = vsel %vm1221_vm8, %v1223_v11, %v1219_v17 }
 0xd43   :  { %v1202_v25 = vadd.f32 %v1198_v3, %v3485_v14  ;;  %v1246_v27 = vmul.f32 %v1241_v5, %v1224_v19 }
 0xd45   :  { %v2464_v28 = vmul.f32 -1.442695, %v1202_v25  ;;  %v1248_v29 = vadd.f32 %v1246_v27, %v3487_v23 }
 0xd47   :  { %2598 = vpow2.f32 %v2464_v28 }
 0xd48   :  { %2600 = vtanh.f32 %v1248_v29 }
 0xd4d   :  { %v2599_v30 = vpop.eup %2598 }
 0xd4e   :  { %v2601_v31 = vpop.eup %2600  ;;  %v1210_v16 = vadd.f32 1.0, %v2599_v30 }
 0xd4f   :  { %v1252_v32 = vsub.f32 0.0, %v2601_v31 }
 0xd50   :  { %2602 = vrcp.f32 %v1210_v16  ;;  %v1237_v35 = vand.u32 2147483648, %v1210_v16  ;;  %v1235_v37 = vand.u32 2147483647, %v1210_v16  ;;  %vm1231_vm10 = vweird.f32 %v1210_v16 }
 0xd51   :  { %1256 = vrot.lane.b32.xlu2 %v1252_v32, %s2912_s16 }
 0xd52   :  { %v1238_v41 = vor.u32 1.1754944e-38, %v1237_v35  ;;  %vm1236_vm12 = vcmp.eq.f32.partialorder %v1235_v37, 8.507059e+37 }
 0xd56   :  { %v2603_v33 = vpop.eup %2602 }
 0xd57   :  { %v1227_v34 = vmul.f32 %v2603_v33, %v1210_v16  ;;  %vm1232_vm9 = vweird.f32 %v2603_v33 }
 0xd58   :  { %vm1233_vm11 = vmor %vm1231_vm10, %vm1232_vm9 }
 0xd59   :  { %v1228_v47 = vsub.f32 1.0, %v1227_v34 }
 0xd5b   :  { %v1229_v36 = vmul.f32 %v2603_v33, %v1228_v47 }
 0xd5d   :  { %v1230_v38 = vadd.f32 %v2603_v33, %v1229_v36 }
 0xd5f   :  { %v1234_v42 = vsel %vm1233_vm11, %v2603_v33, %v1230_v38 }
 0xd60   :  { %v1239_v43 = vsel %vm1236_vm12, %v1238_v41, %v1234_v42 }
 0xd61   :  { %v1247_v45 = vmul.f32 %v1243_v39, %v1239_v43 }
 0xd63   :  { %v1249_v46 = vadd.f32 %v1247_v45, %v3492_v44 }
 0xd65   :  { %2604 = vtanh.f32 %v1249_v46 }
 0xd6b   :  { %v2605_v21 = vpop.eup %2604 }
 0xd6c   :  { %v1253_v49 = vsub.f32 0.0, %v2605_v21 }
 0xd6e   :  { %1258 = vrot.lane.b32.xlu1 %v1253_v49, %s2912_s16 }
 0xdab   :  { %v1257_v22 = vpop.permute.xlu2 %1256 }
 0xdac   :  { %v1262_v51 = vmul.f32 %v1257_v22, %v1224_v19 }
 0xde0   :  { %v1259_v13 = vpop.permute.xlu1 %1258 }
 0xde1   :  { %v1263_v50 = vmul.f32 %v1259_v13, %v1239_v43 }
 0xde3   :  { %1268 = vrot.lane.b32.xlu0 %v1263_v50, %s2912_s16 }
 0xdeb   :  { %1266 = vrot.lane.b32.xlu0 %v1262_v51, %s2912_s16 }
 0xe55   :  { %v1269_v26 = vpop.permute.xlu0 %1268 }
 0xe56   :  { %v3498_v59 = vadd.f32 %v2605_v21, %v1269_v26 }
 0xe58   :  { %v1276_v62 = vrot.slane %v3498_v59, 7 }
 0xe5d   :  { %v1267_v60 = vpop.permute.xlu0 %1266 }
 0xe5e   :  { %v3501_v63 = vadd.f32 %v2601_v31, %v1267_v60 }
 0xe60   :  { %v1278_v1 = vsel %vm1277_vm13, %v1276_v62, %v3501_v63 }
 0xe61   :  { %2465 = vmatmul.msk.f32.vlgmr.msra.gmra.mxu0 %vm1153_vm14, %v1278_v1  ;;  %2466 = vmatmul.msk.f32.vlgmr.msra.gmra.mxu1 %vm1153_vm14, %v1278_v1 }
 0xe62   :  { %1822 = vmatpush.msra.mxu0 %v3270_v53  ;;  %1842 = vmatpush.msra.mxu1 %v3355_v8 }
 0xe64   :  { %1823 = vmatpush.msra.mxu0 %v3276_v54  ;;  %1843 = vmatpush.msra.mxu1 %v3363_v9 }
 0xe66   :  { %1824 = vmatpush.msra.mxu0 %v3282_v55  ;;  %1844 = vmatpush.msra.mxu1 %v3372_v10 }
 0xe68   :  { %1825 = vmatpush.msra.mxu0 %v3288_v56  ;;  %1845 = vmatpush.msra.mxu1 %v3381_v12 }
 0xe6a   :  { %1826 = vmatpush.msra.mxu0 %v3294_v57  ;;  %1846 = vmatpush.msra.mxu1 %v3390_v15 }
 0xe6c   :  { %1827 = vmatpush.msra.mxu0 %v3300_v58  ;;  %1847 = vmatpush.msra.mxu1 %v3398_v18 }
 0xe6e   :  { %1828 = vmatpush.msra.mxu0 %v3312_v61  ;;  %1848 = vmatpush.msra.mxu1 %v3406_v20 }
 0xe70   :  { %1829 = vmatpush.msra.mxu0 %v3326_v0  ;;  %1849 = vmatpush.msra.mxu1 %v3414_v24 }
 0xede   :  { %v1298_v2 = vpop.f32.mrf.mxu0  ;;  %v1318_v30 = vpop.f32.mrf.mxu1 }
 0xedf   :  { %v1322_v3 = vrot.slane %v1298_v2, 7  ;;  %v1326_v4 = vadd.f32 %v1298_v2, %v3485_v14  ;;  %v1365_v36 = vadd.f32 %v3481_v52, %v1318_v30 }
 0xee1   :  { %v1325_v5 = vadd.f32 %v1322_v3, %v3475_v48  ;;  %v2468_v6 = vmul.f32 -1.442695, %v1326_v4  ;;  %v1367_v21 = vrot.slane %v1365_v36, 7 }
 0xee3   :  { %v2467_v7 = vmul.f32 -1.442695, %v1325_v5  ;;  %2606 = vpow2.f32 %v2468_v6 }
 0xee5   :  { %2608 = vpow2.f32 %v2467_v7 }
 0xee9   :  { %v2607_v11 = vpop.eup %2606 }
 0xeea   :  { %v1334_v17 = vadd.f32 1.0, %v2607_v11 }
 0xeeb   :  { %v2609_v19 = vpop.eup %2608 }
 0xeec   :  { %v1333_v25 = vadd.f32 1.0, %v2609_v19  ;;  %2610 = vrcp.f32 %v1334_v17  ;;  %v1361_v32 = vand.u32 2147483648, %v1334_v17  ;;  %v1359_v47 = vand.u32 2147483647, %v1334_v17 }
 0xeed   :  { %vm1355_vm0 = vweird.f32 %v1334_v17 }
 0xeee   :  { %2612 = vrcp.f32 %v1333_v25  ;;  %v1346_v35 = vand.u32 2147483648, %v1333_v25  ;;  %v1344_v38 = vand.u32 2147483647, %v1333_v25  ;;  %v1362_v40 = vor.u32 1.1754944e-38, %v1361_v32 }
 0xeef   :  { %vm1340_vm3 = vweird.f32 %v1333_v25  ;;  %vm1360_vm4 = vcmp.eq.f32.partialorder %v1359_v47, 8.507059e+37 }
 0xef0   :  { %v1347_v43 = vor.u32 1.1754944e-38, %v1346_v35  ;;  %vm1345_vm6 = vcmp.eq.f32.partialorder %v1344_v38, 8.507059e+37 }
 0xef2   :  { %v2611_v27 = vpop.eup %2610 }
 0xef3   :  { %v1351_v28 = vmul.f32 %v2611_v27, %v1334_v17  ;;  %vm1356_vm15 = vweird.f32 %v2611_v27 }
 0xef4   :  { %v2613_v29 = vpop.eup %2612  ;;  %vm1357_vm2 = vmor %vm1355_vm0, %vm1356_vm15 }
 0xef5   :  { %v1336_v31 = vmul.f32 %v2613_v29, %v1333_v25  ;;  %v1352_v16 = vsub.f32 1.0, %v1351_v28  ;;  %vm1341_vm1 = vweird.f32 %v2613_v29 }
 0xef6   :  { %vm1342_vm5 = vmor %vm1340_vm3, %vm1341_vm1 }
 0xef7   :  { %v1337_v33 = vsub.f32 1.0, %v1336_v31  ;;  %v1353_v34 = vmul.f32 %v2611_v27, %v1352_v16 }
 0xef9   :  { %v1338_v37 = vmul.f32 %v2613_v29, %v1337_v33  ;;  %v1354_v39 = vadd.f32 %v2611_v27, %v1353_v34 }
 0xefb   :  { %v1339_v41 = vadd.f32 %v2613_v29, %v1338_v37  ;;  %v1358_v42 = vsel %vm1357_vm2, %v2611_v27, %v1354_v39 }
 0xefc   :  { %v1363_v45 = vsel %vm1360_vm4, %v1362_v40, %v1358_v42 }
 0xefd   :  { %v1343_v46 = vsel %vm1342_vm5, %v2613_v29, %v1339_v41  ;;  %v1371_v49 = vmul.f32 %v1365_v36, %v1363_v45 }
 0xefe   :  { %v1348_v13 = vsel %vm1345_vm6, %v1347_v43, %v1343_v46 }
 0xeff   :  { %v1370_v50 = vmul.f32 %v1367_v21, %v1348_v13  ;;  %v1373_v22 = vadd.f32 %v1371_v49, %v3492_v44 }
 0xf01   :  { %v1372_v51 = vadd.f32 %v1370_v50, %v3487_v23  ;;  %2614 = vtanh.f32 %v1373_v22 }
 0xf03   :  { %2616 = vtanh.f32 %v1372_v51 }
 0xf07   :  { %v2615_v26 = vpop.eup %2614 }
 0xf08   :  { %v1379_v60 = vrot.slane %v2615_v26, 1 }
 0xf09   :  { %v2617_v62 = vpop.eup %2616 }
 0xf0a   :  { %v1383_v1 = vsub.f32 %v3498_v59, %v1379_v60  ;;  %v1378_v2 = vrot.slane %v2617_v62, 1 }
 0xf0c   :  { %v1387_v3 = vrot.slane %v1383_v1, 7  ;;  %v1382_v4 = vsub.f32 %v3501_v63, %v1378_v2 }
 0xf0e   :  { %1390 = vrot.lane.b32.xlu1 %v1387_v3, %s2912_s16  ;;  %v1386_v5 = vrot.slane %v1382_v4, 7 }
 0xf10   :  { %1388 = vrot.lane.b32.xlu2 %v1386_v5, %s2912_s16 }
 0xf6a   :  { %v1389_v6 = vpop.permute.xlu2 %1388 }
 0xf6b   :  { %v1394_v7 = vmul.f32 %v1389_v6, %v1348_v13 }
 0xf6d   :  { %1398 = vrot.lane.b32.xlu0 %v1394_v7, %s2912_s16 }
 0xf80   :  { %v1391_v11 = vpop.permute.xlu1 %1390 }
 0xf81   :  { %v1395_v17 = vmul.f32 %v1391_v11, %v1363_v45 }
 0xf83   :  { %1400 = vrot.lane.b32.xlu2 %v1395_v17, %s2912_s16 }
 0xfdd   :  { %v1401_v19 = vpop.permute.xlu2 %1400 }
 0xfde   :  { %v3536_v27 = vadd.f32 %v2615_v26, %v1401_v19 }
 0xfdf   :  { %v1399_v25 = vpop.permute.xlu0 %1398 }
 0xfe0   :  { %v3534_v59 = vadd.f32 %v2617_v62, %v1399_v25 }
 0xfe2   :  { %v1408_v63 = vrot.slane %v3534_v59, 1 }
 0xfe4   :  { %v1409_v28 = vsel %vm1277_vm13, %v3536_v27, %v1408_v63 }
 0xfe5   :  { %2469 = vmatmul.msk.f32.vlgmr.msrb.gmra.mxu2 %vm1153_vm14, %v1409_v28  ;;  %2470 = vmatmul.msk.f32.vlgmr.msrb.gmra.mxu3 %vm1153_vm14, %v1409_v28 }
 0xfe6   :  { %1956 = vmatpush.msrb.mxu2 %v3270_v53  ;;  %1976 = vmatpush.msrb.mxu3 %v3355_v8 }
 0xfe8   :  { %1957 = vmatpush.msrb.mxu2 %v3276_v54  ;;  %1977 = vmatpush.msrb.mxu3 %v3363_v9 }
 0xfea   :  { %1958 = vmatpush.msrb.mxu2 %v3282_v55  ;;  %1978 = vmatpush.msrb.mxu3 %v3372_v10 }
 0xfec   :  { %1959 = vmatpush.msrb.mxu2 %v3288_v56  ;;  %1979 = vmatpush.msrb.mxu3 %v3381_v12 }
 0xfee   :  { %1960 = vmatpush.msrb.mxu2 %v3294_v57  ;;  %1980 = vmatpush.msrb.mxu3 %v3390_v15 }
 0xff0   :  { %1961 = vmatpush.msrb.mxu2 %v3300_v58  ;;  %1981 = vmatpush.msrb.mxu3 %v3398_v18 }
 0xff2   :  { %1962 = vmatpush.msrb.mxu2 %v3312_v61  ;;  %1982 = vmatpush.msrb.mxu3 %v3406_v20 }
 0xff4   :  { %1963 = vmatpush.msrb.mxu2 %v3326_v0  ;;  %1983 = vmatpush.msrb.mxu3 %v3414_v24 }
0x1068   :  { %v1429_v29 = vpop.f32.mrf.mxu2  ;;  %v1449_v40 = vpop.f32.mrf.mxu3 }
0x1069   :  { %v1453_v30 = vrot.slane %v1429_v29, 6  ;;  %v1454_v31 = vrot.slane %v1429_v29, 7  ;;  %v1497_v21 = vadd.f32 %v3481_v52, %v1449_v40 }
0x106b   :  { %v1457_v16 = vadd.f32 %v1453_v30, %v3475_v48  ;;  %v1458_v32 = vadd.f32 %v1454_v31, %v3485_v14  ;;  %v1499_v3 = vrot.slane %v1497_v21, 6  ;;  %v1500_v6 = vrot.slane %v1497_v21, 7 }
0x106d   :  { %v2471_v33 = vmul.f32 -1.442695, %v1457_v16  ;;  %v2472_v34 = vmul.f32 -1.442695, %v1458_v32 }
0x106f   :  { %2618 = vpow2.f32 %v2471_v33 }
0x1070   :  { %2620 = vpow2.f32 %v2472_v34 }
0x1075   :  { %v2619_v47 = vpop.eup %2618 }
0x1076   :  { %v2621_v35 = vpop.eup %2620  ;;  %v1465_v36 = vadd.f32 1.0, %v2619_v47 }
0x1077   :  { %v1466_v37 = vadd.f32 1.0, %v2621_v35 }
0x1078   :  { %2622 = vrcp.f32 %v1465_v36  ;;  %v1478_v45 = vand.u32 2147483648, %v1465_v36  ;;  %v1476_v13 = vand.u32 2147483647, %v1465_v36  ;;  %vm1472_vm9 = vweird.f32 %v1465_v36 }
0x1079   :  { %2624 = vrcp.f32 %v1466_v37  ;;  %v1493_v50 = vand.u32 2147483648, %v1466_v37  ;;  %v1491_v51 = vand.u32 2147483647, %v1466_v37  ;;  %vm1487_vm11 = vweird.f32 %v1466_v37 }
0x107a   :  { %v1479_v60 = vor.u32 1.1754944e-38, %v1478_v45  ;;  %vm1477_vm12 = vcmp.eq.f32.partialorder %v1476_v13, 8.507059e+37 }
0x107b   :  { %v1494_v2 = vor.u32 1.1754944e-38, %v1493_v50  ;;  %vm1492_vm0 = vcmp.eq.f32.partialorder %v1491_v51, 8.507059e+37 }
0x107e   :  { %v2623_v38 = vpop.eup %2622 }
0x107f   :  { %v2625_v39 = vpop.eup %2624  ;;  %v1468_v41 = vmul.f32 %v2623_v38, %v1465_v36  ;;  %vm1473_vm7 = vweird.f32 %v2623_v38 }
0x1080   :  { %v1483_v42 = vmul.f32 %v2625_v39, %v1466_v37  ;;  %vm1488_vm8 = vweird.f32 %v2625_v39  ;;  %vm1474_vm10 = vmor %vm1472_vm9, %vm1473_vm7 }
0x1081   :  { %v1469_v43 = vsub.f32 1.0, %v1468_v41  ;;  %vm1489_vm15 = vmor %vm1487_vm11, %vm1488_vm8 }
0x1082   :  { %v1484_v46 = vsub.f32 1.0, %v1483_v42 }
0x1083   :  { %v1470_v49 = vmul.f32 %v2623_v38, %v1469_v43 }
0x1084   :  { %v1485_v22 = vmul.f32 %v2625_v39, %v1484_v46 }
0x1085   :  { %v1471_v26 = vadd.f32 %v2623_v38, %v1470_v49 }
0x1086   :  { %v1486_v62 = vadd.f32 %v2625_v39, %v1485_v22 }
0x1087   :  { %v1475_v1 = vsel %vm1474_vm10, %v2623_v38, %v1471_v26 }
0x1088   :  { %v1480_v4 = vsel %vm1477_vm12, %v1479_v60, %v1475_v1  ;;  %v1490_v5 = vsel %vm1489_vm15, %v2625_v39, %v1486_v62 }
0x1089   :  { %v1495_v7 = vsel %vm1492_vm0, %v1494_v2, %v1490_v5  ;;  %v1503_v11 = vmul.f32 %v1499_v3, %v1480_v4 }
0x108a   :  { %v1504_v17 = vmul.f32 %v1500_v6, %v1495_v7 }
0x108b   :  { %v1505_v19 = vadd.f32 %v1503_v11, %v3487_v23 }
0x108c   :  { %v1506_v25 = vadd.f32 %v1504_v17, %v3492_v44 }
0x108d   :  { %2626 = vtanh.f32 %v1505_v19 }
0x108e   :  { %2628 = vtanh.f32 %v1506_v25 }
0x1093   :  { %v2627_v63 = vpop.eup %2626 }
0x1094   :  { %v2629_v28 = vpop.eup %2628  ;;  %v1511_v29 = vrot.slane %v2627_v63, 1 }
0x1095   :  { %v1512_v30 = vrot.slane %v2629_v28, 1 }
0x1096   :  { %v1515_v31 = vsub.f32 %v3534_v59, %v1511_v29 }
0x1097   :  { %v1516_v16 = vsub.f32 %v3536_v27, %v1512_v30 }
0x1098   :  { %v1519_v32 = vrot.slane %v1515_v31, 7 }
0x1099   :  { %v1520_v33 = vrot.slane %v1516_v16, 7 }
0x109a   :  { %1521 = vrot.lane.b32.xlu1 %v1519_v32, %s2912_s16 }
0x109b   :  { %1523 = vrot.lane.b32.xlu0 %v1520_v33, %s2912_s16 }
0x110c   :  { %v1522_v34 = vpop.permute.xlu1 %1521 }
0x110d   :  { %v1524_v47 = vpop.permute.xlu0 %1523  ;;  %v1527_v35 = vmul.f32 %v1522_v34, %v1480_v4 }
0x110e   :  { %v1528_v36 = vmul.f32 %v1524_v47, %v1495_v7 }
0x110f   :  { %1531 = vrot.lane.b32.xlu2 %v1527_v35, %s2912_s16 }
0x1110   :  { %1533 = vrot.lane.b32.xlu1 %v1528_v36, %s2912_s16 }
0x1169   :  { %v1532_v37 = vpop.permute.xlu2 %1531 }
0x116a   :  { %v3570_v38 = vadd.f32 %v2627_v63, %v1532_v37 }
0x116c   :  { %v1541_v27 = vrot.slane %v3570_v38, 2 }
0x1182   :  { %v1534_v59 = vpop.permute.xlu1 %1533 }
0x1183   :  { %v3572_v39 = vadd.f32 %v2629_v28, %v1534_v59 }
0x1185   :  { %v1542_v40 = vrot.slane %v3572_v39, 1 }
0x1187   :  { %v1543_v41 = vsel %vm1277_vm13, %v1542_v40, %v1541_v27 }
0x1188   :  { %2473 = vmatmul.msk.f32.vlgmr.msrb.gmra.mxu0 %vm1153_vm14, %v1543_v41  ;;  %2474 = vmatmul.msk.f32.vlgmr.msrb.gmra.mxu1 %vm1153_vm14, %v1543_v41 }
0x1189   :  { %2090 = vmatpush.msrb.mxu0 %v3270_v53  ;;  %2110 = vmatpush.msrb.mxu1 %v3355_v8 }
0x118b   :  { %2091 = vmatpush.msrb.mxu0 %v3276_v54  ;;  %2111 = vmatpush.msrb.mxu1 %v3363_v9 }
0x118d   :  { %2092 = vmatpush.msrb.mxu0 %v3282_v55  ;;  %2112 = vmatpush.msrb.mxu1 %v3372_v10 }
0x118f   :  { %2093 = vmatpush.msrb.mxu0 %v3288_v56  ;;  %2113 = vmatpush.msrb.mxu1 %v3381_v12 }
0x1191   :  { %2094 = vmatpush.msrb.mxu0 %v3294_v57  ;;  %2114 = vmatpush.msrb.mxu1 %v3390_v15 }
0x1193   :  { %2095 = vmatpush.msrb.mxu0 %v3300_v58  ;;  %2115 = vmatpush.msrb.mxu1 %v3398_v18 }
0x1195   :  { %2096 = vmatpush.msrb.mxu0 %v3312_v61  ;;  %2116 = vmatpush.msrb.mxu1 %v3406_v20 }
0x1197   :  { %2097 = vmatpush.msrb.mxu0 %v3326_v0  ;;  %2117 = vmatpush.msrb.mxu1 %v3414_v24 }
0x1205   :  { %v1563_v53 = vpop.f32.mrf.mxu0  ;;  %v1583_v18 = vpop.f32.mrf.mxu1 }
0x1206   :  { %v1587_v54 = vrot.slane %v1563_v53, 5  ;;  %v1588_v55 = vrot.slane %v1563_v53, 6  ;;  %v1631_v46 = vadd.f32 %v3481_v52, %v1583_v18 }
0x1208   :  { %v1591_v56 = vadd.f32 %v1587_v54, %v3475_v48  ;;  %v1592_v57 = vadd.f32 %v1588_v55, %v3485_v14  ;;  %v1633_v2 = vrot.slane %v1631_v46, 5  ;;  %v1634_v5 = vrot.slane %v1631_v46, 6 }
0x120a   :  { %v2475_v8 = vmul.f32 -1.442695, %v1591_v56  ;;  %v2476_v9 = vmul.f32 -1.442695, %v1592_v57 }
0x120c   :  { %2630 = vpow2.f32 %v2475_v8 }
0x120d   :  { %2632 = vpow2.f32 %v2476_v9 }
0x1212   :  { %v2631_v58 = vpop.eup %2630 }
0x1213   :  { %v2633_v10 = vpop.eup %2632  ;;  %v1599_v61 = vadd.f32 1.0, %v2631_v58 }
0x1214   :  { %v1600_v12 = vadd.f32 1.0, %v2633_v10 }
0x1215   :  { %2634 = vrcp.f32 %v1599_v61  ;;  %v1612_v43 = vand.u32 2147483648, %v1599_v61  ;;  %v1610_v49 = vand.u32 2147483647, %v1599_v61  ;;  %vm1606_vm3 = vweird.f32 %v1599_v61 }
0x1216   :  { %2636 = vrcp.f32 %v1600_v12  ;;  %v1627_v13 = vand.u32 2147483648, %v1600_v12  ;;  %v1625_v22 = vand.u32 2147483647, %v1600_v12  ;;  %vm1621_vm5 = vweird.f32 %v1600_v12 }
0x1217   :  { %v1613_v26 = vor.u32 1.1754944e-38, %v1612_v43  ;;  %vm1611_vm6 = vcmp.eq.f32.partialorder %v1610_v49, 8.507059e+37 }
0x1218   :  { %v1628_v1 = vor.u32 1.1754944e-38, %v1627_v13  ;;  %vm1626_vm8 = vcmp.eq.f32.partialorder %v1625_v22, 8.507059e+37 }
0x121b   :  { %v2635_v0 = vpop.eup %2634 }
0x121c   :  { %v2637_v15 = vpop.eup %2636  ;;  %v1602_v20 = vmul.f32 %v2635_v0, %v1599_v61  ;;  %vm1607_vm1 = vweird.f32 %v2635_v0 }
0x121d   :  { %v1617_v24 = vmul.f32 %v2637_v15, %v1600_v12  ;;  %vm1622_vm2 = vweird.f32 %v2637_v15  ;;  %vm1608_vm4 = vmor %vm1606_vm3, %vm1607_vm1 }
0x121e   :  { %v1603_v42 = vsub.f32 1.0, %v1602_v20  ;;  %vm1623_vm7 = vmor %vm1621_vm5, %vm1622_vm2 }
0x121f   :  { %v1618_v45 = vsub.f32 1.0, %v1617_v24 }
0x1220   :  { %v1604_v21 = vmul.f32 %v2635_v0, %v1603_v42 }
0x1221   :  { %v1619_v50 = vmul.f32 %v2637_v15, %v1618_v45 }
0x1222   :  { %v1605_v51 = vadd.f32 %v2635_v0, %v1604_v21 }
0x1223   :  { %v1620_v60 = vadd.f32 %v2637_v15, %v1619_v50 }
0x1224   :  { %v1609_v62 = vsel %vm1608_vm4, %v2635_v0, %v1605_v51 }
0x1225   :  { %v1614_v3 = vsel %vm1611_vm6, %v1613_v26, %v1609_v62  ;;  %v1624_v4 = vsel %vm1623_vm7, %v2637_v15, %v1620_v60 }
0x1226   :  { %v1629_v6 = vsel %vm1626_vm8, %v1628_v1, %v1624_v4  ;;  %v1637_v7 = vmul.f32 %v1633_v2, %v1614_v3 }
0x1227   :  { %v1638_v11 = vmul.f32 %v1634_v5, %v1629_v6 }
0x1228   :  { %v1639_v17 = vadd.f32 %v1637_v7, %v3487_v23 }
0x1229   :  { %v1640_v19 = vadd.f32 %v1638_v11, %v3492_v44 }
0x122a   :  { %2638 = vtanh.f32 %v1639_v17 }
0x122b   :  { %2640 = vtanh.f32 %v1640_v19 }
0x1230   :  { %v2639_v25 = vpop.eup %2638 }
0x1231   :  { %v2641_v63 = vpop.eup %2640  ;;  %v1645_v28 = vrot.slane %v2639_v25, 1 }
0x1232   :  { %v1646_v29 = vrot.slane %v2641_v63, 1 }
0x1233   :  { %v1649_v30 = vsub.f32 %v3570_v38, %v1645_v28 }
0x1234   :  { %v1650_v31 = vsub.f32 %v3572_v39, %v1646_v29 }
0x1235   :  { %v1653_v16 = vrot.slane %v1649_v30, 7 }
0x1236   :  { %v1654_v32 = vrot.slane %v1650_v31, 7 }
0x1237   :  { %1655 = vrot.lane.b32.xlu0 %v1653_v16, %s2912_s16 }
0x1238   :  { %1657 = vrot.lane.b32.xlu2 %v1654_v32, %s2912_s16 }
0x1292   :  { %v1658_v33 = vpop.permute.xlu2 %1657 }
0x1293   :  { %v1662_v34 = vmul.f32 %v1658_v33, %v1629_v6 }
0x1295   :  { %1667 = vrot.lane.b32.xlu0 %v1662_v34, %s2912_s16 }
0x12a9   :  { %v1656_v47 = vpop.permute.xlu0 %1655 }
0x12aa   :  { %v1661_v35 = vmul.f32 %v1656_v47, %v1614_v3 }
0x12ac   :  { %1665 = vrot.lane.b32.xlu1 %v1661_v35, %s2912_s16 }
0x1307   :  { %v1668_v36 = vpop.permute.xlu0 %1667 }
0x1308   :  { %v3606_v37 = vadd.f32 %v2641_v63, %v1668_v36 }
0x130a   :  { %v1676_v39 = vrot.slane %v3606_v37, 2 }
0x131e   :  { %v1666_v38 = vpop.permute.xlu1 %1665 }
0x131f   :  { %v3608_v59 = vadd.f32 %v2639_v25, %v1666_v38 }
0x1321   :  { %v1675_v27 = vrot.slane %v3608_v59, 3 }
0x1323   :  { %v1677_v40 = vsel %vm1277_vm13, %v1676_v39, %v1675_v27 }
0x1324   :  { %2477 = vmatmul.msk.f32.vlgmr.msra.gmra.mxu2 %vm1153_vm14, %v1677_v40  ;;  %2478 = vmatmul.msk.f32.vlgmr.msra.gmra.mxu3 %vm1153_vm14, %v1677_v40 }
0x13a7   :  { %v1697_v41 = vpop.f32.mrf.mxu2  ;;  %v1717_v15 = vpop.f32.mrf.mxu3 }
0x13a8   :  { %v1721_v53 = vrot.slane %v1697_v41, 4  ;;  %v1722_v54 = vrot.slane %v1697_v41, 5  ;;  %v1765_v45 = vadd.f32 %v3481_v52, %v1717_v15 }
0x13aa   :  { %v1725_v55 = vadd.f32 %v1721_v53, %v3475_v48  ;;  %v1726_v56 = vadd.f32 %v1722_v54, %v3485_v14  ;;  %v1767_v1 = vrot.slane %v1765_v45, 4  ;;  %v1768_v4 = vrot.slane %v1765_v45, 5 }
0x13ac   :  { %v2479_v57 = vmul.f32 -1.442695, %v1725_v55  ;;  %v2480_v8 = vmul.f32 -1.442695, %v1726_v56 }
0x13ae   :  { %2642 = vpow2.f32 %v2479_v57 }
0x13af   :  { %2644 = vpow2.f32 %v2480_v8 }
0x13b4   :  { %v2643_v9 = vpop.eup %2642 }
0x13b5   :  { %v2645_v58 = vpop.eup %2644  ;;  %v1733_v10 = vadd.f32 1.0, %v2643_v9 }
0x13b6   :  { %v1734_v61 = vadd.f32 1.0, %v2645_v58 }
0x13b7   :  { %2646 = vrcp.f32 %v1733_v10  ;;  %v1746_v42 = vand.u32 2147483648, %v1733_v10  ;;  %v1744_v21 = vand.u32 2147483647, %v1733_v10  ;;  %vm1740_vm11 = vweird.f32 %v1733_v10 }
0x13b8   :  { %2648 = vrcp.f32 %v1734_v61  ;;  %v1761_v49 = vand.u32 2147483648, %v1734_v61  ;;  %v1759_v50 = vand.u32 2147483647, %v1734_v61  ;;  %vm1755_vm15 = vweird.f32 %v1734_v61 }
0x13b9   :  { %v1747_v51 = vor.u32 1.1754944e-38, %v1746_v42  ;;  %vm1745_vm0 = vcmp.eq.f32.partialorder %v1744_v21, 8.507059e+37 }
0x13ba   :  { %v1762_v62 = vor.u32 1.1754944e-38, %v1761_v49  ;;  %vm1760_vm2 = vcmp.eq.f32.partialorder %v1759_v50, 8.507059e+37 }
0x13bd   :  { %v2647_v12 = vpop.eup %2646 }
0x13be   :  { %v2649_v0 = vpop.eup %2648  ;;  %v1736_v18 = vmul.f32 %v2647_v12, %v1733_v10  ;;  %vm1741_vm9 = vweird.f32 %v2647_v12 }
0x13bf   :  { %v1751_v20 = vmul.f32 %v2649_v0, %v1734_v61  ;;  %vm1756_vm10 = vweird.f32 %v2649_v0  ;;  %vm1742_vm12 = vmor %vm1740_vm11, %vm1741_vm9 }
0x13c0   :  { %v1737_v24 = vsub.f32 1.0, %v1736_v18  ;;  %vm1757_vm1 = vmor %vm1755_vm15, %vm1756_vm10 }
0x13c1   :  { %v1752_v43 = vsub.f32 1.0, %v1751_v20 }
0x13c2   :  { %v1738_v46 = vmul.f32 %v2647_v12, %v1737_v24 }
0x13c3   :  { %v1753_v13 = vmul.f32 %v2649_v0, %v1752_v43 }
0x13c4   :  { %v1739_v22 = vadd.f32 %v2647_v12, %v1738_v46 }
0x13c5   :  { %v1754_v26 = vadd.f32 %v2649_v0, %v1753_v13 }
0x13c6   :  { %v1743_v60 = vsel %vm1742_vm12, %v2647_v12, %v1739_v22 }
0x13c7   :  { %v1748_v2 = vsel %vm1745_vm0, %v1747_v51, %v1743_v60  ;;  %v1758_v3 = vsel %vm1757_vm1, %v2649_v0, %v1754_v26 }
0x13c8   :  { %v1763_v5 = vsel %vm1760_vm2, %v1762_v62, %v1758_v3  ;;  %v1771_v6 = vmul.f32 %v1767_v1, %v1748_v2 }
0x13c9   :  { %v1772_v7 = vmul.f32 %v1768_v4, %v1763_v5 }
0x13ca   :  { %v1773_v11 = vadd.f32 %v1771_v6, %v3487_v23 }
0x13cb   :  { %v1774_v17 = vadd.f32 %v1772_v7, %v3492_v44 }
0x13cc   :  { %2650 = vtanh.f32 %v1773_v11 }
0x13cd   :  { %2652 = vtanh.f32 %v1774_v17 }
0x13d2   :  { %v2651_v19 = vpop.eup %2650 }
0x13d3   :  { %v2653_v25 = vpop.eup %2652  ;;  %v1779_v63 = vrot.slane %v2651_v19, 1 }
0x13d4   :  { %v1780_v28 = vrot.slane %v2653_v25, 1 }
0x13d5   :  { %v1783_v29 = vsub.f32 %v3608_v59, %v1779_v63 }
0x13d6   :  { %v1784_v30 = vsub.f32 %v3606_v37, %v1780_v28 }
0x13d7   :  { %v1787_v31 = vrot.slane %v1783_v29, 7 }
0x13d8   :  { %v1788_v16 = vrot.slane %v1784_v30, 7 }
0x13d9   :  { %1789 = vrot.lane.b32.xlu2 %v1787_v31, %s2912_s16 }
0x13da   :  { %1791 = vrot.lane.b32.xlu1 %v1788_v16, %s2912_s16 }
0x1433   :  { %v1790_v32 = vpop.permute.xlu2 %1789 }
0x1434   :  { %v1795_v33 = vmul.f32 %v1790_v32, %v1748_v2 }
0x1436   :  { %1799 = vrot.lane.b32.xlu0 %v1795_v33, %s2912_s16 }
0x144c   :  { %v1792_v34 = vpop.permute.xlu1 %1791 }
0x144d   :  { %v1796_v47 = vmul.f32 %v1792_v34, %v1763_v5 }
0x144f   :  { %1801 = vrot.lane.b32.xlu2 %v1796_v47, %s2912_s16 }
0x14a8   :  { %v1800_v35 = vpop.permute.xlu0 %1799 }
0x14a9   :  { %v3626_v36 = vadd.f32 %v2651_v19, %v1800_v35  ;;  %v1802_v38 = vpop.permute.xlu2 %1801 }
0x14aa   :  { %v3628_v59 = vadd.f32 %v2653_v25, %v1802_v38 }
0x14ab   :  { %v1809_v37 = vrot.slane %v3626_v36, 4 }
0x14ac   :  { %v1810_v39 = vrot.slane %v3628_v59, 3 }
0x14ae   :  { %v1811_v27 = vsel %vm1277_vm13, %v1810_v39, %v1809_v37 }
0x14af   :  { %2481 = vmatmul.msk.f32.vlgmr.msra.gmra.mxu0 %vm1153_vm14, %v1811_v27  ;;  %2482 = vmatmul.msk.f32.vlgmr.msra.gmra.mxu1 %vm1153_vm14, %v1811_v27 }
0x152c   :  { %v1831_v40 = vpop.f32.mrf.mxu0  ;;  %v1851_v0 = vpop.f32.mrf.mxu1 }
0x152d   :  { %v1855_v41 = vrot.slane %v1831_v40, 3  ;;  %v1856_v53 = vrot.slane %v1831_v40, 4  ;;  %v1899_v43 = vadd.f32 %v3481_v52, %v1851_v0 }
0x152f   :  { %v1859_v54 = vadd.f32 %v1855_v41, %v3475_v48  ;;  %v1860_v55 = vadd.f32 %v1856_v53, %v3485_v14  ;;  %v1901_v62 = vrot.slane %v1899_v43, 3  ;;  %v1902_v2 = vrot.slane %v1899_v43, 4 }
0x1531   :  { %v2483_v56 = vmul.f32 -1.442695, %v1859_v54  ;;  %v2484_v57 = vmul.f32 -1.442695, %v1860_v55 }
0x1533   :  { %2654 = vpow2.f32 %v2483_v56 }
0x1534   :  { %2656 = vpow2.f32 %v2484_v57 }
0x1539   :  { %v2655_v8 = vpop.eup %2654 }
0x153a   :  { %v2657_v9 = vpop.eup %2656  ;;  %v1867_v58 = vadd.f32 1.0, %v2655_v8 }
0x153b   :  { %v1868_v10 = vadd.f32 1.0, %v2657_v9 }
0x153c   :  { %2658 = vrcp.f32 %v1867_v58  ;;  %v1880_v24 = vand.u32 2147483648, %v1867_v58  ;;  %v1878_v46 = vand.u32 2147483647, %v1867_v58  ;;  %vm1874_vm5 = vweird.f32 %v1867_v58 }
0x153d   :  { %2660 = vrcp.f32 %v1868_v10  ;;  %v1895_v21 = vand.u32 2147483648, %v1868_v10  ;;  %v1893_v13 = vand.u32 2147483647, %v1868_v10  ;;  %vm1889_vm7 = vweird.f32 %v1868_v10 }
0x153e   :  { %v1881_v22 = vor.u32 1.1754944e-38, %v1880_v24  ;;  %vm1879_vm8 = vcmp.eq.f32.partialorder %v1878_v46, 8.507059e+37  ;;  %v3660_v24 = vld [vmem:[%s3776_s17] ss:$0 sm:$0xff] }
0x153f   :  { %v1896_v60 = vor.u32 1.1754944e-38, %v1895_v21  ;;  %vm1894_vm10 = vcmp.eq.f32.partialorder %v1893_v13, 8.507059e+37 }
0x1542   :  { %v2659_v61 = vpop.eup %2658 }
0x1543   :  { %v2661_v12 = vpop.eup %2660  ;;  %v1870_v15 = vmul.f32 %v2659_v61, %v1867_v58  ;;  %vm1875_vm3 = vweird.f32 %v2659_v61 }
0x1544   :  { %v1885_v18 = vmul.f32 %v2661_v12, %v1868_v10  ;;  %vm1890_vm4 = vweird.f32 %v2661_v12  ;;  %vm1876_vm6 = vmor %vm1874_vm5, %vm1875_vm3 }
0x1545   :  { %v1871_v20 = vsub.f32 1.0, %v1870_v15  ;;  %vm1891_vm9 = vmor %vm1889_vm7, %vm1890_vm4 }
0x1546   :  { %v1886_v42 = vsub.f32 1.0, %v1885_v18 }
0x1547   :  { %v1872_v45 = vmul.f32 %v2659_v61, %v1871_v20 }
0x1548   :  { %v1887_v49 = vmul.f32 %v2661_v12, %v1886_v42 }
0x1549   :  { %v1873_v50 = vadd.f32 %v2659_v61, %v1872_v45 }
0x154a   :  { %v1888_v51 = vadd.f32 %v2661_v12, %v1887_v49 }
0x154b   :  { %v1877_v26 = vsel %vm1876_vm6, %v2659_v61, %v1873_v50 }
0x154c   :  { %v1882_v1 = vsel %vm1879_vm8, %v1881_v22, %v1877_v26  ;;  %v1892_v52 = vsel %vm1891_vm9, %v2661_v12, %v1888_v51 }
0x154d   :  { %v1897_v3 = vsel %vm1894_vm10, %v1896_v60, %v1892_v52  ;;  %v1905_v4 = vmul.f32 %v1901_v62, %v1882_v1 }
0x154e   :  { %v1906_v5 = vmul.f32 %v1902_v2, %v1897_v3 }
0x154f   :  { %v1907_v6 = vadd.f32 %v1905_v4, %v3487_v23 }
0x1550   :  { %v1908_v7 = vadd.f32 %v1906_v5, %v3492_v44 }
0x1551   :  { %2662 = vtanh.f32 %v1907_v6 }
0x1552   :  { %2664 = vtanh.f32 %v1908_v7 }
0x1557   :  { %v2663_v11 = vpop.eup %2662 }
0x1558   :  { %v2665_v17 = vpop.eup %2664  ;;  %v1913_v19 = vrot.slane %v2663_v11, 1 }
0x1559   :  { %v1914_v25 = vrot.slane %v2665_v17, 1 }
0x155a   :  { %v1917_v63 = vsub.f32 %v3626_v36, %v1913_v19 }
0x155b   :  { %v1918_v28 = vsub.f32 %v3628_v59, %v1914_v25 }
0x155c   :  { %v1921_v29 = vrot.slane %v1917_v63, 7 }
0x155d   :  { %v1922_v30 = vrot.slane %v1918_v28, 7 }
0x155e   :  { %1923 = vrot.lane.b32.xlu1 %v1921_v29, %s2912_s16 }
0x155f   :  { %1925 = vrot.lane.b32.xlu0 %v1922_v30, %s2912_s16 }
0x15d0   :  { %v1924_v31 = vpop.permute.xlu1 %1923 }
0x15d1   :  { %v1926_v16 = vpop.permute.xlu0 %1925  ;;  %v1929_v32 = vmul.f32 %v1924_v31, %v1882_v1 }
0x15d2   :  { %v1930_v33 = vmul.f32 %v1926_v16, %v1897_v3 }
0x15d3   :  { %1933 = vrot.lane.b32.xlu2 %v1929_v32, %s2912_s16 }
0x15d4   :  { %1935 = vrot.lane.b32.xlu1 %v1930_v33, %s2912_s16 }
0x162d   :  { %v1934_v34 = vpop.permute.xlu2 %1933 }
0x162e   :  { %v3646_v47 = vadd.f32 %v2663_v11, %v1934_v34 }
0x1630   :  { %v1943_v38 = vrot.slane %v3646_v47, 5 }
0x1646   :  { %v1936_v35 = vpop.permute.xlu1 %1935 }
0x1647   :  { %v3648_v36 = vadd.f32 %v2665_v17, %v1936_v35 }
0x1649   :  { %v1944_v59 = vrot.slane %v3648_v36, 4 }
0x164b   :  { %v1945_v37 = vsel %vm1277_vm13, %v1944_v59, %v1943_v38 }
0x164c   :  { %2485 = vmatmul.msk.f32.vlgmr.msrb.gmra.mxu2 %vm1153_vm14, %v1945_v37  ;;  %2486 = vmatmul.msk.f32.vlgmr.msrb.gmra.mxu3 %vm1153_vm14, %v1945_v37 }
0x16cf   :  { %v1965_v39 = vpop.f32.mrf.mxu2  ;;  %v1985_v61 = vpop.f32.mrf.mxu3 }
0x16d0   :  { %v1989_v27 = vrot.slane %v1965_v39, 2  ;;  %v1990_v40 = vrot.slane %v1965_v39, 3  ;;  %v2033_v42 = vadd.f32 %v3660_v24, %v1985_v61 }
0x16d2   :  { %v1993_v41 = vadd.f32 %v1989_v27, %v3475_v48  ;;  %v1994_v53 = vadd.f32 %v1990_v40, %v3485_v14  ;;  %v2035_v60 = vrot.slane %v2033_v42, 2  ;;  %v2036_v52 = vrot.slane %v2033_v42, 3 }
0x16d4   :  { %v2487_v54 = vmul.f32 -1.442695, %v1993_v41  ;;  %v2488_v55 = vmul.f32 -1.442695, %v1994_v53 }
0x16d6   :  { %2666 = vpow2.f32 %v2487_v54 }
0x16d7   :  { %2668 = vpow2.f32 %v2488_v55 }
0x16dc   :  { %v2667_v56 = vpop.eup %2666 }
0x16dd   :  { %v2669_v57 = vpop.eup %2668  ;;  %v2001_v8 = vadd.f32 1.0, %v2667_v56 }
0x16de   :  { %v2002_v9 = vadd.f32 1.0, %v2669_v57 }
0x16df   :  { %2670 = vrcp.f32 %v2001_v8  ;;  %v2014_v18 = vand.u32 2147483648, %v2001_v8  ;;  %v2012_v45 = vand.u32 2147483647, %v2001_v8  ;;  %vm2008_vm15 = vweird.f32 %v2001_v8 }
0x16e0   :  { %2672 = vrcp.f32 %v2002_v9  ;;  %v2029_v46 = vand.u32 2147483648, %v2002_v9  ;;  %v2027_v49 = vand.u32 2147483647, %v2002_v9  ;;  %vm2023_vm1 = vweird.f32 %v2002_v9 }
0x16e1   :  { %v2015_v50 = vor.u32 1.1754944e-38, %v2014_v18  ;;  %vm2013_vm2 = vcmp.eq.f32.partialorder %v2012_v45, 8.507059e+37 }
0x16e2   :  { %v2030_v26 = vor.u32 1.1754944e-38, %v2029_v46  ;;  %vm2028_vm4 = vcmp.eq.f32.partialorder %v2027_v49, 8.507059e+37 }
0x16e5   :  { %v2671_v58 = vpop.eup %2670 }
0x16e6   :  { %v2673_v10 = vpop.eup %2672  ;;  %v2004_v12 = vmul.f32 %v2671_v58, %v2001_v8  ;;  %vm2009_vm11 = vweird.f32 %v2671_v58 }
0x16e7   :  { %v2019_v0 = vmul.f32 %v2673_v10, %v2002_v9  ;;  %vm2024_vm12 = vweird.f32 %v2673_v10  ;;  %vm2010_vm0 = vmor %vm2008_vm15, %vm2009_vm11  ;;  %vm2214_vm15 = vcmask 523271  }
0x16e8   :  { %v2005_v15 = vsub.f32 1.0, %v2004_v12  ;;  %vm2025_vm3 = vmor %vm2023_vm1, %vm2024_vm12 }
0x16e9   :  { %v2020_v20 = vsub.f32 1.0, %v2019_v0 }
0x16ea   :  { %v2006_v43 = vmul.f32 %v2671_v58, %v2005_v15 }
0x16eb   :  { %v2021_v21 = vmul.f32 %v2673_v10, %v2020_v20 }
0x16ec   :  { %v2007_v13 = vadd.f32 %v2671_v58, %v2006_v43 }
0x16ed   :  { %v2022_v22 = vadd.f32 %v2673_v10, %v2021_v21 }
0x16ee   :  { %v2011_v51 = vsel %vm2010_vm0, %v2671_v58, %v2007_v13  ;;  %vm2216_vm0 = vcmask 516096  }
0x16ef   :  { %v2016_v62 = vsel %vm2013_vm2, %v2015_v50, %v2011_v51  ;;  %v2026_v1 = vsel %vm2025_vm3, %v2673_v10, %v2022_v22 }
0x16f0   :  { %v2031_v2 = vsel %vm2028_vm4, %v2030_v26, %v2026_v1  ;;  %v2039_v3 = vmul.f32 %v2035_v60, %v2016_v62 }
0x16f1   :  { %v2040_v4 = vmul.f32 %v2036_v52, %v2031_v2 }
0x16f2   :  { %v2041_v5 = vadd.f32 %v2039_v3, %v3487_v23 }
0x16f3   :  { %v2042_v6 = vadd.f32 %v2040_v4, %v3492_v44 }
0x16f4   :  { %2674 = vtanh.f32 %v2041_v5 }
0x16f5   :  { %2676 = vtanh.f32 %v2042_v6 }
0x16fa   :  { %v2675_v7 = vpop.eup %2674 }
0x16fb   :  { %v2677_v11 = vpop.eup %2676  ;;  %v2047_v17 = vrot.slane %v2675_v7, 1 }
0x16fc   :  { %v2048_v19 = vrot.slane %v2677_v11, 1 }
0x16fd   :  { %v2051_v25 = vsub.f32 %v3646_v47, %v2047_v17 }
0x16fe   :  { %v2052_v63 = vsub.f32 %v3648_v36, %v2048_v19 }
0x16ff   :  { %v2055_v28 = vrot.slane %v2051_v25, 7  ;;  %v2225_v25 = vld [vmem:[#allocation8 + $0x38] sm:$0xff] }
0x1700   :  { %v2056_v29 = vrot.slane %v2052_v63, 7  ;;  %2243 = vmatpush.msra.mxu2 %v2225_v25  ;;  %v2345_v25 = vld [vmem:[%s3783_s24 + $0x38] sm:$0xff] }
0x1701   :  { %2057 = vrot.lane.b32.xlu0 %v2055_v28, %s2912_s16  ;;  %v2222_v28 = vld [vmem:[#allocation8 + $0x20] sm:$0xff] }
0x1702   :  { %2059 = vrot.lane.b32.xlu2 %v2056_v29, %s2912_s16 }
0x175c   :  { %v2060_v30 = vpop.permute.xlu2 %2059 }
0x175d   :  { %v2064_v31 = vmul.f32 %v2060_v30, %v2031_v2  ;;  %v2221_v30 = vld [vmem:[#allocation8 + $0x18] sm:$0xff] }
0x175f   :  { %2069 = vrot.lane.b32.xlu0 %v2064_v31, %s2912_s16 }
0x1773   :  { %v2058_v16 = vpop.permute.xlu0 %2057 }
0x1774   :  { %v2063_v32 = vmul.f32 %v2058_v16, %v2016_v62 }
0x1776   :  { %2067 = vrot.lane.b32.xlu1 %v2063_v32, %s2912_s16  ;;  %v2220_v32 = vld [vmem:[#allocation8 + $0x10] sm:$0xff] }
0x17d1   :  { %v2070_v33 = vpop.permute.xlu0 %2069 }
0x17d2   :  { %v3671_v34 = vadd.f32 %v2677_v11, %v2070_v33  ;;  %v2219_v33 = vld [vmem:[#allocation8 + $0x8] sm:$0xff] }
0x17d4   :  { %v2078_v36 = vrot.slane %v3671_v34, 5 }
0x17e8   :  { %v2068_v47 = vpop.permute.xlu1 %2067 }
0x17e9   :  { %v3673_v35 = vadd.f32 %v2675_v7, %v2068_v47  ;;  %v2271_v47 = vld [vmem:[#allocation10 + $0x78] sm:$0xff] }
0x17ea   :  { %2276 = vmatpush.msra.mxu3 %v2271_v47  ;;  %v2550_v47 = vld [vmem:[%s3782_s23] ss:$0 sm:$0xff] }
0x17eb   :  { %v2077_v38 = vrot.slane %v3673_v35, 6 }
0x17ed   :  { %v2079_v59 = vsel %vm1277_vm13, %v2078_v36, %v2077_v38  ;;  %v2269_v36 = vld [vmem:[#allocation10 + $0x68] sm:$0xff]  ;;  %v2268_v38 = vld [vmem:[#allocation10 + $0x60] sm:$0xff] }
0x17ee   :  { %2489 = vmatmul.msk.f32.vlgmr.msrb.gmra.mxu0 %vm1153_vm14, %v2079_v59  ;;  %2490 = vmatmul.msk.f32.vlgmr.msrb.gmra.mxu1 %vm1153_vm14, %v2079_v59  ;;  %v2267_v59 = vld [vmem:[#allocation10 + $0x58] sm:$0xff] }
0x186b   :  { %v2099_v37 = vpop.f32.mrf.mxu0  ;;  %v2119_v10 = vpop.f32.mrf.mxu1 }
0x186c   :  { %v2123_v39 = vrot.slane %v2099_v37, 1  ;;  %v2124_v27 = vrot.slane %v2099_v37, 2  ;;  %v2266_v37 = vld [vmem:[#allocation10 + $0x50] sm:$0xff] }
0x186e   :  { %v2127_v40 = vadd.f32 %v2123_v39, %v3475_v48  ;;  %v2128_v41 = vadd.f32 %v2124_v27, %v3485_v14  ;;  %v2167_v14 = vadd.f32 %v3660_v24, %v2119_v10  ;;  %v2265_v39 = vld [vmem:[#allocation10 + $0x48] sm:$0xff]  ;;  %v2264_v27 = vld [vmem:[#allocation10 + $0x40] sm:$0xff] }
0x1870   :  { %v2491_v53 = vmul.f32 -1.442695, %v2127_v40  ;;  %v2492_v54 = vmul.f32 -1.442695, %v2128_v41  ;;  %v2169_v22 = vrot.slane %v2167_v14, 1  ;;  %v2170_v26 = vrot.slane %v2167_v14, 2 }
0x1871   :  { %v2263_v40 = vld [vmem:[#allocation10 + $0x38] sm:$0xff]  ;;  %v2262_v41 = vld [vmem:[#allocation10 + $0x30] sm:$0xff] }
0x1872   :  { %2678 = vpow2.f32 %v2491_v53  ;;  %v2261_v53 = vld [vmem:[#allocation10 + $0x28] sm:$0xff]  ;;  %v2312_v14 = vld [vmem:[#allocation11 + $0x78] sm:$0xff] }
0x1873   :  { %2680 = vpow2.f32 %v2492_v54  ;;  %v2260_v54 = vld [vmem:[#allocation10 + $0x20] sm:$0xff]  ;;  %2317 = vmatpush.msra.mxu0 %v2312_v14 }
0x1878   :  { %v2679_v55 = vpop.eup %2678 }
0x1879   :  { %v2681_v56 = vpop.eup %2680  ;;  %v2135_v57 = vadd.f32 1.0, %v2679_v55  ;;  %v2259_v55 = vld [vmem:[#allocation10 + $0x18] sm:$0xff] }
0x187a   :  { %v2136_v8 = vadd.f32 1.0, %v2681_v56 }
0x187b   :  { %2682 = vrcp.f32 %v2135_v57  ;;  %v2148_v15 = vand.u32 2147483648, %v2135_v57  ;;  %v2146_v20 = vand.u32 2147483647, %v2135_v57  ;;  %vm2142_vm7 = vweird.f32 %v2135_v57 }
0x187c   :  { %2684 = vrcp.f32 %v2136_v8  ;;  %v2163_v42 = vand.u32 2147483648, %v2136_v8  ;;  %v2161_v45 = vand.u32 2147483647, %v2136_v8  ;;  %vm2157_vm9 = vweird.f32 %v2136_v8 }
0x187d   :  { %v2149_v21 = vor.u32 1.1754944e-38, %v2148_v15  ;;  %vm2147_vm10 = vcmp.eq.f32.partialorder %v2146_v20, 8.507059e+37  ;;  %v2257_v15 = vld [vmem:[#allocation10 + $0x8] sm:$0xff] }
0x187e   :  { %v2164_v50 = vor.u32 1.1754944e-38, %v2163_v42  ;;  %vm2162_vm12 = vcmp.eq.f32.partialorder %v2161_v45, 8.507059e+37  ;;  %v2310_v20 = vld [vmem:[#allocation11 + $0x68] sm:$0xff]  ;;  %v2309_v42 = vld [vmem:[#allocation11 + $0x60] sm:$0xff]  ;;  %v2307_v45 = vld [vmem:[#allocation11 + $0x50] sm:$0xff] }
0x1881   :  { %v2683_v9 = vpop.eup %2682 }
0x1882   :  { %v2685_v58 = vpop.eup %2684  ;;  %v2138_v61 = vmul.f32 %v2683_v9, %v2135_v57  ;;  %vm2143_vm5 = vweird.f32 %v2683_v9 }
0x1883   :  { %v2153_v12 = vmul.f32 %v2685_v58, %v2136_v8  ;;  %vm2158_vm6 = vweird.f32 %v2685_v58  ;;  %vm2144_vm8 = vmor %vm2142_vm7, %vm2143_vm5 }
0x1884   :  { %v2139_v0 = vsub.f32 1.0, %v2138_v61  ;;  %vm2159_vm11 = vmor %vm2157_vm9, %vm2158_vm6 }
0x1885   :  { %v2154_v48 = vsub.f32 1.0, %v2153_v12 }
0x1886   :  { %v2140_v18 = vmul.f32 %v2683_v9, %v2139_v0  ;;  %v2258_v0 = vld [vmem:[#allocation10 + $0x10] sm:$0xff] }
0x1887   :  { %v2155_v43 = vmul.f32 %v2685_v58, %v2154_v48  ;;  %v2256_v48 = vld [vmem:[#allocation10] sm:$0xff] }
0x1888   :  { %v2141_v46 = vadd.f32 %v2683_v9, %v2140_v18  ;;  %v2311_v18 = vld [vmem:[#allocation11 + $0x70] sm:$0xff] }
0x1889   :  { %v2156_v49 = vadd.f32 %v2685_v58, %v2155_v43  ;;  %2318 = vmatpush.msra.mxu0 %v2311_v18  ;;  %v2308_v43 = vld [vmem:[#allocation11 + $0x58] sm:$0xff] }
0x188a   :  { %v2145_v13 = vsel %vm2144_vm8, %v2683_v9, %v2141_v46  ;;  %v2306_v46 = vld [vmem:[#allocation11 + $0x48] sm:$0xff] }
0x188b   :  { %v2150_v51 = vsel %vm2147_vm10, %v2149_v21, %v2145_v13  ;;  %v2160_v24 = vsel %vm2159_vm11, %v2685_v58, %v2156_v49  ;;  %2319 = vmatpush.msra.mxu0 %v2310_v20  ;;  %v2305_v21 = vld [vmem:[#allocation11 + $0x40] sm:$0xff]  ;;  %v2304_v49 = vld [vmem:[#allocation11 + $0x38] sm:$0xff]  ;;  %v2303_v13 = vld [vmem:[#allocation11 + $0x30] sm:$0xff] }
0x188c   :  { %v2165_v60 = vsel %vm2162_vm12, %v2164_v50, %v2160_v24  ;;  %v2173_v62 = vmul.f32 %v2169_v22, %v2150_v51  ;;  %v2302_v50 = vld [vmem:[#allocation11 + $0x28] sm:$0xff]  ;;  %v2301_v22 = vld [vmem:[#allocation11 + $0x20] sm:$0xff] }
0x188d   :  { %v2174_v1 = vmul.f32 %v2170_v26, %v2165_v60  ;;  %2320 = vmatpush.msra.mxu0 %v2309_v42  ;;  %v2548_v24 = vld [vmem:[%s3778_s19] ss:$0 sm:$0xff] }
0x188e   :  { %v2175_v52 = vadd.f32 %v2173_v62, %v3487_v23  ;;  %v2224_v23 = vld [vmem:[#allocation8 + $0x30] sm:$0xff] }
0x188f   :  { %v2176_v2 = vadd.f32 %v2174_v1, %v3492_v44  ;;  %v2223_v44 = vld [vmem:[#allocation8 + $0x28] sm:$0xff]  ;;  %2244 = vmatpush.msra.mxu2 %v2224_v23  ;;  %2321 = vmatpush.msra.mxu0 %v2308_v43  ;;  %v2299_v1 = vld [vmem:[#allocation11 + $0x10] sm:$0xff] }
0x1890   :  { %2686 = vtanh.f32 %v2175_v52  ;;  %v2298_v52 = vld [vmem:[#allocation11 + $0x8] sm:$0xff]  ;;  %v2344_v23 = vld [vmem:[%s3783_s24 + $0x30] sm:$0xff] }
0x1891   :  { %2688 = vtanh.f32 %v2176_v2  ;;  %2245 = vmatpush.msra.mxu2 %v2223_v44  ;;  %2322 = vmatpush.msra.mxu0 %v2307_v45  ;;  %v2297_v2 = vld [vmem:[#allocation11] sm:$0xff]  ;;  %v2343_v44 = vld [vmem:[%s3783_s24 + $0x28] sm:$0xff] }
0x1893   :  { %2246 = vmatpush.msra.mxu2 %v2222_v28  ;;  %2323 = vmatpush.msra.mxu0 %v2306_v46  ;;  %v2341_v28 = vld [vmem:[%s3783_s24 + $0x18] sm:$0xff] }
0x1895   :  { %2247 = vmatpush.msra.mxu2 %v2221_v30  ;;  %2324 = vmatpush.msra.mxu0 %v2305_v21 }
0x1896   :  { %v2687_v3 = vpop.eup %2686 }
0x1897   :  { %v2689_v4 = vpop.eup %2688  ;;  %v2181_v5 = vrot.slane %v2687_v3, 1  ;;  %2248 = vmatpush.msra.mxu2 %v2220_v32  ;;  %2325 = vmatpush.msra.mxu0 %v2304_v49  ;;  %v2340_v32 = vld [vmem:[%s3783_s24 + $0x10] sm:$0xff] }
0x1898   :  { %v2182_v6 = vrot.slane %v2689_v4, 1 }
0x1899   :  { %v2185_v7 = vsub.f32 %v3673_v35, %v2181_v5  ;;  %2249 = vmatpush.msra.mxu2 %v2219_v33  ;;  %v2270_v35 = vld [vmem:[#allocation10 + $0x70] sm:$0xff]  ;;  %2326 = vmatpush.msra.mxu0 %v2303_v13  ;;  %v2351_v5 = vld [vmem:[%s3783_s24 + $0x68] sm:$0xff] }
0x189a   :  { %v2186_v11 = vsub.f32 %v3671_v34, %v2182_v6  ;;  %v2218_v34 = vld [vmem:[#allocation8] sm:$0xff]  ;;  %2277 = vmatpush.msra.mxu3 %v2270_v35  ;;  %v2339_v33 = vld [vmem:[%s3783_s24 + $0x8] sm:$0xff] }
0x189b   :  { %v2189_v17 = vrot.slane %v2185_v7, 7  ;;  %2250 = vmatpush.msra.mxu2 %v2218_v34  ;;  %2327 = vmatpush.msra.mxu0 %v2302_v50  ;;  %v2350_v6 = vld [vmem:[%s3783_s24 + $0x60] sm:$0xff]  ;;  %v2349_v7 = vld [vmem:[%s3783_s24 + $0x58] sm:$0xff] }
0x189c   :  { %v2190_v19 = vrot.slane %v2186_v11, 7  ;;  %2278 = vmatpush.msra.mxu3 %v2269_v36  ;;  %v2348_v11 = vld [vmem:[%s3783_s24 + $0x50] sm:$0xff]  ;;  %v2338_v34 = vld [vmem:[%s3783_s24] sm:$0xff] }
0x189d   :  { %2191 = vrot.lane.b32.xlu2 %v2189_v17, %s2912_s16  ;;  %2328 = vmatpush.msra.mxu0 %v2301_v22  ;;  %v2347_v17 = vld [vmem:[%s3783_s24 + $0x48] sm:$0xff] }
0x189e   :  { %2193 = vrot.lane.b32.xlu1 %v2190_v19, %s2912_s16  ;;  %2279 = vmatpush.msra.mxu3 %v2268_v38  ;;  %v2346_v19 = vld [vmem:[%s3783_s24 + $0x40] sm:$0xff] }
0x18a0   :  { %2280 = vmatpush.msra.mxu3 %v2267_v59  ;;  %v2551_v59 = vld [vmem:[%s3784_s25] ss:$0 sm:$0xff] }
0x18a2   :  { %2281 = vmatpush.msra.mxu3 %v2266_v37 }
0x18a4   :  { %2282 = vmatpush.msra.mxu3 %v2265_v39 }
0x18a6   :  { %2283 = vmatpush.msra.mxu3 %v2264_v27 }
0x18a8   :  { %2284 = vmatpush.msra.mxu3 %v2263_v40 }
0x18aa   :  { %2285 = vmatpush.msra.mxu3 %v2262_v41 }
0x18ac   :  { %2286 = vmatpush.msra.mxu3 %v2261_v53 }
0x18ae   :  { %2287 = vmatpush.msra.mxu3 %v2260_v54 }
0x18b0   :  { %2288 = vmatpush.msra.mxu3 %v2259_v55 }
0x18b2   :  { %2289 = vmatpush.msra.mxu3 %v2258_v0 }
0x18b4   :  { %2290 = vmatpush.msra.mxu3 %v2257_v15 }
0x18b6   :  { %2291 = vmatpush.msra.mxu3 %v2256_v48 }
0x18f7   :  { %v2192_v63 = vpop.permute.xlu2 %2191 }
0x18f8   :  { %v2197_v29 = vmul.f32 %v2192_v63, %v2150_v51  ;;  %v2300_v51 = vld [vmem:[#allocation11 + $0x18] sm:$0xff]  ;;  %v2342_v63 = vld [vmem:[%s3783_s24 + $0x20] sm:$0xff] }
0x18f9   :  { %2329 = vmatpush.msra.mxu0 %v2300_v51 }
0x18fa   :  { %2201 = vrot.lane.b32.xlu0 %v2197_v29, %s2912_s16  ;;  %v2549_v29 = vld [vmem:[%s3780_s21] ss:$0 sm:$0xff] }
0x18fb   :  { %2330 = vmatpush.msra.mxu0 %v2299_v1 }
0x18fd   :  { %2331 = vmatpush.msra.mxu0 %v2298_v52 }
0x18ff   :  { %2332 = vmatpush.msra.mxu0 %v2297_v2 }
0x1910   :  { %v2194_v31 = vpop.permute.xlu1 %2193 }
0x1911   :  { %v2198_v16 = vmul.f32 %v2194_v31, %v2165_v60 }
0x1913   :  { %2203 = vrot.lane.b32.xlu2 %v2198_v16, %s2912_s16 }
0x196c   :  { %v2202_v56 = vpop.permute.xlu0 %2201 }
0x196d   :  { %v2207_v57 = vadd.f32 %v2687_v3, %v2202_v56  ;;  %v2204_v8 = vpop.permute.xlu2 %2203  ;;  %v2353_v3 = vld [vmem:[%s3783_s24 + $0x78] sm:$0xff] }
0x196e   :  { %v2208_v9 = vadd.f32 %v2689_v4, %v2204_v8  ;;  %v2352_v4 = vld [vmem:[%s3783_s24 + $0x70] sm:$0xff]  ;;  %2358 = vmatpush.msra.mxu1 %v2353_v3 }
0x196f   :  { %2215 = vst.msk [vmem:[#allocation14 - $0x7] sm:$0x80] %vm2214_vm15, %v2207_v57  ;;  %v2230_v58 = vrot.slane %v2207_v57, 7 }
0x1970   :  { %v2211_v10 = vrot.slane %v2208_v9, 7  ;;  %v2231_v61 = vrot.slane %v2208_v9, 6  ;;  %2359 = vmatpush.msra.mxu1 %v2352_v4 }
0x1972   :  { %v2232_v12 = vsel %vm1277_vm13, %v2231_v61, %v2230_v58  ;;  %2217 = vst.msk [vmem:[#allocation14 + $0x1] sm:$0x1] %vm2216_vm0, %v2211_v10  ;;  %2360 = vmatpush.msra.mxu1 %v2351_v5  ;;  %vm2378_vm13 = vcmask 402432  }
0x1973   :  { %2493 = vmatmul.msk.f32.vlgmr.msra.gmra.mxu2 %vm1153_vm14, %v2232_v12  ;;  %2401 = dma.vmem_to_hbm [thread:$0]  %s2397_s9, 32, %s2399_s29, [#allocation15]  }
0x1974   :  { %2361 = vmatpush.msra.mxu1 %v2350_v6 }
0x1976   :  { %2362 = vmatpush.msra.mxu1 %v2349_v7 }
0x1978   :  { %2363 = vmatpush.msra.mxu1 %v2348_v11 }
0x197a   :  { %2364 = vmatpush.msra.mxu1 %v2347_v17 }
0x197c   :  { %2365 = vmatpush.msra.mxu1 %v2346_v19 }
0x197e   :  { %2366 = vmatpush.msra.mxu1 %v2345_v25 }
0x1980   :  { %2367 = vmatpush.msra.mxu1 %v2344_v23 }
0x1982   :  { %2368 = vmatpush.msra.mxu1 %v2343_v44 }
0x1984   :  { %2369 = vmatpush.msra.mxu1 %v2342_v63 }
0x1986   :  { %2370 = vmatpush.msra.mxu1 %v2341_v28 }
0x1988   :  { %2371 = vmatpush.msra.mxu1 %v2340_v32 }
0x198a   :  { %2372 = vmatpush.msra.mxu1 %v2339_v33 }
0x198c   :  { %2373 = vmatpush.msra.mxu1 %v2338_v34 }
0x19f6   :  { %v2252_v26 = vpop.f32.mrf.mxu2 }
0x19f7   :  { %v2253_v60 = vadd.f32 %v2548_v24, %v2252_v26 }
0x19f9   :  { %v2255_v62 = vmax.f32 %v2253_v60, 0.0 }
0x19fb   :  { %2292 = vmatmul.f32.vlgmr.msra.gmra.mxu3 %v2255_v62 }
0x1a7e   :  { %v2293_v30 = vpop.f32.mrf.mxu3 }
0x1a7f   :  { %v2294_v31 = vadd.f32 %v2549_v29, %v2293_v30 }
0x1a81   :  { %v2296_v16 = vmax.f32 %v2294_v31, 0.0 }
0x1a83   :  { %2333 = vmatmul.f32.vlgmr.msra.gmra.mxu0 %v2296_v16 }
0x1b00   :  { %v2334_v35 = vpop.f32.mrf.mxu0 }
0x1b01   :  { %v2335_v36 = vadd.f32 %v2550_v47, %v2334_v35 }
0x1b03   :  { %v2337_v38 = vmax.f32 %v2335_v36, 0.0 }
0x1b05   :  { %2374 = vmatmul.f32.vlgmr.msra.gmra.mxu1 %v2337_v38 }
0x1b82   :  { %v2375_v37 = vpop.f32.mrf.mxu1 }
0x1b83   :  { %v2376_v39 = vadd.f32 %v2551_v59, %v2375_v37 }
0x1b85   :  { %2379 = vst.msk [vmem:[#allocation13] sm:$0x3] %vm2378_vm13, %v2376_v39 }
0x1b86   :  { %2390 = dma.vmem_to_hbm [thread:$0]  %s2386_s5, 32, %s2388_s30, [#allocation4]  }
0x1b87   :  { %2891 = dma.done.wait [#allocation4], 32  }
0x1b88   :  { %2892 = vsyncadd [#allocation4], 4294967264 }
0x1b89   :  { %2893 = dma.done.wait [#allocation15], 32  }
0x1b8a   :  { %2894 = vsyncadd [#allocation15], 4294967264 }
0x1b8b   :  { %2410 = vsyncpa [#allocation3], 1 }
0x1b8c   :  { %2411 = vsyncpa [#allocation6], 1 }
0x1b8d   :  { %2412 = vsyncpa [#allocation9], 1 }
0x1b8e   :  { %2413 = vsyncpa [#allocation12], 1 }
0x1b8f   :  { %2414 = vsyncpa [#allocation4], 1 }
0x1b90   :  { %2415 = vsyncpa [#allocation15], 1 }

</bundles_post_ra>
